<compile_context>
chip_gen: v7x
topology: tpu7x:2x2x1
jax: 0.10.0
libtpu: 0.0.40
codegen_flags: <defaults>
</compile_context>

<pallas_src>
import functools

import jax
import jax.numpy as jnp
from jax import lax
from jax.experimental import pallas as pl
from jax.experimental.pallas import tpu as pltpu


# ------------------------------ activations ---------------------------------
def _hardswish(x):
    return x * jnp.clip(x + 3.0, 0.0, 6.0) * (1.0 / 6.0)


def _hardsigmoid(x):
    return jnp.clip(x + 3.0, 0.0, 6.0) * (1.0 / 6.0)


def _shift_pixels(a, s):
    """out[..., p] = a[..., p + s] if 0 <= p + s < P else 0 (s is a static int)."""
    if s == 0:
        return a
    pad = jnp.zeros(a.shape[:-1] + (abs(s),), a.dtype)
    if s > 0:
        return jnp.concatenate([a[..., s:], pad], axis=-1)
    return jnp.concatenate([pad, a[..., :s]], axis=-1)


# ------------------------------ fused Pallas kernel --------------------------
def _inverted_residual_kernel(img_w, use_res,
                              x_ref, w_exp_ref, b_exp_ref, w_dw_ref, b_dw_ref,
                              w_fc1_ref, b_fc1_ref, w_fc2_ref, b_fc2_ref,
                              w_proj_ref, b_proj_ref, o_ref):
    """Expand(1x1)+BN+HS -> dw 3x3+BN+HS -> SE -> project(1x1)+BN -> (+res).

    Channels-major: every per-image tensor is (C, P) with P = H*W on the lanes.
    One block = B whole images; the Python loop over B unrolls at trace time and
    the expanded (Cexp, P) activation never leaves VMEM/vregs.
    """
    B, _, P = x_ref.shape
    W = img_w

    # Hoisted weight loads and lane-boundary masks (shared by all B images).
    w_exp = w_exp_ref[...]
    b_exp = b_exp_ref[...]
    w_dw = w_dw_ref[...]
    b_dw = b_dw_ref[...]
    w_fc1 = w_fc1_ref[...]
    b_fc1 = b_fc1_ref[...]
    w_fc2 = w_fc2_ref[...]
    b_fc2 = b_fc2_ref[...]
    w_proj = w_proj_ref[...]
    b_proj = b_proj_ref[...]

    col = lax.broadcasted_iota(jnp.int32, (1, P), 1) % W
    mask_left = (col != 0).astype(jnp.float32)        # source column w-1 is valid
    mask_right = (col != W - 1).astype(jnp.float32)   # source column w+1 is valid

    inv_p = 1.0 / P

    for b in range(B):
        # --- 1x1 expand conv: (Cexp,Cin)@(Cin,P) + folded BN + Hardswish ------
        h = jnp.dot(w_exp, x_ref[b], preferred_element_type=jnp.float32)
        h = _hardswish(h + b_exp)                     # (Cexp, P), VMEM/vreg resident

        # --- 3x3 depthwise conv: W-shift once per dx, reuse over the 3 dy taps
        acc = None
        for ox in (-1, 0, 1):
            if ox == 0:
                cx = h
            elif ox > 0:
                cx = _shift_pixels(h, 1) * mask_right
            else:
                cx = _shift_pixels(h, -1) * mask_left
            for oy in (-1, 0, 1):
                # H-shift = whole-row offset; image ends give zeros (conv padding).
                t = cx if oy == 0 else _shift_pixels(cx, oy * W)
                k = (oy + 1) * 3 + (ox + 1)
                term = t * w_dw[:, k:k + 1]           # per-channel tap weight
                acc = term if acc is None else acc + term
        d = _hardswish(acc + b_dw)                    # (Cexp, P)

        # --- Squeeze-Excitation (tiny; intentionally left as plain matvecs) ---
        s = jnp.sum(d, axis=1, keepdims=True) * inv_p                 # (Cexp, 1)
        s = jnp.dot(w_fc1, s, preferred_element_type=jnp.float32)     # (Csq, 1)
        s = jnp.maximum(s + b_fc1, 0.0)
        s = jnp.dot(w_fc2, s, preferred_element_type=jnp.float32)     # (Cexp, 1)
        s = _hardsigmoid(s + b_fc2)
        d = d * s                                                     # scale channels

        # --- 1x1 project conv + folded BN (+ residual re-read from VMEM) ------
        p = jnp.dot(w_proj, d, preferred_element_type=jnp.float32)    # (Cout, P)
        out = p + b_proj
        if use_res:
            out = out + x_ref[b]
        o_ref[b] = out


# ------------------------------ wrapper --------------------------------------
def _pick_block_batch(n, max_b=8):
    """Images per grid step: <= max_b, divides N, prefer leaving >= 2 grid steps."""
    divs = [b for b in range(1, min(n, max_b) + 1) if n % b == 0]
    multi = [b for b in divs if n // b >= 2]
    return max(multi) if multi else max(divs)


def inverted_residual_forward(x_nchw, params):
    N, Cin, H, W = x_nchw.shape
    P = H * W
    Cexp = params['w_exp'].shape[0]
    Csq = params['w_fc1'].shape[0]
    Cout = params['w_proj'].shape[0]
    use_res = (Cin == Cout)          # stride == 1 variant only

    # NCHW -> (N, C, H*W): free reshape, channels on sublanes, pixels on lanes.
    x = x_nchw.astype(jnp.float32).reshape(N, Cin, P)

    B = _pick_block_batch(N)
    grid = (N // B,)

    flops = (2 * N * P * (Cin * Cexp + 9 * Cexp + Cexp * Cout)
             + 2 * N * (Cexp * Csq + Csq * Cexp))
    bytes_accessed = 4 * (N * P * (Cin + Cout)
                          + sum(int(p.size) for p in params.values()))

    const2 = lambda n: (0, 0)
    kernel = functools.partial(_inverted_residual_kernel, W, use_res)

    out = pl.pallas_call(
        kernel,
        out_shape=jax.ShapeDtypeStruct((N, Cout, P), jnp.float32),
        grid=grid,
        in_specs=[
            pl.BlockSpec((B, Cin, P), lambda n: (n, 0, 0)),   # x (B images / step)
            pl.BlockSpec((Cexp, Cin), const2),                # w_exp
            pl.BlockSpec((Cexp, 1), const2),                  # b_exp
            pl.BlockSpec((Cexp, 9), const2),                  # w_dw (taps on lanes)
            pl.BlockSpec((Cexp, 1), const2),                  # b_dw
            pl.BlockSpec((Csq, Cexp), const2),                # w_fc1
            pl.BlockSpec((Csq, 1), const2),                   # b_fc1
            pl.BlockSpec((Cexp, Csq), const2),                # w_fc2
            pl.BlockSpec((Cexp, 1), const2),                  # b_fc2
            pl.BlockSpec((Cout, Cexp), const2),               # w_proj
            pl.BlockSpec((Cout, 1), const2),                  # b_proj
        ],
        out_specs=pl.BlockSpec((B, Cout, P), lambda n: (n, 0, 0)),
        compiler_params=pltpu.CompilerParams(
            dimension_semantics=("parallel",)),               # batch chunks across TCs
        cost_estimate=pl.CostEstimate(flops=flops, transcendentals=0,
                                      bytes_accessed=bytes_accessed),
    )(x, params['w_exp'], params['b_exp'], params['w_dw'], params['b_dw'],
      params['w_fc1'], params['b_fc1'], params['w_fc2'], params['b_fc2'],
      params['w_proj'], params['b_proj'])

    return out.reshape(N, Cout, H, W)                         # free reshape to NCHW


# ------------------------------ parameters -----------------------------------
def _make_divisible(v, divisor=8, min_value=None):
    if min_value is None:
        min_value = divisor
    new_v = max(min_value, int(v + divisor / 2) // divisor * divisor)
    if new_v < 0.9 * v:
        new_v += divisor
    return new_v


def init_params(key, cin, cexp, cout, k=3, eps=1e-5):
    keys = jax.random.split(key, 19)
    csq = _make_divisible(cexp // 4, 8)

    def bn_fold(kg, kb, km, kv, c):
        gamma = jax.random.normal(kg, (c,), jnp.float32) * 0.1 + 1.0
        beta = jax.random.normal(kb, (c,), jnp.float32) * 0.1
        mean = jax.random.normal(km, (c,), jnp.float32) * 0.1
        var = jax.random.uniform(kv, (c,), jnp.float32, 0.5, 1.5)
        scale = gamma / jnp.sqrt(var + eps)
        return scale, beta - mean * scale

    # 1x1 expand conv (no bias) + BatchNorm -> folded weight / bias (channels-major)
    w_exp = jax.random.normal(keys[0], (cexp, cin), jnp.float32) * 0.2
    s1, b1 = bn_fold(keys[1], keys[2], keys[3], keys[4], cexp)
    w_exp = w_exp * s1[:, None]
    b_exp = b1[:, None]

    # depthwise kxk conv (no bias) + BatchNorm; taps flattened as (Cexp, k*k)
    w_dw = jax.random.normal(keys[5], (cexp, k * k), jnp.float32) * 0.2
    s2, b2 = bn_fold(keys[6], keys[7], keys[8], keys[9], cexp)
    w_dw = w_dw * s2[:, None]
    b_dw = b2[:, None]

    # SqueezeExcitation 1x1 convs (with bias, no norm)
    w_fc1 = jax.random.normal(keys[10], (csq, cexp), jnp.float32) * 0.2
    b_fc1 = (jax.random.normal(keys[11], (csq,), jnp.float32) * 0.1)[:, None]
    w_fc2 = jax.random.normal(keys[12], (cexp, csq), jnp.float32) * 0.2
    b_fc2 = (jax.random.normal(keys[13], (cexp,), jnp.float32) * 0.1)[:, None]

    # 1x1 project conv (no bias) + BatchNorm, no activation
    w_proj = jax.random.normal(keys[14], (cout, cexp), jnp.float32) * 0.2
    s3, b3 = bn_fold(keys[15], keys[16], keys[17], keys[18], cout)
    w_proj = w_proj * s3[:, None]
    b_proj = b3[:, None]

    return dict(w_exp=w_exp, b_exp=b_exp, w_dw=w_dw, b_dw=b_dw,
                w_fc1=w_fc1, b_fc1=b_fc1, w_fc2=w_fc2, b_fc2=b_fc2,
                w_proj=w_proj, b_proj=b_proj)


# ------------------------------ pure-JAX reference ---------------------------
def reference_forward(x_nchw, params):
    x = x_nchw.astype(jnp.float32)
    N, Cin, H, W = x.shape
    K = 3

    h = jnp.einsum('ec,nchw->nehw', params['w_exp'], x) + params['b_exp'][None, :, :, None]
    h = _hardswish(h)
    hp = jnp.pad(h, ((0, 0), (0, 0), (1, 1), (1, 1)))
    acc = jnp.zeros_like(h)
    for dy in range(K):
        for dx in range(K):
            tap = params['w_dw'][:, dy * K + dx]
            acc = acc + hp[:, :, dy:dy + H, dx:dx + W] * tap[None, :, None, None]
    d = _hardswish(acc + params['b_dw'][None, :, :, None])

    s = jnp.mean(d, axis=(2, 3))                                        # (N, Cexp)
    s = jnp.maximum(s @ params['w_fc1'].T + params['b_fc1'][:, 0], 0.0)  # (N, Csq)
    s = _hardsigmoid(s @ params['w_fc2'].T + params['b_fc2'][:, 0])      # (N, Cexp)
    d = d * s[:, :, None, None]

    p = jnp.einsum('oc,nchw->nohw', params['w_proj'], d) + params['b_proj'][None, :, :, None]
    return p + x


# ------------------------------ main ------------------------------------------
if __name__ == "__main__":
    key = jax.random.PRNGKey(0)
    kx, kp = jax.random.split(key)

    # InvertedResidualConfig(16, 3, 64, 16, use_se=True, activation='HS',
    #                        stride=1, dilation=1, width_mult=1.0)
    CIN, CEXP, COUT = 16, 64, 16
    N, H, W = 4, 16, 16

    x = jax.random.normal(kx, (N, CIN, H, W), dtype=jnp.float32)
    params = init_params(kp, CIN, CEXP, COUT)

    fwd = jax.jit(functools.partial(inverted_residual_forward, params=params))
    out = jax.block_until_ready(fwd(x))

    ref = reference_forward(x, params)
    assert out.shape == (N, COUT, H, W), out.shape
    max_err = float(jnp.max(jnp.abs(out - ref)))
    assert jnp.allclose(out, ref, rtol=1e-3, atol=1e-3), max_err

    print("KERNEL_OK")
</pallas_src>

<mosaic_0001>
module attributes {stable_mosaic.version = 11 : i64} {
  func.func @_inverted_residual_kernel(%arg0: i32, %arg1: memref<2x16x256xf32, #tpu.memory_space<vmem>>, %arg2: memref<64x16xf32, #tpu.memory_space<vmem>>, %arg3: memref<64x1xf32, #tpu.memory_space<vmem>>, %arg4: memref<64x9xf32, #tpu.memory_space<vmem>>, %arg5: memref<64x1xf32, #tpu.memory_space<vmem>>, %arg6: memref<16x64xf32, #tpu.memory_space<vmem>>, %arg7: memref<16x1xf32, #tpu.memory_space<vmem>>, %arg8: memref<64x16xf32, #tpu.memory_space<vmem>>, %arg9: memref<64x1xf32, #tpu.memory_space<vmem>>, %arg10: memref<16x64xf32, #tpu.memory_space<vmem>>, %arg11: memref<16x1xf32, #tpu.memory_space<vmem>>, %arg12: memref<2x16x256xf32, #tpu.memory_space<vmem>>) attributes {dimension_semantics = [#tpu.dimension_semantics<parallel>], iteration_bounds = array<i64: 2>, scalar_prefetch = 0 : i64, scratch_operands = 0 : i64, tpu.core_type = #tpu.core_type<tc>, window_params = [{transform_indices = @transform_0, window_bounds = array<i64: 2, 16, 256>}, {pipeline_mode = #tpu.pipeline_mode<synchronous>, transform_indices = @transform_1, window_bounds = array<i64: 64, 16>}, {pipeline_mode = #tpu.pipeline_mode<synchronous>, transform_indices = @transform_2, window_bounds = array<i64: 64, 1>}, {pipeline_mode = #tpu.pipeline_mode<synchronous>, transform_indices = @transform_3, window_bounds = array<i64: 64, 9>}, {pipeline_mode = #tpu.pipeline_mode<synchronous>, transform_indices = @transform_4, window_bounds = array<i64: 64, 1>}, {pipeline_mode = #tpu.pipeline_mode<synchronous>, transform_indices = @transform_5, window_bounds = array<i64: 16, 64>}, {pipeline_mode = #tpu.pipeline_mode<synchronous>, transform_indices = @transform_6, window_bounds = array<i64: 16, 1>}, {pipeline_mode = #tpu.pipeline_mode<synchronous>, transform_indices = @transform_7, window_bounds = array<i64: 64, 16>}, {pipeline_mode = #tpu.pipeline_mode<synchronous>, transform_indices = @transform_8, window_bounds = array<i64: 64, 1>}, {pipeline_mode = #tpu.pipeline_mode<synchronous>, transform_indices = @transform_9, window_bounds = array<i64: 16, 64>}, {pipeline_mode = #tpu.pipeline_mode<synchronous>, transform_indices = @transform_10, window_bounds = array<i64: 16, 1>}, {transform_indices = @transform_11, window_bounds = array<i64: 2, 16, 256>}]} {
    %c0 = arith.constant 0 : index
    %c0_0 = arith.constant 0 : index
    %0 = vector.load %arg2[%c0, %c0_0] : memref<64x16xf32, #tpu.memory_space<vmem>>, vector<64x16xf32>
    %c0_1 = arith.constant 0 : index
    %c0_2 = arith.constant 0 : index
    %1 = vector.load %arg3[%c0_1, %c0_2] : memref<64x1xf32, #tpu.memory_space<vmem>>, vector<64x1xf32>
    %c0_3 = arith.constant 0 : index
    %c0_4 = arith.constant 0 : index
    %2 = vector.load %arg4[%c0_3, %c0_4] : memref<64x9xf32, #tpu.memory_space<vmem>>, vector<64x9xf32>
    %c0_5 = arith.constant 0 : index
    %c0_6 = arith.constant 0 : index
    %3 = vector.load %arg5[%c0_5, %c0_6] : memref<64x1xf32, #tpu.memory_space<vmem>>, vector<64x1xf32>
    %c0_7 = arith.constant 0 : index
    %c0_8 = arith.constant 0 : index
    %4 = vector.load %arg6[%c0_7, %c0_8] : memref<16x64xf32, #tpu.memory_space<vmem>>, vector<16x64xf32>
    %c0_9 = arith.constant 0 : index
    %c0_10 = arith.constant 0 : index
    %5 = vector.load %arg7[%c0_9, %c0_10] : memref<16x1xf32, #tpu.memory_space<vmem>>, vector<16x1xf32>
    %c0_11 = arith.constant 0 : index
    %c0_12 = arith.constant 0 : index
    %6 = vector.load %arg8[%c0_11, %c0_12] : memref<64x16xf32, #tpu.memory_space<vmem>>, vector<64x16xf32>
    %c0_13 = arith.constant 0 : index
    %c0_14 = arith.constant 0 : index
    %7 = vector.load %arg9[%c0_13, %c0_14] : memref<64x1xf32, #tpu.memory_space<vmem>>, vector<64x1xf32>
    %c0_15 = arith.constant 0 : index
    %c0_16 = arith.constant 0 : index
    %8 = vector.load %arg10[%c0_15, %c0_16] : memref<16x64xf32, #tpu.memory_space<vmem>>, vector<16x64xf32>
    %c0_17 = arith.constant 0 : index
    %c0_18 = arith.constant 0 : index
    %9 = vector.load %arg11[%c0_17, %c0_18] : memref<16x1xf32, #tpu.memory_space<vmem>>, vector<16x1xf32>
    %10 = tpu.iota {dimensions = array<i32: 1>} : vector<1x256xi32>
    %c16_i32 = arith.constant 16 : i32
    %c0_i32 = arith.constant 0 : i32
    %11 = arith.cmpi eq, %c16_i32, %c0_i32 : i32
    %c1_i32 = arith.constant 1 : i32
    %12 = arith.select %11, %c1_i32, %c16_i32 : i32
    %13 = vector.broadcast %12 : i32 to vector<1x256xi32>
    %14 = arith.remsi %10, %13 : vector<1x256xi32>
    %c0_i32_19 = arith.constant 0 : i32
    %15 = vector.broadcast %c0_i32_19 : i32 to vector<1x256xi32>
    %16 = arith.cmpi ne, %14, %15 : vector<1x256xi32>
    %c0_i32_20 = arith.constant 0 : i32
    %17 = vector.broadcast %c0_i32_20 : i32 to vector<1x256xi32>
    %18 = arith.cmpi slt, %14, %17 : vector<1x256xi32>
    %c0_i32_21 = arith.constant 0 : i32
    %19 = arith.cmpi slt, %12, %c0_i32_21 : i32
    %20 = vector.broadcast %19 : i1 to vector<1x256xi1>
    %21 = vector.broadcast %20 : vector<1x256xi1> to vector<1x256xi1>
    %22 = arith.xori %18, %21 : vector<1x256xi1>
    %23 = arith.andi %22, %16 : vector<1x256xi1>
    %24 = vector.broadcast %12 : i32 to vector<1x256xi32>
    %25 = arith.addi %14, %24 : vector<1x256xi32>
    %26 = arith.select %23, %25, %14 : vector<1x256xi1>, vector<1x256xi32>
    %c0_i32_22 = arith.constant 0 : i32
    %27 = vector.broadcast %c0_i32_22 : i32 to vector<1x256xi32>
    %28 = arith.cmpi ne, %26, %27 : vector<1x256xi32>
    %29 = arith.extui %28 : vector<1x256xi1> to vector<1x256xi32>
    %30 = arith.sitofp %29 : vector<1x256xi32> to vector<1x256xf32>
    %c15_i32 = arith.constant 15 : i32
    %31 = vector.broadcast %c15_i32 : i32 to vector<1x256xi32>
    %32 = arith.cmpi ne, %26, %31 : vector<1x256xi32>
    %33 = arith.extui %32 : vector<1x256xi1> to vector<1x256xi32>
    %34 = arith.sitofp %33 : vector<1x256xi32> to vector<1x256xf32>
    %c0_23 = arith.constant 0 : index
    %c0_24 = arith.constant 0 : index
    %c0_25 = arith.constant 0 : index
    %35 = vector.load %arg1[%c0_23, %c0_24, %c0_25] : memref<2x16x256xf32, #tpu.memory_space<vmem>>, vector<1x16x256xf32>
    %36 = vector.shape_cast %35 : vector<1x16x256xf32> to vector<16x256xf32>
    %cst = arith.constant dense<0.000000e+00> : vector<64x256xf32>
    %37 = tpu.matmul %0, %36, %cst {dimension_numbers = #tpu.dot_dimension_numbers<[1], [0], [0], [1], [0, 0, 1, 1], [], []>} : vector<64x16xf32>, vector<16x256xf32>, vector<64x256xf32> -> vector<64x256xf32>
    %38 = vector.broadcast %1 : vector<64x1xf32> to vector<64x256xf32>
    %39 = arith.addf %37, %38 : vector<64x256xf32>
    %cst_26 = arith.constant 3.000000e+00 : f32
    %40 = vector.broadcast %cst_26 : f32 to vector<64x256xf32>
    %41 = arith.addf %39, %40 : vector<64x256xf32>
    %cst_27 = arith.constant 0.000000e+00 : f32
    %cst_28 = arith.constant 6.000000e+00 : f32
    %42 = vector.broadcast %cst_27 : f32 to vector<64x256xf32>
    %43 = arith.maximumf %42, %41 : vector<64x256xf32>
    %44 = vector.broadcast %cst_28 : f32 to vector<64x256xf32>
    %45 = arith.minimumf %44, %43 : vector<64x256xf32>
    %46 = arith.mulf %39, %45 : vector<64x256xf32>
    %cst_29 = arith.constant 0.166666672 : f32
    %47 = vector.broadcast %cst_29 : f32 to vector<64x256xf32>
    %48 = arith.mulf %46, %47 : vector<64x256xf32>
    %cst_30 = arith.constant 0.000000e+00 : f32
    %49 = vector.broadcast %cst_30 : f32 to vector<64x1xf32>
    %50 = vector.extract_strided_slice %48 {offsets = [0, 0], sizes = [64, 255], strides = [1, 1]} : vector<64x256xf32> to vector<64x255xf32>
    %51 = tpu.concatenate %49, %50 in 1 : vector<64x1xf32>, vector<64x255xf32> -> vector<64x256xf32>
    %52 = vector.broadcast %30 : vector<1x256xf32> to vector<64x256xf32>
    %53 = arith.mulf %51, %52 : vector<64x256xf32>
    %cst_31 = arith.constant 0.000000e+00 : f32
    %54 = vector.broadcast %cst_31 : f32 to vector<64x16xf32>
    %55 = vector.extract_strided_slice %53 {offsets = [0, 0], sizes = [64, 240], strides = [1, 1]} : vector<64x256xf32> to vector<64x240xf32>
    %56 = tpu.concatenate %54, %55 in 1 : vector<64x16xf32>, vector<64x240xf32> -> vector<64x256xf32>
    %57 = vector.extract_strided_slice %2 {offsets = [0, 0], sizes = [64, 1], strides = [1, 1]} : vector<64x9xf32> to vector<64x1xf32>
    %58 = vector.broadcast %57 : vector<64x1xf32> to vector<64x256xf32>
    %59 = arith.mulf %56, %58 : vector<64x256xf32>
    %60 = vector.extract_strided_slice %2 {offsets = [0, 3], sizes = [64, 1], strides = [1, 1]} : vector<64x9xf32> to vector<64x1xf32>
    %61 = vector.broadcast %60 : vector<64x1xf32> to vector<64x256xf32>
    %62 = arith.mulf %53, %61 : vector<64x256xf32>
    %63 = arith.addf %59, %62 : vector<64x256xf32>
    %cst_32 = arith.constant 0.000000e+00 : f32
    %64 = vector.broadcast %cst_32 : f32 to vector<64x16xf32>
    %65 = vector.extract_strided_slice %53 {offsets = [0, 16], sizes = [64, 240], strides = [1, 1]} : vector<64x256xf32> to vector<64x240xf32>
    %66 = tpu.concatenate %65, %64 in 1 : vector<64x240xf32>, vector<64x16xf32> -> vector<64x256xf32>
    %67 = vector.extract_strided_slice %2 {offsets = [0, 6], sizes = [64, 1], strides = [1, 1]} : vector<64x9xf32> to vector<64x1xf32>
    %68 = vector.broadcast %67 : vector<64x1xf32> to vector<64x256xf32>
    %69 = arith.mulf %66, %68 : vector<64x256xf32>
    %70 = arith.addf %63, %69 : vector<64x256xf32>
    %cst_33 = arith.constant 0.000000e+00 : f32
    %71 = vector.broadcast %cst_33 : f32 to vector<64x16xf32>
    %72 = vector.extract_strided_slice %48 {offsets = [0, 0], sizes = [64, 240], strides = [1, 1]} : vector<64x256xf32> to vector<64x240xf32>
    %73 = tpu.concatenate %71, %72 in 1 : vector<64x16xf32>, vector<64x240xf32> -> vector<64x256xf32>
    %74 = vector.extract_strided_slice %2 {offsets = [0, 1], sizes = [64, 1], strides = [1, 1]} : vector<64x9xf32> to vector<64x1xf32>
    %75 = vector.broadcast %74 : vector<64x1xf32> to vector<64x256xf32>
    %76 = arith.mulf %73, %75 : vector<64x256xf32>
    %77 = arith.addf %70, %76 : vector<64x256xf32>
    %78 = vector.extract_strided_slice %2 {offsets = [0, 4], sizes = [64, 1], strides = [1, 1]} : vector<64x9xf32> to vector<64x1xf32>
    %79 = vector.broadcast %78 : vector<64x1xf32> to vector<64x256xf32>
    %80 = arith.mulf %48, %79 : vector<64x256xf32>
    %81 = arith.addf %77, %80 : vector<64x256xf32>
    %cst_34 = arith.constant 0.000000e+00 : f32
    %82 = vector.broadcast %cst_34 : f32 to vector<64x16xf32>
    %83 = vector.extract_strided_slice %48 {offsets = [0, 16], sizes = [64, 240], strides = [1, 1]} : vector<64x256xf32> to vector<64x240xf32>
    %84 = tpu.concatenate %83, %82 in 1 : vector<64x240xf32>, vector<64x16xf32> -> vector<64x256xf32>
    %85 = vector.extract_strided_slice %2 {offsets = [0, 7], sizes = [64, 1], strides = [1, 1]} : vector<64x9xf32> to vector<64x1xf32>
    %86 = vector.broadcast %85 : vector<64x1xf32> to vector<64x256xf32>
    %87 = arith.mulf %84, %86 : vector<64x256xf32>
    %88 = arith.addf %81, %87 : vector<64x256xf32>
    %cst_35 = arith.constant 0.000000e+00 : f32
    %89 = vector.broadcast %cst_35 : f32 to vector<64x1xf32>
    %90 = vector.extract_strided_slice %48 {offsets = [0, 1], sizes = [64, 255], strides = [1, 1]} : vector<64x256xf32> to vector<64x255xf32>
    %91 = tpu.concatenate %90, %89 in 1 : vector<64x255xf32>, vector<64x1xf32> -> vector<64x256xf32>
    %92 = vector.broadcast %34 : vector<1x256xf32> to vector<64x256xf32>
    %93 = arith.mulf %91, %92 : vector<64x256xf32>
    %cst_36 = arith.constant 0.000000e+00 : f32
    %94 = vector.broadcast %cst_36 : f32 to vector<64x16xf32>
    %95 = vector.extract_strided_slice %93 {offsets = [0, 0], sizes = [64, 240], strides = [1, 1]} : vector<64x256xf32> to vector<64x240xf32>
    %96 = tpu.concatenate %94, %95 in 1 : vector<64x16xf32>, vector<64x240xf32> -> vector<64x256xf32>
    %97 = vector.extract_strided_slice %2 {offsets = [0, 2], sizes = [64, 1], strides = [1, 1]} : vector<64x9xf32> to vector<64x1xf32>
    %98 = vector.broadcast %97 : vector<64x1xf32> to vector<64x256xf32>
    %99 = arith.mulf %96, %98 : vector<64x256xf32>
    %100 = arith.addf %88, %99 : vector<64x256xf32>
    %101 = vector.extract_strided_slice %2 {offsets = [0, 5], sizes = [64, 1], strides = [1, 1]} : vector<64x9xf32> to vector<64x1xf32>
    %102 = vector.broadcast %101 : vector<64x1xf32> to vector<64x256xf32>
    %103 = arith.mulf %93, %102 : vector<64x256xf32>
    %104 = arith.addf %100, %103 : vector<64x256xf32>
    %cst_37 = arith.constant 0.000000e+00 : f32
    %105 = vector.broadcast %cst_37 : f32 to vector<64x16xf32>
    %106 = vector.extract_strided_slice %93 {offsets = [0, 16], sizes = [64, 240], strides = [1, 1]} : vector<64x256xf32> to vector<64x240xf32>
    %107 = tpu.concatenate %106, %105 in 1 : vector<64x240xf32>, vector<64x16xf32> -> vector<64x256xf32>
    %108 = vector.extract_strided_slice %2 {offsets = [0, 8], sizes = [64, 1], strides = [1, 1]} : vector<64x9xf32> to vector<64x1xf32>
    %109 = vector.broadcast %108 : vector<64x1xf32> to vector<64x256xf32>
    %110 = arith.mulf %107, %109 : vector<64x256xf32>
    %111 = arith.addf %104, %110 : vector<64x256xf32>
    %112 = vector.broadcast %3 : vector<64x1xf32> to vector<64x256xf32>
    %113 = arith.addf %111, %112 : vector<64x256xf32>
    %cst_38 = arith.constant 3.000000e+00 : f32
    %114 = vector.broadcast %cst_38 : f32 to vector<64x256xf32>
    %115 = arith.addf %113, %114 : vector<64x256xf32>
    %cst_39 = arith.constant 0.000000e+00 : f32
    %cst_40 = arith.constant 6.000000e+00 : f32
    %116 = vector.broadcast %cst_39 : f32 to vector<64x256xf32>
    %117 = arith.maximumf %116, %115 : vector<64x256xf32>
    %118 = vector.broadcast %cst_40 : f32 to vector<64x256xf32>
    %119 = arith.minimumf %118, %117 : vector<64x256xf32>
    %120 = arith.mulf %113, %119 : vector<64x256xf32>
    %cst_41 = arith.constant 0.166666672 : f32
    %121 = vector.broadcast %cst_41 : f32 to vector<64x256xf32>
    %122 = arith.mulf %120, %121 : vector<64x256xf32>
    %cst_42 = arith.constant dense<0.000000e+00> : vector<64xf32>
    %123 = vector.multi_reduction <add>, %122, %cst_42 [1] : vector<64x256xf32> to vector<64xf32>
    %124 = vector.shape_cast %123 : vector<64xf32> to vector<64x1xf32>
    %cst_43 = arith.constant 3.906250e-03 : f32
    %125 = vector.broadcast %cst_43 : f32 to vector<64x1xf32>
    %126 = arith.mulf %124, %125 : vector<64x1xf32>
    %cst_44 = arith.constant dense<0.000000e+00> : vector<16x1xf32>
    %127 = tpu.matmul %4, %126, %cst_44 {dimension_numbers = #tpu.dot_dimension_numbers<[1], [0], [0], [1], [0, 0, 1, 1], [], []>} : vector<16x64xf32>, vector<64x1xf32>, vector<16x1xf32> -> vector<16x1xf32>
    %128 = arith.addf %127, %5 : vector<16x1xf32>
    %cst_45 = arith.constant 0.000000e+00 : f32
    %129 = vector.broadcast %cst_45 : f32 to vector<16x1xf32>
    %130 = arith.maximumf %128, %129 : vector<16x1xf32>
    %cst_46 = arith.constant dense<0.000000e+00> : vector<64x1xf32>
    %131 = tpu.matmul %6, %130, %cst_46 {dimension_numbers = #tpu.dot_dimension_numbers<[1], [0], [0], [1], [0, 0, 1, 1], [], []>} : vector<64x16xf32>, vector<16x1xf32>, vector<64x1xf32> -> vector<64x1xf32>
    %132 = arith.addf %131, %7 : vector<64x1xf32>
    %cst_47 = arith.constant 3.000000e+00 : f32
    %133 = vector.broadcast %cst_47 : f32 to vector<64x1xf32>
    %134 = arith.addf %132, %133 : vector<64x1xf32>
    %cst_48 = arith.constant 0.000000e+00 : f32
    %cst_49 = arith.constant 6.000000e+00 : f32
    %135 = vector.broadcast %cst_48 : f32 to vector<64x1xf32>
    %136 = arith.maximumf %135, %134 : vector<64x1xf32>
    %137 = vector.broadcast %cst_49 : f32 to vector<64x1xf32>
    %138 = arith.minimumf %137, %136 : vector<64x1xf32>
    %cst_50 = arith.constant 0.166666672 : f32
    %139 = vector.broadcast %cst_50 : f32 to vector<64x1xf32>
    %140 = arith.mulf %138, %139 : vector<64x1xf32>
    %141 = vector.broadcast %140 : vector<64x1xf32> to vector<64x256xf32>
    %142 = arith.mulf %122, %141 : vector<64x256xf32>
    %cst_51 = arith.constant dense<0.000000e+00> : vector<16x256xf32>
    %143 = tpu.matmul %8, %142, %cst_51 {dimension_numbers = #tpu.dot_dimension_numbers<[1], [0], [0], [1], [0, 0, 1, 1], [], []>} : vector<16x64xf32>, vector<64x256xf32>, vector<16x256xf32> -> vector<16x256xf32>
    %144 = vector.broadcast %9 : vector<16x1xf32> to vector<16x256xf32>
    %145 = arith.addf %143, %144 : vector<16x256xf32>
    %c0_52 = arith.constant 0 : index
    %c0_53 = arith.constant 0 : index
    %c0_54 = arith.constant 0 : index
    %146 = vector.load %arg1[%c0_52, %c0_53, %c0_54] : memref<2x16x256xf32, #tpu.memory_space<vmem>>, vector<1x16x256xf32>
    %147 = vector.shape_cast %146 : vector<1x16x256xf32> to vector<16x256xf32>
    %148 = arith.addf %145, %147 : vector<16x256xf32>
    %c0_55 = arith.constant 0 : index
    %c0_56 = arith.constant 0 : index
    %c0_57 = arith.constant 0 : index
    %149 = vector.load %arg12[%c0_55, %c0_56, %c0_57] : memref<2x16x256xf32, #tpu.memory_space<vmem>>, vector<1x16x256xf32>
    %150 = vector.shape_cast %149 : vector<1x16x256xf32> to vector<16x256xf32>
    %151 = vector.shape_cast %148 : vector<16x256xf32> to vector<1x16x256xf32>
    tpu.vector_store %arg12[%c0_55, %c0_56, %c0_57], %151 {strides = array<i32>} : memref<2x16x256xf32, #tpu.memory_space<vmem>>, vector<1x16x256xf32>,
    %c1 = arith.constant 1 : index
    %c0_58 = arith.constant 0 : index
    %c0_59 = arith.constant 0 : index
    %152 = vector.load %arg1[%c1, %c0_58, %c0_59] : memref<2x16x256xf32, #tpu.memory_space<vmem>>, vector<1x16x256xf32>
    %153 = vector.shape_cast %152 : vector<1x16x256xf32> to vector<16x256xf32>
    %cst_60 = arith.constant dense<0.000000e+00> : vector<64x256xf32>
    %154 = tpu.matmul %0, %153, %cst_60 {dimension_numbers = #tpu.dot_dimension_numbers<[1], [0], [0], [1], [0, 0, 1, 1], [], []>} : vector<64x16xf32>, vector<16x256xf32>, vector<64x256xf32> -> vector<64x256xf32>
    %155 = vector.broadcast %1 : vector<64x1xf32> to vector<64x256xf32>
    %156 = arith.addf %154, %155 : vector<64x256xf32>
    %cst_61 = arith.constant 3.000000e+00 : f32
    %157 = vector.broadcast %cst_61 : f32 to vector<64x256xf32>
    %158 = arith.addf %156, %157 : vector<64x256xf32>
    %cst_62 = arith.constant 0.000000e+00 : f32
    %cst_63 = arith.constant 6.000000e+00 : f32
    %159 = vector.broadcast %cst_62 : f32 to vector<64x256xf32>
    %160 = arith.maximumf %159, %158 : vector<64x256xf32>
    %161 = vector.broadcast %cst_63 : f32 to vector<64x256xf32>
    %162 = arith.minimumf %161, %160 : vector<64x256xf32>
    %163 = arith.mulf %156, %162 : vector<64x256xf32>
    %cst_64 = arith.constant 0.166666672 : f32
    %164 = vector.broadcast %cst_64 : f32 to vector<64x256xf32>
    %165 = arith.mulf %163, %164 : vector<64x256xf32>
    %cst_65 = arith.constant 0.000000e+00 : f32
    %166 = vector.broadcast %cst_65 : f32 to vector<64x1xf32>
    %167 = vector.extract_strided_slice %165 {offsets = [0, 0], sizes = [64, 255], strides = [1, 1]} : vector<64x256xf32> to vector<64x255xf32>
    %168 = tpu.concatenate %166, %167 in 1 : vector<64x1xf32>, vector<64x255xf32> -> vector<64x256xf32>
    %169 = vector.broadcast %30 : vector<1x256xf32> to vector<64x256xf32>
    %170 = arith.mulf %168, %169 : vector<64x256xf32>
    %cst_66 = arith.constant 0.000000e+00 : f32
    %171 = vector.broadcast %cst_66 : f32 to vector<64x16xf32>
    %172 = vector.extract_strided_slice %170 {offsets = [0, 0], sizes = [64, 240], strides = [1, 1]} : vector<64x256xf32> to vector<64x240xf32>
    %173 = tpu.concatenate %171, %172 in 1 : vector<64x16xf32>, vector<64x240xf32> -> vector<64x256xf32>
    %174 = vector.extract_strided_slice %2 {offsets = [0, 0], sizes = [64, 1], strides = [1, 1]} : vector<64x9xf32> to vector<64x1xf32>
    %175 = vector.broadcast %174 : vector<64x1xf32> to vector<64x256xf32>
    %176 = arith.mulf %173, %175 : vector<64x256xf32>
    %177 = vector.extract_strided_slice %2 {offsets = [0, 3], sizes = [64, 1], strides = [1, 1]} : vector<64x9xf32> to vector<64x1xf32>
    %178 = vector.broadcast %177 : vector<64x1xf32> to vector<64x256xf32>
    %179 = arith.mulf %170, %178 : vector<64x256xf32>
    %180 = arith.addf %176, %179 : vector<64x256xf32>
    %cst_67 = arith.constant 0.000000e+00 : f32
    %181 = vector.broadcast %cst_67 : f32 to vector<64x16xf32>
    %182 = vector.extract_strided_slice %170 {offsets = [0, 16], sizes = [64, 240], strides = [1, 1]} : vector<64x256xf32> to vector<64x240xf32>
    %183 = tpu.concatenate %182, %181 in 1 : vector<64x240xf32>, vector<64x16xf32> -> vector<64x256xf32>
    %184 = vector.extract_strided_slice %2 {offsets = [0, 6], sizes = [64, 1], strides = [1, 1]} : vector<64x9xf32> to vector<64x1xf32>
    %185 = vector.broadcast %184 : vector<64x1xf32> to vector<64x256xf32>
    %186 = arith.mulf %183, %185 : vector<64x256xf32>
    %187 = arith.addf %180, %186 : vector<64x256xf32>
    %cst_68 = arith.constant 0.000000e+00 : f32
    %188 = vector.broadcast %cst_68 : f32 to vector<64x16xf32>
    %189 = vector.extract_strided_slice %165 {offsets = [0, 0], sizes = [64, 240], strides = [1, 1]} : vector<64x256xf32> to vector<64x240xf32>
    %190 = tpu.concatenate %188, %189 in 1 : vector<64x16xf32>, vector<64x240xf32> -> vector<64x256xf32>
    %191 = vector.extract_strided_slice %2 {offsets = [0, 1], sizes = [64, 1], strides = [1, 1]} : vector<64x9xf32> to vector<64x1xf32>
    %192 = vector.broadcast %191 : vector<64x1xf32> to vector<64x256xf32>
    %193 = arith.mulf %190, %192 : vector<64x256xf32>
    %194 = arith.addf %187, %193 : vector<64x256xf32>
    %195 = vector.extract_strided_slice %2 {offsets = [0, 4], sizes = [64, 1], strides = [1, 1]} : vector<64x9xf32> to vector<64x1xf32>
    %196 = vector.broadcast %195 : vector<64x1xf32> to vector<64x256xf32>
    %197 = arith.mulf %165, %196 : vector<64x256xf32>
    %198 = arith.addf %194, %197 : vector<64x256xf32>
    %cst_69 = arith.constant 0.000000e+00 : f32
    %199 = vector.broadcast %cst_69 : f32 to vector<64x16xf32>
    %200 = vector.extract_strided_slice %165 {offsets = [0, 16], sizes = [64, 240], strides = [1, 1]} : vector<64x256xf32> to vector<64x240xf32>
    %201 = tpu.concatenate %200, %199 in 1 : vector<64x240xf32>, vector<64x16xf32> -> vector<64x256xf32>
    %202 = vector.extract_strided_slice %2 {offsets = [0, 7], sizes = [64, 1], strides = [1, 1]} : vector<64x9xf32> to vector<64x1xf32>
    %203 = vector.broadcast %202 : vector<64x1xf32> to vector<64x256xf32>
    %204 = arith.mulf %201, %203 : vector<64x256xf32>
    %205 = arith.addf %198, %204 : vector<64x256xf32>
    %cst_70 = arith.constant 0.000000e+00 : f32
    %206 = vector.broadcast %cst_70 : f32 to vector<64x1xf32>
    %207 = vector.extract_strided_slice %165 {offsets = [0, 1], sizes = [64, 255], strides = [1, 1]} : vector<64x256xf32> to vector<64x255xf32>
    %208 = tpu.concatenate %207, %206 in 1 : vector<64x255xf32>, vector<64x1xf32> -> vector<64x256xf32>
    %209 = vector.broadcast %34 : vector<1x256xf32> to vector<64x256xf32>
    %210 = arith.mulf %208, %209 : vector<64x256xf32>
    %cst_71 = arith.constant 0.000000e+00 : f32
    %211 = vector.broadcast %cst_71 : f32 to vector<64x16xf32>
    %212 = vector.extract_strided_slice %210 {offsets = [0, 0], sizes = [64, 240], strides = [1, 1]} : vector<64x256xf32> to vector<64x240xf32>
    %213 = tpu.concatenate %211, %212 in 1 : vector<64x16xf32>, vector<64x240xf32> -> vector<64x256xf32>
    %214 = vector.extract_strided_slice %2 {offsets = [0, 2], sizes = [64, 1], strides = [1, 1]} : vector<64x9xf32> to vector<64x1xf32>
    %215 = vector.broadcast %214 : vector<64x1xf32> to vector<64x256xf32>
    %216 = arith.mulf %213, %215 : vector<64x256xf32>
    %217 = arith.addf %205, %216 : vector<64x256xf32>
    %218 = vector.extract_strided_slice %2 {offsets = [0, 5], sizes = [64, 1], strides = [1, 1]} : vector<64x9xf32> to vector<64x1xf32>
    %219 = vector.broadcast %218 : vector<64x1xf32> to vector<64x256xf32>
    %220 = arith.mulf %210, %219 : vector<64x256xf32>
    %221 = arith.addf %217, %220 : vector<64x256xf32>
    %cst_72 = arith.constant 0.000000e+00 : f32
    %222 = vector.broadcast %cst_72 : f32 to vector<64x16xf32>
    %223 = vector.extract_strided_slice %210 {offsets = [0, 16], sizes = [64, 240], strides = [1, 1]} : vector<64x256xf32> to vector<64x240xf32>
    %224 = tpu.concatenate %223, %222 in 1 : vector<64x240xf32>, vector<64x16xf32> -> vector<64x256xf32>
    %225 = vector.extract_strided_slice %2 {offsets = [0, 8], sizes = [64, 1], strides = [1, 1]} : vector<64x9xf32> to vector<64x1xf32>
    %226 = vector.broadcast %225 : vector<64x1xf32> to vector<64x256xf32>
    %227 = arith.mulf %224, %226 : vector<64x256xf32>
    %228 = arith.addf %221, %227 : vector<64x256xf32>
    %229 = vector.broadcast %3 : vector<64x1xf32> to vector<64x256xf32>
    %230 = arith.addf %228, %229 : vector<64x256xf32>
    %cst_73 = arith.constant 3.000000e+00 : f32
    %231 = vector.broadcast %cst_73 : f32 to vector<64x256xf32>
    %232 = arith.addf %230, %231 : vector<64x256xf32>
    %cst_74 = arith.constant 0.000000e+00 : f32
    %cst_75 = arith.constant 6.000000e+00 : f32
    %233 = vector.broadcast %cst_74 : f32 to vector<64x256xf32>
    %234 = arith.maximumf %233, %232 : vector<64x256xf32>
    %235 = vector.broadcast %cst_75 : f32 to vector<64x256xf32>
    %236 = arith.minimumf %235, %234 : vector<64x256xf32>
    %237 = arith.mulf %230, %236 : vector<64x256xf32>
    %cst_76 = arith.constant 0.166666672 : f32
    %238 = vector.broadcast %cst_76 : f32 to vector<64x256xf32>
    %239 = arith.mulf %237, %238 : vector<64x256xf32>
    %cst_77 = arith.constant dense<0.000000e+00> : vector<64xf32>
    %240 = vector.multi_reduction <add>, %239, %cst_77 [1] : vector<64x256xf32> to vector<64xf32>
    %241 = vector.shape_cast %240 : vector<64xf32> to vector<64x1xf32>
    %cst_78 = arith.constant 3.906250e-03 : f32
    %242 = vector.broadcast %cst_78 : f32 to vector<64x1xf32>
    %243 = arith.mulf %241, %242 : vector<64x1xf32>
    %cst_79 = arith.constant dense<0.000000e+00> : vector<16x1xf32>
    %244 = tpu.matmul %4, %243, %cst_79 {dimension_numbers = #tpu.dot_dimension_numbers<[1], [0], [0], [1], [0, 0, 1, 1], [], []>} : vector<16x64xf32>, vector<64x1xf32>, vector<16x1xf32> -> vector<16x1xf32>
    %245 = arith.addf %244, %5 : vector<16x1xf32>
    %cst_80 = arith.constant 0.000000e+00 : f32
    %246 = vector.broadcast %cst_80 : f32 to vector<16x1xf32>
    %247 = arith.maximumf %245, %246 : vector<16x1xf32>
    %cst_81 = arith.constant dense<0.000000e+00> : vector<64x1xf32>
    %248 = tpu.matmul %6, %247, %cst_81 {dimension_numbers = #tpu.dot_dimension_numbers<[1], [0], [0], [1], [0, 0, 1, 1], [], []>} : vector<64x16xf32>, vector<16x1xf32>, vector<64x1xf32> -> vector<64x1xf32>
    %249 = arith.addf %248, %7 : vector<64x1xf32>
    %cst_82 = arith.constant 3.000000e+00 : f32
    %250 = vector.broadcast %cst_82 : f32 to vector<64x1xf32>
    %251 = arith.addf %249, %250 : vector<64x1xf32>
    %cst_83 = arith.constant 0.000000e+00 : f32
    %cst_84 = arith.constant 6.000000e+00 : f32
    %252 = vector.broadcast %cst_83 : f32 to vector<64x1xf32>
    %253 = arith.maximumf %252, %251 : vector<64x1xf32>
    %254 = vector.broadcast %cst_84 : f32 to vector<64x1xf32>
    %255 = arith.minimumf %254, %253 : vector<64x1xf32>
    %cst_85 = arith.constant 0.166666672 : f32
    %256 = vector.broadcast %cst_85 : f32 to vector<64x1xf32>
    %257 = arith.mulf %255, %256 : vector<64x1xf32>
    %258 = vector.broadcast %257 : vector<64x1xf32> to vector<64x256xf32>
    %259 = arith.mulf %239, %258 : vector<64x256xf32>
    %cst_86 = arith.constant dense<0.000000e+00> : vector<16x256xf32>
    %260 = tpu.matmul %8, %259, %cst_86 {dimension_numbers = #tpu.dot_dimension_numbers<[1], [0], [0], [1], [0, 0, 1, 1], [], []>} : vector<16x64xf32>, vector<64x256xf32>, vector<16x256xf32> -> vector<16x256xf32>
    %261 = vector.broadcast %9 : vector<16x1xf32> to vector<16x256xf32>
    %262 = arith.addf %260, %261 : vector<16x256xf32>
    %c1_87 = arith.constant 1 : index
    %c0_88 = arith.constant 0 : index
    %c0_89 = arith.constant 0 : index
    %263 = vector.load %arg1[%c1_87, %c0_88, %c0_89] : memref<2x16x256xf32, #tpu.memory_space<vmem>>, vector<1x16x256xf32>
    %264 = vector.shape_cast %263 : vector<1x16x256xf32> to vector<16x256xf32>
    %265 = arith.addf %262, %264 : vector<16x256xf32>
    %c1_90 = arith.constant 1 : index
    %c0_91 = arith.constant 0 : index
    %c0_92 = arith.constant 0 : index
    %266 = vector.load %arg12[%c1_90, %c0_91, %c0_92] : memref<2x16x256xf32, #tpu.memory_space<vmem>>, vector<1x16x256xf32>
    %267 = vector.shape_cast %266 : vector<1x16x256xf32> to vector<16x256xf32>
    %268 = vector.shape_cast %265 : vector<16x256xf32> to vector<1x16x256xf32>
    tpu.vector_store %arg12[%c1_90, %c0_91, %c0_92], %268 {strides = array<i32>} : memref<2x16x256xf32, #tpu.memory_space<vmem>>, vector<1x16x256xf32>,
    return
  }
  func.func @transform_0(%arg0: i32) -> (i32, i32, i32) {
    %c0_i32 = arith.constant 0 : i32
    %c0_i32_0 = arith.constant 0 : i32
    %c0_i32_1 = arith.constant 0 : i32
    return %arg0, %c0_i32, %c0_i32_0 : i32, i32, i32
  }
  func.func @transform_1(%arg0: i32) -> (i32, i32) {
    %c0_i32 = arith.constant 0 : i32
    %c0_i32_0 = arith.constant 0 : i32
    %c0_i32_1 = arith.constant 0 : i32
    return %c0_i32, %c0_i32_0 : i32, i32
  }
  func.func @transform_2(%arg0: i32) -> (i32, i32) {
    %c0_i32 = arith.constant 0 : i32
    %c0_i32_0 = arith.constant 0 : i32
    %c0_i32_1 = arith.constant 0 : i32
    return %c0_i32, %c0_i32_0 : i32, i32
  }
  func.func @transform_3(%arg0: i32) -> (i32, i32) {
    %c0_i32 = arith.constant 0 : i32
    %c0_i32_0 = arith.constant 0 : i32
    %c0_i32_1 = arith.constant 0 : i32
    return %c0_i32, %c0_i32_0 : i32, i32
  }
  func.func @transform_4(%arg0: i32) -> (i32, i32) {
    %c0_i32 = arith.constant 0 : i32
    %c0_i32_0 = arith.constant 0 : i32
    %c0_i32_1 = arith.constant 0 : i32
    return %c0_i32, %c0_i32_0 : i32, i32
  }
  func.func @transform_5(%arg0: i32) -> (i32, i32) {
    %c0_i32 = arith.constant 0 : i32
    %c0_i32_0 = arith.constant 0 : i32
    %c0_i32_1 = arith.constant 0 : i32
    return %c0_i32, %c0_i32_0 : i32, i32
  }
  func.func @transform_6(%arg0: i32) -> (i32, i32) {
    %c0_i32 = arith.constant 0 : i32
    %c0_i32_0 = arith.constant 0 : i32
    %c0_i32_1 = arith.constant 0 : i32
    return %c0_i32, %c0_i32_0 : i32, i32
  }
  func.func @transform_7(%arg0: i32) -> (i32, i32) {
    %c0_i32 = arith.constant 0 : i32
    %c0_i32_0 = arith.constant 0 : i32
    %c0_i32_1 = arith.constant 0 : i32
    return %c0_i32, %c0_i32_0 : i32, i32
  }
  func.func @transform_8(%arg0: i32) -> (i32, i32) {
    %c0_i32 = arith.constant 0 : i32
    %c0_i32_0 = arith.constant 0 : i32
    %c0_i32_1 = arith.constant 0 : i32
    return %c0_i32, %c0_i32_0 : i32, i32
  }
  func.func @transform_9(%arg0: i32) -> (i32, i32) {
    %c0_i32 = arith.constant 0 : i32
    %c0_i32_0 = arith.constant 0 : i32
    %c0_i32_1 = arith.constant 0 : i32
    return %c0_i32, %c0_i32_0 : i32, i32
  }
  func.func @transform_10(%arg0: i32) -> (i32, i32) {
    %c0_i32 = arith.constant 0 : i32
    %c0_i32_0 = arith.constant 0 : i32
    %c0_i32_1 = arith.constant 0 : i32
    return %c0_i32, %c0_i32_0 : i32, i32
  }
  func.func @transform_11(%arg0: i32) -> (i32, i32, i32) {
    %c0_i32 = arith.constant 0 : i32
    %c0_i32_0 = arith.constant 0 : i32
    %c0_i32_1 = arith.constant 0 : i32
    return %arg0, %c0_i32, %c0_i32_0 : i32, i32, i32
  }
}

</mosaic_0001>

<bundles_post_ra>
// kernel: inverted_residual_forward.1
= control target key start
LH: loop header
LB: loop body
LE: loop exit
PB: predicated region body
PF: predicated region fallthrough
CT: control target
= control target key end

     0   :  { %s4543_s17 = smov 0   ;;  %s7502_s0 = inlined_call_operand.vmem [shape: f32[4,16,256], index: 0, kind: input, shape index: {}]   ;;  %s7503_s1 = inlined_call_operand.vmem [shape: f32[64,16], index: 1, kind: input, shape index: {}]   ;;  %s7504_s2 = inlined_call_operand.vmem [shape: f32[64,1], index: 2, kind: input, shape index: {}]   ;;  %s7505_s3 = inlined_call_operand.vmem [shape: f32[64,9], index: 3, kind: input, shape index: {}]   ;;  %s7506_s4 = inlined_call_operand.vmem [shape: f32[64,1], index: 4, kind: input, shape index: {}]   ;;  %s7507_s5 = inlined_call_operand.vmem [shape: f32[16,64], index: 5, kind: input, shape index: {}]   ;;  %s7508_s6 = inlined_call_operand.vmem [shape: f32[16,1], index: 6, kind: input, shape index: {}]   ;;  %s7509_s7 = inlined_call_operand.vmem [shape: f32[64,16], index: 7, kind: input, shape index: {}]   ;;  %s7510_s8 = inlined_call_operand.vmem [shape: f32[64,1], index: 8, kind: input, shape index: {}]   ;;  %s7511_s9 = inlined_call_operand.vmem [shape: f32[16,64], index: 9, kind: input, shape index: {}]   ;;  %s7512_s10 = inlined_call_operand.vmem [shape: f32[16,1], index: 10, kind: input, shape index: {}]   ;;  %s7513_s11 = inlined_call_operand.vmem [shape: f32[4,16,256], index: 11, kind: output, shape index: {}]  }
   0x1 LB: > { %s4089_s18 = sadd.s32 4294967295, %s4467_s17   ;;  %p4093_p0 = scmp.ge.s32.totalorder %s4467_s17, 1  ;;  %s4467_s17 = sphi %s4543_s17, %s21_s17  }
   0x2   : > { %p339_p1 = scmp.lt.s32.totalorder %s4467_s17, 3 }
   0x4   : > { %p340_p2 = pnand %p4093_p0, %p339_p1 }
   0x6   : > { %343 = sbr.rel (%p340_p2) target bundleno = 2702 (0xa8e), region = 64 }
   0xd   : > { %v405_v0 = vld [vmem:[%s7504_s2 + $0x10] sm:$0xff]  ;;  %s4094_s21 = sshll.u32 %s4089_s18, 1  ;;  %v7514_v1 = vmov 0   ;;  %v7520_v2 = vmov 0.0   ;;  %v406_v3 = vld [vmem:[%s7504_s2 + $0x18] sm:$0xff]  ;;  %v403_v4 = vld [vmem:[%s7504_s2] sm:$0xff] }
   0xe   : > { %4369 = vset.pattern.permute.xlu1 %v7514_v1  ;;  %p382_p3 = scmp.lt.s32.totalorder %s4094_s21, 3  ;;  %623 = vmatprep.mubr.f32.mxu0 %v7520_v2  ;;  %v408_v5 = vld [vmem:[%s7504_s2 + $0x28] sm:$0xff]  ;;  %v410_v13 = vld [vmem:[%s7504_s2 + $0x38] sm:$0xff]  ;;  %v395_v14 = vld [vmem:[%s7503_s1] sm:$0xff]  ;;  %vm534_vm0 = vcmask 130048   ;;  %v4471_v20 = vmov 3  }
   0xf   : > { %506 = vperm.xlu1 %4369, %v405_v0   ;;  %4368 = vset.pattern.permute.xlu0 %v7514_v1  ;;  %v404_v11 = vld [vmem:[%s7504_s2 + $0x8] sm:$0xff]  ;;  %v407_v15 = vld [vmem:[%s7504_s2 + $0x20] sm:$0xff]  ;;  %v409_v18 = vld [vmem:[%s7504_s2 + $0x30] sm:$0xff]  ;;  %v4472_v23 = vmov 6   ;;  %v4473_v32 = vmov 1   ;;  %v4474_v34 = vmov 4  }
  0x10   : > { %s8344_s21 = smov (!%p382_p3, %s4094_s21), 3  ;;  %496 = vperm.xlu0 %4368, %v403_v4   ;;  %v4597_v16 = vld [vmem:[%s7505_s3 + $0x8] sm:$0xff]  ;;  %v397_v19 = vld [vmem:[%s7503_s1 + $0x10] sm:$0xff]  ;;  %v398_v21 = vld [vmem:[%s7503_s1 + $0x18] sm:$0xff]  ;;  %v7522_v36 = vmov 7   ;;  %v7523_v37 = vmov 2  }
  0x11   : > { %s4154_s24 = sshll.u32 %s8344_s21, 5  ;;  %v396_v17 = vld [vmem:[%s7503_s1 + $0x8] sm:$0xff]  ;;  %v4621_v22 = vld [vmem:[%s7505_s3] sm:$0xff]  ;;  %v4635_v25 = vld [vmem:[%s7505_s3 + $0x10] sm:$0xff]  ;;  %v7518_v38 = vmov 5   ;;  %v7516_v44 = vmov 8  }
  0x12   : > { %s4574_s12 = scalar_lea.vmem %s7502_s0, %s4154_s24  ;;  %v399_v24 = vld [vmem:[%s7503_s1 + $0x20] sm:$0xff]  ;;  %v400_v26 = vld [vmem:[%s7503_s1 + $0x28] sm:$0xff]  ;;  %v4655_v28 = vld [vmem:[%s7505_s3 + $0x18] sm:$0xff]  ;;  %s4479_s26 = smov 16   ;;  %vm800_vm3 = vcmask 7168   ;;  %vm1530_vm5 = vcmask 1039360  }
  0x13   : > { %511 = vperm.xlu1 %4369, %v406_v3   ;;  %v491_v6 = vld [vmem:[%s4574_s12 + $0x8] sm:$0xff]  ;;  %v493_v7 = vld [vmem:[%s4574_s12 + $0x18] sm:$0xff]  ;;  %v490_v8 = vld [vmem:[%s4574_s12] sm:$0xff]  ;;  %s4480_s27 = smov 1   ;;  %s4481_s28 = smov 112   ;;  %vm1081_vm7 = vcmask 916480  }
  0x14   : > { %v4266_v9 = vpack.c.bf16 %v493_v7, %v491_v6  ;;  %v492_v10 = vld [vmem:[%s4574_s12 + $0x10] sm:$0xff]  ;;  %501 = vperm.xlu0 %4368, %v404_v11   ;;  %v4647_v27 = vld [vmem:[%s7505_s3 + $0x20] sm:$0xff]  ;;  %v4660_v29 = vld [vmem:[%s7505_s3 + $0x38] sm:$0xff]  ;;  %s4482_s29 = smov 127   ;;  %vm2083_vm8 = vcmask 523264   ;;  %s7476_s25 = scalar_lea.vmem %s7513_s11, %s4154_s24 }
  0x15   : > { %v4268_v12 = vpack.c.bf16 %v492_v10, %v490_v8  ;;  %v401_v30 = vld [vmem:[%s7503_s1 + $0x30] sm:$0xff]  ;;  %v402_v31 = vld [vmem:[%s7503_s1 + $0x38] sm:$0xff]  ;;  %v4700_v35 = vld [vmem:[%s7505_s3 + $0x28] sm:$0xff] }
  0x16   : > { %4267 = vmatprep.subr.bf16.mxu0 %v4266_v9  ;;  %v4688_v33 = vld [vmem:[%s7505_s3 + $0x30] sm:$0xff] }
  0x17   : > { %521 = vperm.xlu1 %4369, %v408_v5   ;;  %4269 = vmatpush1.bf16.msra.mxu0 %v4268_v12 }
  0x18   : > { %516 = vperm.xlu0 %4368, %v407_v15  }
  0x1a   : > { %4104 = vmatmul.mubr.msk.f32.vlgmr.msra.gmra.mrb[0].mxu0 %vm534_vm0, %v395_v14 }
  0x1b   : > { %531 = vperm.xlu1 %4369, %v410_v13   ;;  %629 = vmatprep.mubr.f32.mxu0 %v7520_v2 }
  0x1c   : > { %526 = vperm.xlu0 %4368, %v409_v18  }
  0x1e   : > { %4105 = vmatmul.mubr.msk.f32.gmra.mrb[2].mxu0 %vm534_vm0, %v396_v17 }
  0x1f   : > { %936 = vperm.xlu1 %4369, %v4597_v16   ;;  %635 = vmatprep.mubr.f32.mxu0 %v7520_v2 }
  0x20   : > { %4370 = vset.pattern.permute.xlu0 %v4471_v20 }
  0x21   : > { %986 = vperm.xlu0 %4370, %v4621_v22  }
  0x22   : > { %4106 = vmatmul.mubr.msk.f32.gmra.mrb[4].mxu0 %vm534_vm0, %v397_v19 }
  0x23   : > { %4371 = vset.pattern.permute.xlu1 %v4471_v20  ;;  %641 = vmatprep.mubr.f32.mxu0 %v7520_v2 }
  0x24   : > { %990 = vperm.xlu1 %4371, %v4597_v16  }
  0x25   : > { %994 = vperm.xlu0 %4370, %v4635_v25  }
  0x26   : > { %4107 = vmatmul.mubr.msk.f32.gmra.mrb[6].mxu0 %vm534_vm0, %v398_v21 }
  0x27   : > { %647 = vmatprep.mubr.f32.mxu0 %v7520_v2 }
  0x28   : > { %4372 = vset.pattern.permute.xlu1 %v4472_v23 }
  0x29   : > { %1115 = vperm.xlu1 %4372, %v4621_v22   ;;  %1002 = vperm.xlu0 %4370, %v4647_v27  }
  0x2a   : > { %4108 = vmatmul.mubr.msk.f32.gmra.mrb[8].mxu0 %vm534_vm0, %v399_v24 }
  0x2b   : > { %653 = vmatprep.mubr.f32.mxu0 %v7520_v2 }
  0x2d   : > { %4373 = vset.pattern.permute.xlu1 %v7514_v1  ;;  %1014 = vperm.xlu0 %4370, %v4660_v29  }
  0x2e   : > { %941 = vperm.xlu1 %4373, %v4635_v25   ;;  %4109 = vmatmul.mubr.msk.f32.gmra.mrb[10].mxu0 %vm534_vm0, %v400_v26 }
  0x2f   : > { %659 = vmatprep.mubr.f32.mxu0 %v7520_v2 }
  0x31   : > { %4387 = vset.pattern.permute.xlu0 %v4472_v23 }
  0x32   : > { %946 = vperm.xlu1 %4373, %v4655_v28   ;;  %4110 = vmatmul.mubr.msk.f32.gmra.mrb[12].mxu0 %vm534_vm0, %v401_v30 }
  0x33   : > { %665 = vmatprep.mubr.f32.mxu0 %v7520_v2  ;;  %1119 = vperm.xlu0 %4387, %v4597_v16  }
  0x36   : > { %4374 = vset.pattern.permute.xlu1 %v4471_v20  ;;  %4111 = vmatmul.mubr.msk.f32.gmra.mrb[14].mxu0 %vm534_vm0, %v402_v31 }
  0x37   : > { %998 = vperm.xlu1 %4374, %v4655_v28   ;;  %2464 = vmatprep.mubr.f32.mxu0 %v7520_v2 }
  0x38   : > { %1123 = vperm.xlu0 %4387, %v4635_v25  }
  0x3b   : > { %4375 = vset.pattern.permute.xlu1 %v4473_v32 }
  0x3c   : > { %1243 = vperm.xlu1 %4375, %v4621_v22   ;;  %1131 = vperm.xlu0 %4387, %v4647_v27  }
  0x40   : > { %4376 = vset.pattern.permute.xlu1 %v4472_v23  ;;  %1139 = vperm.xlu0 %4387, %v4688_v33  }
  0x41   : > { %1127 = vperm.xlu1 %4376, %v4655_v28  }
  0x44   : > { %4391 = vset.pattern.permute.xlu0 %v4473_v32 }
  0x45   : > { %4377 = vset.pattern.permute.xlu1 %v4474_v34  ;;  %1247 = vperm.xlu0 %4391, %v4597_v16  }
  0x46   : > { %1307 = vperm.xlu1 %4377, %v4621_v22  }
  0x49   : > { %1255 = vperm.xlu0 %4391, %v4655_v28  }
  0x4a   : > { %4378 = vset.pattern.permute.xlu1 %v7514_v1 }
  0x4b   : > { %951 = vperm.xlu1 %4378, %v4647_v27  }
  0x4d   : > { %1259 = vperm.xlu0 %4391, %v4647_v27  }
  0x4f   : > { %956 = vperm.xlu1 %4378, %v4700_v35  }
  0x51   : > { %1267 = vperm.xlu0 %4391, %v4688_v33  }
  0x53   : > { %4379 = vset.pattern.permute.xlu1 %v4471_v20 }
  0x54   : > { %1006 = vperm.xlu1 %4379, %v4700_v35  }
  0x55   : > { %4396 = vset.pattern.permute.xlu0 %v4474_v34 }
  0x56   : > { %1311 = vperm.xlu0 %4396, %v4597_v16  }
  0x58   : > { %4380 = vset.pattern.permute.xlu1 %v4473_v32 }
  0x59   : > { %1251 = vperm.xlu1 %4380, %v4635_v25  }
  0x5a   : > { %1319 = vperm.xlu0 %4396, %v4655_v28  }
  0x5d   : > { %4381 = vset.pattern.permute.xlu1 %v7522_v36 }
  0x5e   : > { %1435 = vperm.xlu1 %4381, %v4621_v22   ;;  %1327 = vperm.xlu0 %4396, %v4700_v35  }
  0x62   : > { %1439 = vperm.xlu1 %4381, %v4597_v16   ;;  %1335 = vperm.xlu0 %4396, %v4660_v29  }
  0x66   : > { %4382 = vset.pattern.permute.xlu1 %v4472_v23  ;;  %4401 = vset.pattern.permute.xlu0 %v7522_v36 }
  0x67   : > { %1135 = vperm.xlu1 %4382, %v4700_v35   ;;  %1447 = vperm.xlu0 %4401, %v4655_v28  }
  0x6b   : > { %4383 = vset.pattern.permute.xlu1 %v4474_v34  ;;  %1455 = vperm.xlu0 %4401, %v4700_v35  }
  0x6c   : > { %1315 = vperm.xlu1 %4383, %v4635_v25  }
  0x70   : > { %4384 = vset.pattern.permute.xlu1 %v7523_v37 }
  0x71   : > { %1660 = vperm.xlu1 %4384, %v4621_v22  }
  0x75   : > { %1664 = vperm.xlu1 %4384, %v4597_v16  }
  0x79   : > { %4385 = vset.pattern.permute.xlu1 %v7514_v1 }
  0x7a   : > { %966 = vperm.xlu1 %4385, %v4660_v29  }
  0x7e   : > { %4386 = vset.pattern.permute.xlu1 %v4471_v20 }
  0x7f   : > { %1010 = vperm.xlu1 %4386, %v4688_v33  }
  0x83   : > { %4388 = vset.pattern.permute.xlu1 %v4473_v32 }
  0x84   : > { %1263 = vperm.xlu1 %4388, %v4700_v35  }
  0x88   : > { %4389 = vset.pattern.permute.xlu1 %v7522_v36 }
  0x89   : > { %1443 = vperm.xlu1 %4389, %v4635_v25  }
  0x8d   : > { %4390 = vset.pattern.permute.xlu1 %v7518_v38 }
  0x8e   : > { %1724 = vperm.xlu1 %4390, %v4621_v22   ;;  %v4738_v39 = vpop.permute.xlu1 %506 }
  0x8f   : > { %7800 = vst [vmem:[#allocation2_spill] sm:$0xff] %v4738_v39  ;;  %v4794_v57 = vpop.permute.xlu0 %496 }
  0x90   : > { %7817 = vst [vmem:[#allocation19_spill] sm:$0xff] %v4794_v57 }
  0x92   : > { %1728 = vperm.xlu1 %4390, %v4597_v16   ;;  %v4741_v40 = vpop.permute.xlu1 %511 }
  0x93   : > { %7801 = vst [vmem:[#allocation3_spill] sm:$0xff] %v4741_v40  ;;  %v4800_v0 = vpop.permute.xlu0 %501 }
  0x94   : > { %7819 = vst [vmem:[#allocation21_spill] sm:$0xff] %v4800_v0 }
  0x96   : > { %4392 = vset.pattern.permute.xlu1 %v4472_v23  ;;  %v4744_v41 = vpop.permute.xlu1 %521 }
  0x97   : > { %7802 = vst [vmem:[#allocation4_spill] sm:$0xff] %v4744_v41  ;;  %1143 = vperm.xlu1 %4392, %v4660_v29   ;;  %v4815_v21 = vpop.permute.xlu0 %516 }
  0x98   : > { %7823 = vst [vmem:[#allocation25_spill] sm:$0xff] %v4815_v21 }
  0x9a   : > { %v4747_v42 = vpop.permute.xlu1 %531 }
  0x9b   : > { %7803 = vst [vmem:[#allocation5_spill] sm:$0xff] %v4747_v42  ;;  %4393 = vset.pattern.permute.xlu1 %v4474_v34 }
  0x9c   : > { %1323 = vperm.xlu1 %4393, %v4647_v27  }
  0x9e   : > { %v4751_v43 = vpop.permute.xlu1 %936 }
  0x9f   : > { %7804 = vst [vmem:[#allocation6_spill] sm:$0xff] %v4751_v43 }
  0xa0   : > { %4394 = vset.pattern.permute.xlu1 %v7523_v37 }
  0xa1   : > { %1672 = vperm.xlu1 %4394, %v4655_v28  }
  0xa3   : > { %v4756_v45 = vpop.permute.xlu1 %990 }
  0xa4   : > { %7805 = vst [vmem:[#allocation7_spill] sm:$0xff] %v4756_v45 }
  0xa5   : > { %4395 = vset.pattern.permute.xlu1 %v7516_v44 }
  0xa6   : > { %1852 = vperm.xlu1 %4395, %v4621_v22  }
  0xa8   : > { %v4761_v46 = vpop.permute.xlu1 %1115 }
  0xa9   : > { %7806 = vst [vmem:[#allocation8_spill] sm:$0xff] %v4761_v46 }
  0xaa   : > { %4397 = vset.pattern.permute.xlu1 %v4473_v32 }
  0xab   : > { %1271 = vperm.xlu1 %4397, %v4660_v29  }
  0xad   : > { %v4765_v47 = vpop.permute.xlu1 %941 }
  0xae   : > { %7807 = vst [vmem:[#allocation9_spill] sm:$0xff] %v4765_v47 }
  0xaf   : > { %4398 = vset.pattern.permute.xlu1 %v7522_v36 }
  0xb0   : > { %1451 = vperm.xlu1 %4398, %v4647_v27  }
  0xb1   : > { %v4769_v48 = vpop.permute.xlu1 %946 }
  0xb2   : > { %7808 = vst [vmem:[#allocation10_spill] sm:$0xff] %v4769_v48 }
  0xb4   : > { %4399 = vset.pattern.permute.xlu1 %v7518_v38 }
  0xb5   : > { %1736 = vperm.xlu1 %4399, %v4655_v28  }
  0xb6   : > { %v4773_v49 = vpop.permute.xlu1 %998 }
  0xb7   : > { %7809 = vst [vmem:[#allocation11_spill] sm:$0xff] %v4773_v49 }
  0xb9   : > { %4400 = vset.pattern.permute.xlu1 %v4474_v34 }
  0xba   : > { %1331 = vperm.xlu1 %4400, %v4688_v33  }
  0xbb   : > { %v4777_v50 = vpop.permute.xlu1 %1243 }
  0xbc   : > { %7810 = vst [vmem:[#allocation12_spill] sm:$0xff] %v4777_v50  ;;  %v7874_v50 = vmov 5  }
  0xbe   : > { %4402 = vset.pattern.permute.xlu1 %v7523_v37 }
  0xbf   : > { %1680 = vperm.xlu1 %4402, %v4700_v35  }
  0xc0   : > { %v4782_v51 = vpop.permute.xlu1 %1127 }
  0xc1   : > { %7811 = vst [vmem:[#allocation13_spill] sm:$0xff] %v4782_v51 }
  0xc3   : > { %4403 = vset.pattern.permute.xlu1 %v7516_v44 }
  0xc4   : > { %1860 = vperm.xlu1 %4403, %v4635_v25  }
  0xc5   : > { %v4784_v52 = vpop.permute.xlu1 %1307 }
  0xc6   : > { %7812 = vst [vmem:[#allocation14_spill] sm:$0xff] %v4784_v52 }
  0xc8   : > { %4404 = vset.pattern.permute.xlu1 %v7514_v1 }
  0xca   : > { %v4786_v53 = vpop.permute.xlu1 %951 }
  0xcb   : > { %7813 = vst [vmem:[#allocation15_spill] sm:$0xff] %v4786_v53 }
  0xce   : > { %v4788_v54 = vpop.permute.xlu1 %956 }
  0xcf   : > { %7814 = vst [vmem:[#allocation16_spill] sm:$0xff] %v4788_v54 }
  0xd3   : > { %v4790_v55 = vpop.permute.xlu1 %1006 }
  0xd4   : > { %7815 = vst [vmem:[#allocation17_spill] sm:$0xff] %v4790_v55 }
  0xd8   : > { %v4792_v56 = vpop.permute.xlu1 %1251 }
  0xd9   : > { %7816 = vst [vmem:[#allocation18_spill] sm:$0xff] %v4792_v56 }
  0xdd   : > { %v4796_v58 = vpop.permute.xlu1 %1435 }
  0xde   : > { %7818 = vst [vmem:[#allocation20_spill] sm:$0xff] %v4796_v58  ;;  %v7869_v58 = vmov 0.0  }
  0xe1   : > { %v4802_v5 = vpop.permute.xlu1 %1439 }
  0xe2   : > { %7820 = vst [vmem:[#allocation22_spill] sm:$0xff] %v4802_v5 }
  0xe6   : > { %v4807_v16 = vpop.permute.xlu1 %1135 }
  0xe7   : > { %7822 = vst [vmem:[#allocation24_spill] sm:$0xff] %v4807_v16 }
  0xeb   : > { %v4820_v28 = vpop.permute.xlu1 %1315 }
  0xec   : > { %7824 = vst [vmem:[#allocation26_spill] sm:$0xff] %v4820_v28 }
  0xed   : > { %v625_v59 = vpop.f32.mrb[0].mxu0 }
  0xee   : > { %v626_v60 = vadd.f32 %v625_v59, %v4794_v57  ;;  %v627_v61 = vpop.f32.mrb[1].mxu0 }
  0xef   : > { %v628_v62 = vadd.f32 %v627_v61, %v4794_v57  ;;  %v4833_v61 = vpop.permute.xlu0 %526 }
  0xf0   : > { %v672_v63 = vadd.f32 3.0, %v626_v60  ;;  %7826 = vst [vmem:[#allocation28_spill] sm:$0xff] %v4833_v61 }
  0xf1   : > { %v673_v3 = vadd.f32 3.0, %v628_v62  ;;  %v631_v4 = vpop.f32.mrb[2].mxu0 }
  0xf2   : > { %v688_v6 = vmax.f32 %v672_v63, 0.0  ;;  %v632_v7 = vadd.f32 %v631_v4, %v4800_v0  ;;  %v633_v8 = vpop.f32.mrb[3].mxu0 }
  0xf3   : > { %v689_v10 = vmax.f32 %v673_v3, 0.0  ;;  %v634_v24 = vadd.f32 %v633_v8, %v4800_v0 }
  0xf4   : > { %v704_v9 = vmin.f32 %v688_v6, 6.0  ;;  %v674_v11 = vadd.f32 3.0, %v632_v7  ;;  %v4843_v6 = vpop.permute.xlu1 %1660 }
  0xf5   : > { %v637_v12 = vpop.f32.mrb[4].mxu0  ;;  %v705_v17 = vmin.f32 %v689_v10, 6.0  ;;  %v675_v34 = vadd.f32 3.0, %v634_v24  ;;  %7827 = vst [vmem:[#allocation29_spill] sm:$0xff] %v4843_v6 }
  0xf6   : > { %v720_v13 = vmul.f32 %v704_v9, %v626_v60  ;;  %v639_v14 = vpop.f32.mrb[5].mxu0  ;;  %v690_v18 = vmax.f32 %v674_v11, 0.0  ;;  %v638_v59 = vadd.f32 %v637_v12, %v4738_v39  ;;  %v4853_v9 = vpop.permute.xlu0 %986 }
  0xf7   : > { %v721_v22 = vmul.f32 %v705_v17, %v628_v62  ;;  %v691_v3 = vmax.f32 %v675_v34, 0.0  ;;  %7828 = vst [vmem:[#allocation30_spill] sm:$0xff] %v4853_v9  ;;  %v640_v12 = vadd.f32 %v639_v14, %v4738_v39 }
  0xf8   : > { %v4805_v15 = vmul.f32 0.16666667, %v720_v13  ;;  %v706_v23 = vmin.f32 %v690_v18, 6.0  ;;  %v676_v4 = vadd.f32 3.0, %v638_v59  ;;  %v4858_v17 = vpop.permute.xlu1 %1664 }
  0xf9   : > { %v643_v19 = vpop.f32.mrb[6].mxu0  ;;  %v4828_v31 = vmul.f32 0.16666667, %v721_v22  ;;  %v707_v10 = vmin.f32 %v691_v3, 6.0  ;;  %7829 = vst [vmem:[#allocation31_spill] sm:$0xff] %v4858_v17 }
  0xfa   : > { %7821 = vst [vmem:[#allocation23_spill] sm:$0xff] %v4805_v15  ;;  %v4809_v20 = vpop.f32.mrb[7].mxu0  ;;  %1178 = vrot.lane.b32.xlu1 %v4805_v15, %s4479_s26  ;;  %768 = vrot.lane.b32.xlu0 %v4805_v15, %s4480_s27  ;;  %v722_v32 = vmul.f32 %v706_v23, %v632_v7  ;;  %v692_v11 = vmax.f32 %v676_v4, 0.0  ;;  %v644_v34 = vadd.f32 %v643_v19, %v4741_v40  ;;  %v4867_v3 = vpop.permute.xlu0 %994 }
  0xfb   : > { %7825 = vst [vmem:[#allocation27_spill] sm:$0xff] %v4828_v31  ;;  %v723_v22 = vmul.f32 %v707_v10, %v634_v24  ;;  %7830 = vst [vmem:[#allocation32_spill] sm:$0xff] %v4867_v3 }
  0xfc   : > { %v4841_v63 = vmul.f32 0.16666667, %v722_v32  ;;  %v708_v23 = vmin.f32 %v692_v11, 6.0  ;;  %v677_v32 = vadd.f32 3.0, %v640_v12  ;;  %v678_v44 = vadd.f32 3.0, %v644_v34  ;;  %v4875_v38 = vpop.permute.xlu1 %966 }
  0xfd   : > { %v4818_v26 = vpop.f32.mrb[8].mxu0  ;;  %v4873_v14 = vmul.f32 0.16666667, %v723_v22  ;;  %7831 = vst [vmem:[#allocation33_spill] sm:$0xff] %v4875_v38 }
  0xfe   : > { %v4822_v30 = vpop.f32.mrb[9].mxu0  ;;  %1370 = vrot.lane.b32.xlu1 %v4805_v15, %s4481_s28  ;;  %1498 = vrot.lane.b32.xlu0 %v4805_v15, %s4482_s29  ;;  %v724_v4 = vmul.f32 %v708_v23, %v638_v59  ;;  %v693_v1 = vmax.f32 %v677_v32, 0.0  ;;  %v4881_v19 = vpop.permute.xlu0 %1002  ;;  %v694_v11 = vmax.f32 %v678_v44, 0.0  ;;  %v646_v23 = vadd.f32 %v4809_v20, %v4741_v40 }
  0xff   : > { %7832 = vst [vmem:[#allocation34_spill] sm:$0xff] %v4881_v19  ;;  %v650_v36 = vadd.f32 %v4818_v26, %v4815_v21 }
 0x100   : > { %v4883_v24 = vmul.f32 0.16666667, %v724_v4  ;;  %v709_v10 = vmin.f32 %v693_v1, 6.0  ;;  %v4885_v2 = vpop.permute.xlu1 %1010  ;;  %v710_v22 = vmin.f32 %v694_v11, 6.0  ;;  %v679_v4 = vadd.f32 3.0, %v646_v23 }
 0x101   : > { %v4831_v60 = vpop.f32.mrb[10].mxu0  ;;  %7833 = vst [vmem:[#allocation35_spill] sm:$0xff] %v4885_v2  ;;  %v420_v2 = vld [vmem:[%s7506_s4 + $0x8] sm:$0xff] }
 0x102   : > { %v4835_v62 = vpop.f32.mrb[11].mxu0  ;;  %770 = vrot.lane.b32.xlu1 %v4828_v31, %s4480_s27  ;;  %1180 = vrot.lane.b32.xlu0 %v4828_v31, %s4479_s26  ;;  %v725_v59 = vmul.f32 %v709_v10, %v640_v12  ;;  %v4893_v32 = vpop.permute.xlu0 %1014  ;;  %v726_v44 = vmul.f32 %v710_v22, %v644_v34  ;;  %v695_v11 = vmax.f32 %v679_v4, 0.0  ;;  %v652_v22 = vadd.f32 %v4822_v30, %v4815_v21 }
 0x103   : > { %7834 = vst [vmem:[#allocation36_spill] sm:$0xff] %v4893_v32  ;;  %v656_v0 = vadd.f32 %v4831_v60, %v4744_v41  ;;  %v658_v16 = vadd.f32 %v4835_v62, %v4744_v41 }
 0x104   : > { %v4899_v1 = vmul.f32 0.16666667, %v725_v59  ;;  %v4903_v12 = vpop.permute.xlu1 %1263  ;;  %v4911_v10 = vmul.f32 0.16666667, %v726_v44  ;;  %v680_v59 = vadd.f32 3.0, %v650_v36  ;;  %v711_v26 = vmin.f32 %v695_v11, 6.0 }
 0x105   : > { %v4845_v7 = vpop.f32.mrb[12].mxu0  ;;  %7835 = vst [vmem:[#allocation37_spill] sm:$0xff] %v4903_v12  ;;  %v681_v39 = vadd.f32 3.0, %v652_v22 }
 0x106   : > { %v4847_v8 = vpop.f32.mrb[13].mxu0  ;;  %1500 = vrot.lane.b32.xlu1 %v4828_v31, %s4482_s29  ;;  %772 = vrot.lane.b32.xlu0 %v4841_v63, %s4480_s27  ;;  %v4909_v20 = vpop.permute.xlu0 %1119  ;;  %7837 = vst [vmem:[#allocation39_spill] sm:$0xff] %v4911_v10  ;;  %v696_v34 = vmax.f32 %v680_v59, 0.0  ;;  %v727_v44 = vmul.f32 %v711_v26, %v646_v23  ;;  %v682_v23 = vadd.f32 3.0, %v656_v0 }
 0x107   : > { %7836 = vst [vmem:[#allocation38_spill] sm:$0xff] %v4909_v20  ;;  %v697_v21 = vmax.f32 %v681_v39, 0.0 }
 0x108   : > { %v4913_v37 = vpop.permute.xlu1 %1443  ;;  %v712_v4 = vmin.f32 %v696_v34, 6.0  ;;  %v4937_v11 = vmul.f32 0.16666667, %v727_v44  ;;  %v698_v38 = vmax.f32 %v682_v23, 0.0 }
 0x109   : > { %v4856_v13 = vpop.f32.mrb[14].mxu0  ;;  %7838 = vst [vmem:[#allocation40_spill] sm:$0xff] %v4913_v37  ;;  %v713_v34 = vmin.f32 %v697_v21, 6.0 }
 0x10a   : > { %v4860_v18 = vpop.f32.mrb[15].mxu0  ;;  %1372 = vrot.lane.b32.xlu1 %v4828_v31, %s4481_s28  ;;  %1502 = vrot.lane.b32.xlu0 %v4841_v63, %s4482_s29  ;;  %v4921_v40 = vpop.permute.xlu0 %1123  ;;  %7842 = vst [vmem:[#allocation44_spill] sm:$0xff] %v4937_v11  ;;  %v728_v59 = vmul.f32 %v712_v4, %v650_v36  ;;  %v714_v39 = vmin.f32 %v698_v38, 6.0  ;;  %v683_v4 = vadd.f32 3.0, %v658_v16 }
 0x10b   : > { %7839 = vst [vmem:[#allocation41_spill] sm:$0xff] %v4921_v40  ;;  %v729_v36 = vmul.f32 %v713_v34, %v652_v22 }
 0x10c   : > { %v4945_v60 = vmul.f32 0.16666667, %v728_v59  ;;  %v662_v59 = vadd.f32 %v4845_v7, %v4833_v61  ;;  %v730_v23 = vmul.f32 %v714_v39, %v656_v0  ;;  %v699_v41 = vmax.f32 %v683_v4, 0.0 }
 0x10d   : > { %v4929_v57 = vpop.permute.xlu1 %1724  ;;  %v4965_v62 = vmul.f32 0.16666667, %v729_v36 }
 0x10e   : > { %1182 = vrot.lane.b32.xlu1 %v4841_v63, %s4479_s26  ;;  %1374 = vrot.lane.b32.xlu0 %v4841_v63, %s4481_s28  ;;  %7840 = vst [vmem:[#allocation42_spill] sm:$0xff] %v4929_v57  ;;  %v4935_v30 = vpop.permute.xlu0 %1131  ;;  %v684_v22 = vadd.f32 3.0, %v662_v59  ;;  %v4973_v7 = vmul.f32 0.16666667, %v730_v23  ;;  %v715_v34 = vmin.f32 %v699_v41, 6.0 }
 0x10f   : > { %7841 = vst [vmem:[#allocation43_spill] sm:$0xff] %v4935_v30 }
 0x110   : > { %v731_v39 = vmul.f32 %v715_v34, %v658_v16 }
 0x111   : > { %v4939_v26 = vpop.permute.xlu1 %1728 }
 0x112   : > { %774 = vrot.lane.b32.xlu1 %v4873_v14, %s4480_s27  ;;  %1184 = vrot.lane.b32.xlu0 %v4873_v14, %s4479_s26  ;;  %7843 = vst [vmem:[#allocation45_spill] sm:$0xff] %v4939_v26  ;;  %v4949_v44 = vpop.permute.xlu0 %1139 }
 0x113   : > { %7844 = vst [vmem:[#allocation46_spill] sm:$0xff] %v4949_v44  ;;  %v700_v44 = vmax.f32 %v684_v22, 0.0  ;;  %v664_v22 = vadd.f32 %v4847_v8, %v4833_v61 }
 0x115   : > { %v716_v4 = vmin.f32 %v700_v44, 6.0  ;;  %v685_v44 = vadd.f32 3.0, %v664_v22 }
 0x116   : > { %1504 = vrot.lane.b32.xlu1 %v4873_v14, %s4482_s29  ;;  %776 = vrot.lane.b32.xlu0 %v4883_v24, %s4480_s27  ;;  %v4957_v54 = vpop.permute.xlu1 %1143  ;;  %v4963_v21 = vpop.permute.xlu0 %1247 }
 0x117   : > { %7845 = vst [vmem:[#allocation47_spill] sm:$0xff] %v4957_v54  ;;  %7846 = vst [vmem:[#allocation48_spill] sm:$0xff] %v4963_v21  ;;  %v668_v54 = vadd.f32 %v4856_v13, %v4747_v42  ;;  %v4991_v13 = vmul.f32 0.16666667, %v731_v39  ;;  %v732_v23 = vmul.f32 %v716_v4, %v662_v59  ;;  %v670_v59 = vadd.f32 %v4860_v18, %v4747_v42 }
 0x119   : > { %v686_v6 = vadd.f32 3.0, %v668_v54  ;;  %v5001_v16 = vmul.f32 0.16666667, %v732_v23  ;;  %v687_v61 = vadd.f32 3.0, %v670_v59 }
 0x11a   : > { %1376 = vrot.lane.b32.xlu1 %v4873_v14, %s4481_s28  ;;  %1506 = vrot.lane.b32.xlu0 %v4883_v24, %s4482_s29  ;;  %v4977_v36 = vpop.permute.xlu0 %1255 }
 0x11b   : > { %v4967_v38 = vpop.permute.xlu1 %1323  ;;  %7848 = vst [vmem:[#allocation50_spill] sm:$0xff] %v4977_v36 }
 0x11c   : > { %7847 = vst [vmem:[#allocation49_spill] sm:$0xff] %v4967_v38 }
 0x11e   : > { %1186 = vrot.lane.b32.xlu1 %v4883_v24, %s4479_s26  ;;  %1188 = vrot.lane.b32.xlu0 %v4899_v1, %s4479_s26  ;;  %v4989_v41 = vpop.permute.xlu0 %1259 }
 0x11f   : > { %7850 = vst [vmem:[#allocation52_spill] sm:$0xff] %v4989_v41 }
 0x120   : > { %v4979_v0 = vpop.permute.xlu1 %1672 }
 0x121   : > { %7849 = vst [vmem:[#allocation51_spill] sm:$0xff] %v4979_v0  ;;  %v702_v0 = vmax.f32 %v686_v6, 0.0  ;;  %v701_v6 = vmax.f32 %v685_v44, 0.0  ;;  %v703_v44 = vmax.f32 %v687_v61, 0.0 }
 0x122   : > { %1378 = vrot.lane.b32.xlu1 %v4883_v24, %s4481_s28  ;;  %780 = vrot.lane.b32.xlu0 %v4911_v10, %s4480_s27  ;;  %v5003_v32 = vpop.permute.xlu0 %1267 }
 0x123   : > { %v718_v34 = vmin.f32 %v702_v0, 6.0  ;;  %7852 = vst [vmem:[#allocation54_spill] sm:$0xff] %v5003_v32  ;;  %v717_v4 = vmin.f32 %v701_v6, 6.0  ;;  %v7861_v32 = vmov 2  }
 0x125   : > { %v4995_v46 = vpop.permute.xlu1 %1852  ;;  %v734_v8 = vmul.f32 %v718_v34, %v668_v54  ;;  %v733_v18 = vmul.f32 %v717_v4, %v664_v22 }
 0x126   : > { %778 = vrot.lane.b32.xlu1 %v4899_v1, %s4480_s27  ;;  %1510 = vrot.lane.b32.xlu0 %v4911_v10, %s4482_s29  ;;  %7851 = vst [vmem:[#allocation53_spill] sm:$0xff] %v4995_v46  ;;  %v5017_v0 = vpop.permute.xlu0 %1311 }
 0x127   : > { %7854 = vst [vmem:[#allocation56_spill] sm:$0xff] %v5017_v0  ;;  %v5019_v23 = vmul.f32 0.16666667, %v734_v8  ;;  %v5035_v6 = vmul.f32 0.16666667, %v733_v18  ;;  %v719_v8 = vmin.f32 %v703_v44, 6.0 }
 0x129   : > { %v735_v22 = vmul.f32 %v719_v8, %v670_v59  ;;  %v451_v59 = vlaneseq }
 0x12a   : > { %1508 = vrot.lane.b32.xlu1 %v4899_v1, %s4482_s29  ;;  %1382 = vrot.lane.b32.xlu0 %v4911_v10, %s4481_s28  ;;  %v5005_v39 = vpop.permute.xlu1 %1271  ;;  %v5027_v54 = vpop.permute.xlu0 %1319 }
 0x12b   : > { %7853 = vst [vmem:[#allocation55_spill] sm:$0xff] %v5005_v39  ;;  %7856 = vst [vmem:[#allocation58_spill] sm:$0xff] %v5027_v54  ;;  %v5050_v18 = vmul.f32 0.16666667, %v735_v22  ;;  %v419_v22 = vld [vmem:[%s7506_s4] sm:$0xff] }
 0x12e   : > { %1380 = vrot.lane.b32.xlu1 %v4899_v1, %s4481_s28  ;;  %1192 = vrot.lane.b32.xlu0 %v4937_v11, %s4479_s26  ;;  %v5037_v42 = vpop.permute.xlu0 %1327 }
 0x12f   : > { %v5021_v39 = vpop.permute.xlu1 %1451  ;;  %7858 = vst [vmem:[#allocation60_spill] sm:$0xff] %v5037_v42 }
 0x130   : > { %7855 = vst [vmem:[#allocation57_spill] sm:$0xff] %v5021_v39 }
 0x132   : > { %1190 = vrot.lane.b32.xlu1 %v4911_v10, %s4479_s26  ;;  %784 = vrot.lane.b32.xlu0 %v4945_v60, %s4480_s27  ;;  %v5042_v61 = vpop.permute.xlu0 %1335 }
 0x133   : > { %7859 = vst [vmem:[#allocation61_spill] sm:$0xff] %v5042_v61 }
 0x134   : > { %v5029_v34 = vpop.permute.xlu1 %1736 }
 0x135   : > { %7857 = vst [vmem:[#allocation59_spill] sm:$0xff] %v5029_v34 }
 0x136   : > { %782 = vrot.lane.b32.xlu1 %v4937_v11, %s4480_s27  ;;  %1514 = vrot.lane.b32.xlu0 %v4945_v60, %s4482_s29  ;;  %v5054_v46 = vpop.permute.xlu0 %1447 }
 0x137   : > { %7863 = vst [vmem:[#allocation64_spill] sm:$0xff] %v5054_v46 }
 0x139   : > { %v5044_v4 = vpop.permute.xlu1 %1331 }
 0x13a   : > { %1512 = vrot.lane.b32.xlu1 %v4937_v11, %s4482_s29  ;;  %1196 = vrot.lane.b32.xlu0 %v4965_v62, %s4479_s26  ;;  %7860 = vst [vmem:[#allocation62_spill] sm:$0xff] %v5044_v4  ;;  %v5063_v12 = vpop.permute.xlu0 %1455 }
 0x13b   : > { %7865 = vst [vmem:[#allocation66_spill] sm:$0xff] %v5063_v12 }
 0x13e   : > { %1384 = vrot.lane.b32.xlu1 %v4937_v11, %s4481_s28  ;;  %788 = vrot.lane.b32.xlu0 %v4973_v7, %s4480_s27  ;;  %v5052_v44 = vpop.permute.xlu1 %1680 }
 0x13f   : > { %7862 = vst [vmem:[#allocation63_spill] sm:$0xff] %v5052_v44 }
 0x142   : > { %1194 = vrot.lane.b32.xlu1 %v4945_v60, %s4479_s26  ;;  %1518 = vrot.lane.b32.xlu0 %v4973_v7, %s4482_s29 }
 0x143   : > { %v5061_v8 = vpop.permute.xlu1 %1860 }
 0x144   : > { %7864 = vst [vmem:[#allocation65_spill] sm:$0xff] %v5061_v8 }
 0x146   : > { %786 = vrot.lane.b32.xlu1 %v4965_v62, %s4480_s27  ;;  %1200 = vrot.lane.b32.xlu0 %v4991_v13, %s4479_s26 }
 0x14a   : > { %1516 = vrot.lane.b32.xlu1 %v4965_v62, %s4482_s29  ;;  %792 = vrot.lane.b32.xlu0 %v5001_v16, %s4480_s27 }
 0x14e   : > { %1198 = vrot.lane.b32.xlu1 %v4973_v7, %s4479_s26  ;;  %1522 = vrot.lane.b32.xlu0 %v5001_v16, %s4482_s29 }
 0x152   : > { %790 = vrot.lane.b32.xlu1 %v4991_v13, %s4480_s27  ;;  %796 = vrot.lane.b32.xlu0 %v5019_v23, %s4480_s27 }
 0x156   : > { %1520 = vrot.lane.b32.xlu1 %v4991_v13, %s4482_s29  ;;  %1526 = vrot.lane.b32.xlu0 %v5019_v23, %s4482_s29 }
 0x15a   : > { %794 = vrot.lane.b32.xlu1 %v5035_v6, %s4480_s27  ;;  %1459 = vperm.xlu0 %4401, %v4688_v33  }
 0x15e   : > { %1524 = vrot.lane.b32.xlu1 %v5035_v6, %s4482_s29  ;;  %4405 = vset.pattern.permute.xlu0 %v7861_v32 }
 0x15f   : > { %1668 = vperm.xlu0 %4405, %v4635_v25   ;;  %v452_v25 = vand.u32 127, %v451_v59  ;;  %v7868_v59 = vmov 7  }
 0x161   : > { %v453_v44 = vadd.s32 128, %v452_v25  ;;  %v458_v37 = vand.u32 15, %v452_v25 }
 0x162   : > { %798 = vrot.lane.b32.xlu1 %v5050_v18, %s4480_s27 }
 0x163   : > { %1676 = vperm.xlu0 %4405, %v4647_v27   ;;  %v465_v34 = vand.u32 15, %v453_v44  ;;  %vm478_vm2 = vcmp.ne.s32.totalorder %v458_v37, 0  ;;  %vm484_vm4 = vcmp.ne.s32.totalorder %v458_v37, 15 }
 0x164   : > { %v5087_v25 = vsel %vm478_vm2, 1.0, %v7869_v58 }
 0x165   : > { %vm479_vm1 = vcmp.ne.s32.totalorder %v465_v34, 0  ;;  %7873 = vst [vmem:[#allocation72_spill] sm:$0xff] %v5087_v25  ;;  %vm485_vm6 = vcmp.ne.s32.totalorder %v465_v34, 15 }
 0x166   : > { %1528 = vrot.lane.b32.xlu1 %v5050_v18, %s4482_s29 }
 0x16a   : > { %1917 = vperm.xlu1 %4404, %v419_v22   ;;  %v5078_v22 = vsel %vm479_vm1, 1.0, %v7869_v58 }
 0x16b   : > { %7870 = vst [vmem:[#allocation69_spill] sm:$0xff] %v5078_v22 }
 0x16c   : > { %v5071_v55 = vpop.permute.xlu1 %1178  ;;  %v769_v46 = vpop.permute.xlu0 %768 }
 0x16d   : > { %7866 = vst [vmem:[#allocation67_spill] sm:$0xff] %v5071_v55  ;;  %v5130_v55 = vsel %vm485_vm6, 1.0, %v7869_v58 }
 0x16e   : > { %1922 = vperm.xlu1 %4404, %v420_v2   ;;  %7879 = vst [vmem:[#allocation77_spill] sm:$0xff] %v5130_v55 }
 0x170   : > { %v5073_v8 = vpop.permute.xlu1 %1370  ;;  %v1499_v12 = vpop.permute.xlu0 %1498 }
 0x171   : > { %7867 = vst [vmem:[#allocation68_spill] sm:$0xff] %v5073_v8 }
 0x172   : > { %4406 = vset.pattern.permute.xlu1 %v7868_v59  ;;  %v825_v59 = vsel %vm800_vm3, 0.0, %v769_v46 }
 0x173   : > { %1463 = vperm.xlu1 %4406, %v4660_v29  }
 0x174   : > { %v771_v57 = vpop.permute.xlu1 %770  ;;  %v5080_v9 = vpop.permute.xlu0 %1180 }
 0x175   : > { %7871 = vst [vmem:[#allocation70_spill] sm:$0xff] %v5080_v9  ;;  %v801_v44 = vsel %vm800_vm3, %v769_v46, %v771_v57  ;;  %v5096_v57 = vmul.f32 %v5087_v25, %v825_v59  ;;  %v5115_v59 = vsel %vm484_vm4, 1.0, %v7869_v58 }
 0x176   : > { %v5084_v2 = vmul.f32 %v5078_v22, %v801_v44  ;;  %7877 = vst [vmem:[#allocation75_spill] sm:$0xff] %v5115_v59 }
 0x177   : > { %4407 = vset.pattern.permute.xlu1 %v7874_v50  ;;  %7875 = vst [vmem:[#allocation73_spill] sm:$0xff] %v5096_v57 }
 0x178   : > { %7872 = vst [vmem:[#allocation71_spill] sm:$0xff] %v5084_v2  ;;  %1740 = vperm.xlu1 %4407, %v4647_v27   ;;  %v1501_v29 = vpop.permute.xlu1 %1500  ;;  %1051 = vrot.lane.b32.xlu0 %v5084_v2, %s4481_s28  ;;  %v773_v8 = vpop.permute.xlu0 %772 }
 0x179   : > { %v826_v4 = vsel %vm800_vm3, 0.0, %v773_v8 }
 0x17a   : > { %v5099_v44 = vmul.f32 %v5087_v25, %v826_v4 }
 0x17c   : > { %v5101_v61 = vpop.permute.xlu1 %1372  ;;  %865 = vrot.lane.b32.xlu1 %v5096_v57, %s4479_s26  ;;  %869 = vrot.lane.b32.xlu0 %v5099_v44, %s4479_s26  ;;  %v1503_v27 = vpop.permute.xlu0 %1502 }
 0x17d   : > { %7876 = vst [vmem:[#allocation74_spill] sm:$0xff] %v5101_v61  ;;  %4409 = vset.pattern.permute.xlu1 %v7861_v32  ;;  %v1531_v61 = vsel %vm1530_vm5, %v1499_v12, %v1501_v29  ;;  %v1555_v12 = vsel %vm1530_vm5, %v1501_v29, 0.0 }
 0x17e   : > { %v5124_v9 = vmul.f32 %v5115_v59, %v1531_v61  ;;  %v5139_v61 = vmul.f32 %v5130_v55, %v1555_v12 }
 0x180   : > { %v5108_v46 = vpop.permute.xlu1 %1182  ;;  %1049 = vrot.lane.b32.xlu1 %v5096_v57, %s4481_s28  ;;  %v5112_v4 = vpop.permute.xlu0 %1374  ;;  %7878 = vst [vmem:[#allocation76_spill] sm:$0xff] %v5124_v9  ;;  %7880 = vst [vmem:[#allocation78_spill] sm:$0xff] %v5139_v61 }
 0x184   : > { %v775_v39 = vpop.permute.xlu1 %774  ;;  %867 = vrot.lane.b32.xlu1 %v5084_v2, %s4479_s26  ;;  %v5120_v32 = vpop.permute.xlu0 %1184 }
 0x185   : > { %v802_v37 = vsel %vm800_vm3, %v773_v8, %v775_v39 }
 0x186   : > { %v5127_v57 = vmul.f32 %v5078_v22, %v802_v37 }
 0x188   : > { %v1505_v34 = vpop.permute.xlu1 %1504  ;;  %1595 = vrot.lane.b32.xlu1 %v5124_v9, %s4479_s26  ;;  %1055 = vrot.lane.b32.xlu0 %v5127_v57, %s4481_s28  ;;  %v777_v2 = vpop.permute.xlu0 %776 }
 0x189   : > { %v1532_v39 = vsel %vm1530_vm5, %v1503_v27, %v1505_v34  ;;  %v827_v58 = vsel %vm800_vm3, 0.0, %v777_v2  ;;  %v1556_v52 = vsel %vm1530_vm5, %v1505_v34, 0.0 }
 0x18a   : > { %v5142_v8 = vmul.f32 %v5115_v59, %v1532_v39  ;;  %v5160_v12 = vmul.f32 %v5087_v25, %v827_v58 }
 0x18c   : > { %v5144_v37 = vpop.permute.xlu1 %1376  ;;  %1597 = vrot.lane.b32.xlu1 %v5139_v61, %s4479_s26  ;;  %1599 = vrot.lane.b32.xlu0 %v5142_v8, %s4479_s26  ;;  %v1507_v29 = vpop.permute.xlu0 %1506 }
 0x190   : > { %v5151_v38 = vpop.permute.xlu1 %1186  ;;  %1787 = vrot.lane.b32.xlu1 %v5124_v9, %s4481_s28  ;;  %1791 = vrot.lane.b32.xlu0 %v5142_v8, %s4481_s28  ;;  %v5157_v27 = vpop.permute.xlu0 %1188 }
 0x194   : > { %v5162_v39 = vpop.permute.xlu1 %1378  ;;  %1789 = vrot.lane.b32.xlu1 %v5139_v61, %s4481_s28  ;;  %873 = vrot.lane.b32.xlu0 %v5160_v12, %s4479_s26  ;;  %v781_v42 = vpop.permute.xlu0 %780  ;;  %v5177_v61 = vmul.f32 %v5130_v55, %v1556_v52 }
 0x195   : > { %7881 = vst [vmem:[#allocation79_spill] sm:$0xff] %v5162_v39  ;;  %v828_v30 = vsel %vm800_vm3, 0.0, %v781_v42 }
 0x196   : > { %7883 = vst [vmem:[#allocation81_spill] sm:$0xff] %v5177_v61 }
 0x198   : > { %v779_v31 = vpop.permute.xlu1 %778  ;;  %1053 = vrot.lane.b32.xlu1 %v5099_v44, %s4481_s28  ;;  %v1511_v9 = vpop.permute.xlu0 %1510 }
 0x199   : > { %v803_v52 = vsel %vm800_vm3, %v777_v2, %v779_v31 }
 0x19c   : > { %v1509_v15 = vpop.permute.xlu1 %1508  ;;  %871 = vrot.lane.b32.xlu1 %v5127_v57, %s4479_s26  ;;  %v5173_v58 = vpop.permute.xlu0 %1382 }
 0x19d   : > { %7882 = vst [vmem:[#allocation80_spill] sm:$0xff] %v5173_v58  ;;  %v1557_v39 = vsel %vm1530_vm5, %v1509_v15, 0.0  ;;  %v5192_v58 = vmul.f32 %v5087_v25, %v828_v30  ;;  %v1533_v30 = vsel %vm1530_vm5, %v1507_v29, %v1509_v15 }
 0x19e   : > { %v5180_v41 = vmul.f32 %v5130_v55, %v1557_v39  ;;  %v5217_v10 = vmul.f32 %v5115_v59, %v1533_v30 }
 0x19f   : > { %7887 = vst [vmem:[#allocation85_spill] sm:$0xff] %v5192_v58 }
 0x1a0   : > { %7884 = vst [vmem:[#allocation82_spill] sm:$0xff] %v5180_v41  ;;  %v5183_v19 = vpop.permute.xlu1 %1380  ;;  %1601 = vrot.lane.b32.xlu1 %v5177_v61, %s4479_s26  ;;  %1605 = vrot.lane.b32.xlu0 %v5180_v41, %s4479_s26  ;;  %v5189_v34 = vpop.permute.xlu0 %1192  ;;  %7890 = vst [vmem:[#allocation88_spill] sm:$0xff] %v5217_v10 }
 0x1a1   : > { %7885 = vst [vmem:[#allocation83_spill] sm:$0xff] %v5183_v19  ;;  %7886 = vst [vmem:[#allocation84_spill] sm:$0xff] %v5189_v34  ;;  %v5202_v19 = vmul.f32 %v5078_v22, %v803_v52 }
 0x1a4   : > { %v5195_v53 = vpop.permute.xlu1 %1190  ;;  %1057 = vrot.lane.b32.xlu1 %v5160_v12, %s4481_s28  ;;  %877 = vrot.lane.b32.xlu0 %v5192_v58, %s4479_s26  ;;  %v785_v39 = vpop.permute.xlu0 %784 }
 0x1a5   : > { %7888 = vst [vmem:[#allocation86_spill] sm:$0xff] %v5195_v53  ;;  %v829_v51 = vsel %vm800_vm3, 0.0, %v785_v39 }
 0x1a6   : > { %v5231_v29 = vmul.f32 %v5087_v25, %v829_v51 }
 0x1a8   : > { %v783_v11 = vpop.permute.xlu1 %782  ;;  %875 = vrot.lane.b32.xlu1 %v5202_v19, %s4479_s26  ;;  %1061 = vrot.lane.b32.xlu0 %v5192_v58, %s4481_s28  ;;  %v5208_v31 = vpop.permute.xlu0 %1514  ;;  %7893 = vst [vmem:[#allocation91_spill] sm:$0xff] %v5231_v29 }
 0x1a9   : > { %v804_v34 = vsel %vm800_vm3, %v781_v42, %v783_v11 }
 0x1aa   : > { %v5234_v30 = vmul.f32 %v5078_v22, %v804_v34 }
 0x1ac   : > { %v1513_v2 = vpop.permute.xlu1 %1512  ;;  %1059 = vrot.lane.b32.xlu1 %v5202_v19, %s4481_s28  ;;  %v5213_v54 = vpop.permute.xlu0 %1196  ;;  %7894 = vst [vmem:[#allocation92_spill] sm:$0xff] %v5234_v30 }
 0x1ad   : > { %7889 = vst [vmem:[#allocation87_spill] sm:$0xff] %v5213_v54  ;;  %v1558_v52 = vsel %vm1530_vm5, %v1513_v2, 0.0  ;;  %v1534_v51 = vsel %vm1530_vm5, %v1511_v9, %v1513_v2 }
 0x1ae   : > { %v5220_v36 = vmul.f32 %v5130_v55, %v1558_v52 }
 0x1b0   : > { %7891 = vst [vmem:[#allocation89_spill] sm:$0xff] %v5220_v36  ;;  %v5224_v49 = vpop.permute.xlu1 %1384  ;;  %1603 = vrot.lane.b32.xlu1 %v5217_v10, %s4479_s26  ;;  %1609 = vrot.lane.b32.xlu0 %v5220_v36, %s4479_s26  ;;  %v789_v15 = vpop.permute.xlu0 %788 }
 0x1b1   : > { %7892 = vst [vmem:[#allocation90_spill] sm:$0xff] %v5224_v49  ;;  %v830_v52 = vsel %vm800_vm3, 0.0, %v789_v15 }
 0x1b2   : > { %v5246_v11 = vmul.f32 %v5087_v25, %v830_v52 }
 0x1b4   : > { %v5237_v54 = vpop.permute.xlu1 %1194  ;;  %879 = vrot.lane.b32.xlu1 %v5234_v30, %s4479_s26  ;;  %881 = vrot.lane.b32.xlu0 %v5231_v29, %s4479_s26  ;;  %v5243_v42 = vpop.permute.xlu0 %1518  ;;  %7896 = vst [vmem:[#allocation94_spill] sm:$0xff] %v5246_v11 }
 0x1b5   : > { %7895 = vst [vmem:[#allocation93_spill] sm:$0xff] %v5237_v54  ;;  %v5256_v54 = vmul.f32 %v5115_v59, %v1534_v51 }
 0x1b7   : > { %7898 = vst [vmem:[#allocation96_spill] sm:$0xff] %v5256_v54 }
 0x1b8   : > { %v787_v49 = vpop.permute.xlu1 %786  ;;  %1063 = vrot.lane.b32.xlu1 %v5234_v30, %s4481_s28  ;;  %885 = vrot.lane.b32.xlu0 %v5246_v11, %s4479_s26  ;;  %v5253_v34 = vpop.permute.xlu0 %1200 }
 0x1b9   : > { %7897 = vst [vmem:[#allocation95_spill] sm:$0xff] %v5253_v34  ;;  %v805_v30 = vsel %vm800_vm3, %v785_v39, %v787_v49 }
 0x1ba   : > { %v5276_v51 = vmul.f32 %v5078_v22, %v805_v30 }
 0x1bc   : > { %v5258_v58 = vpop.permute.xlu1 %1516  ;;  %1607 = vrot.lane.b32.xlu1 %v5256_v54, %s4479_s26  ;;  %1069 = vrot.lane.b32.xlu0 %v5246_v11, %s4481_s28  ;;  %v793_v9 = vpop.permute.xlu0 %792  ;;  %7901 = vst [vmem:[#allocation99_spill] sm:$0xff] %v5276_v51 }
 0x1bd   : > { %v831_v2 = vsel %vm800_vm3, 0.0, %v793_v9 }
 0x1be   : > { %v5266_v52 = vmul.f32 %v5087_v25, %v831_v2 }
 0x1c0   : > { %7899 = vst [vmem:[#allocation97_spill] sm:$0xff] %v5266_v52  ;;  %v5269_v34 = vpop.permute.xlu1 %1198  ;;  %1065 = vrot.lane.b32.xlu1 %v5231_v29, %s4481_s28  ;;  %1073 = vrot.lane.b32.xlu0 %v5266_v52, %s4481_s28  ;;  %v5280_v53 = vpop.permute.xlu0 %1522 }
 0x1c1   : > { %7900 = vst [vmem:[#allocation98_spill] sm:$0xff] %v5269_v34 }
 0x1c4   : > { %v791_v11 = vpop.permute.xlu1 %790  ;;  %883 = vrot.lane.b32.xlu1 %v5276_v51, %s4479_s26  ;;  %v797_v34 = vpop.permute.xlu0 %796 }
 0x1c5   : > { %v806_v2 = vsel %vm800_vm3, %v789_v15, %v791_v11  ;;  %v832_v15 = vsel %vm800_vm3, 0.0, %v797_v34 }
 0x1c6   : > { %v5288_v39 = vmul.f32 %v5078_v22, %v806_v2  ;;  %v5304_v2 = vmul.f32 %v5087_v25, %v832_v15 }
 0x1c8   : > { %v5283_v49 = vpop.permute.xlu1 %1520  ;;  %1067 = vrot.lane.b32.xlu1 %v5276_v51, %s4481_s28  ;;  %7902 = vst [vmem:[#allocation100_spill] sm:$0xff] %v5288_v39  ;;  %7904 = vst [vmem:[#allocation102_spill] sm:$0xff] %v5304_v2 }
 0x1cc   : > { %v795_v29 = vpop.permute.xlu1 %794  ;;  %887 = vrot.lane.b32.xlu1 %v5288_v39, %s4479_s26 }
 0x1cd   : > { %v807_v30 = vsel %vm800_vm3, %v793_v9, %v795_v29 }
 0x1ce   : > { %v5294_v48 = vmul.f32 %v5078_v22, %v807_v30 }
 0x1d0   : > { %7903 = vst [vmem:[#allocation101_spill] sm:$0xff] %v5294_v48  ;;  %v5297_v11 = vpop.permute.xlu1 %1524  ;;  %1071 = vrot.lane.b32.xlu1 %v5288_v39, %s4481_s28  ;;  %891 = vrot.lane.b32.xlu0 %v5294_v48, %s4479_s26 }
 0x1d4   : > { %v799_v51 = vpop.permute.xlu1 %798  ;;  %889 = vrot.lane.b32.xlu1 %v5266_v52, %s4479_s26  ;;  %1077 = vrot.lane.b32.xlu0 %v5304_v2, %s4481_s28 }
 0x1d5   : > { %v808_v29 = vsel %vm800_vm3, %v797_v34, %v799_v51  ;;  %v5326_v34 = vpop.permute.xlu0 %1526 }
 0x1d6   : > { %v5312_v9 = vmul.f32 %v5078_v22, %v808_v29 }
 0x1d8   : > { %7905 = vst [vmem:[#allocation103_spill] sm:$0xff] %v5312_v9  ;;  %1075 = vrot.lane.b32.xlu1 %v5294_v48, %s4481_s28  ;;  %895 = vrot.lane.b32.xlu0 %v5312_v9, %s4479_s26  ;;  %v5332_v51 = vpop.permute.xlu1 %1528 }
 0x1d9   : > { %v5334_v30 = vpop.permute.xlu0 %1459 }
 0x1da   : > { %7906 = vst [vmem:[#allocation104_spill] sm:$0xff] %v5334_v30 }
 0x1dc   : > { %893 = vrot.lane.b32.xlu1 %v5304_v2, %s4479_s26  ;;  %1202 = vrot.lane.b32.xlu0 %v5001_v16, %s4479_s26 }
 0x1de   : > { %v5342_v29 = vpop.permute.xlu0 %1668 }
 0x1df   : > { %7908 = vst [vmem:[#allocation106_spill] sm:$0xff] %v5342_v29  ;;  %v1535_v29 = vsel %vm1530_vm5, %v5208_v31, %v5258_v58  ;;  %v5378_v31 = vld [vmem:[%s7505_s3 + $0x38] sm:$0xff] }
 0x1e0   : > { %1079 = vrot.lane.b32.xlu1 %v5312_v9, %s4481_s28  ;;  %1206 = vrot.lane.b32.xlu0 %v5019_v23, %s4479_s26 }
 0x1e2   : > { %v5352_v25 = vpop.permute.xlu0 %1676 }
 0x1e3   : > { %7910 = vst [vmem:[#allocation108_spill] sm:$0xff] %v5352_v25 }
 0x1e4   : > { %1793 = vrot.lane.b32.xlu1 %v5177_v61, %s4481_s28  ;;  %1386 = vrot.lane.b32.xlu0 %v4945_v60, %s4481_s28  ;;  %v1559_v61 = vsel %vm1530_vm5, %v5258_v58, 0.0  ;;  %v4421_v58 = vld [vmem:[%s7505_s3 + $0x18] sm:$0xff] }
 0x1e8   : > { %1204 = vrot.lane.b32.xlu1 %v5035_v6, %s4479_s26  ;;  %1390 = vrot.lane.b32.xlu0 %v4973_v7, %s4481_s28 }
 0x1e9   : > { %v5340_v15 = vpop.permute.xlu1 %1917 }
 0x1ea   : > { %7907 = vst [vmem:[#allocation105_spill] sm:$0xff] %v5340_v15  ;;  %v4417_v15 = vld [vmem:[%s7505_s3 + $0x10] sm:$0xff]  ;;  %v5368_v9 = vpop.permute.xlu0 %1051 }
 0x1eb   : > { %7912 = vst [vmem:[#allocation110_spill] sm:$0xff] %v5368_v9  ;;  %v7918_v9 = vmov 0  }
 0x1ec   : > { %1208 = vrot.lane.b32.xlu1 %v5050_v18, %s4479_s26  ;;  %1684 = vperm.xlu0 %4405, %v4688_v33  }
 0x1ed   : > { %v5347_v22 = vpop.permute.xlu1 %1922 }
 0x1ee   : > { %7909 = vst [vmem:[#allocation107_spill] sm:$0xff] %v5347_v22  ;;  %v5366_v22 = vmul.f32 %v5115_v59, %v1535_v29  ;;  %v870_v39 = vpop.permute.xlu0 %869 }
 0x1f0   : > { %1388 = vrot.lane.b32.xlu1 %v4965_v62, %s4481_s28  ;;  %4408 = vset.pattern.permute.xlu0 %v7874_v50 }
 0x1f1   : > { %1732 = vperm.xlu0 %4408, %v4417_v15   ;;  %v1536_v15 = vsel %vm1530_vm5, %v5243_v42, %v5283_v49  ;;  %v4419_v42 = vld [vmem:[%s7505_s3 + $0x20] sm:$0xff] }
 0x1f2   : > { %v5357_v30 = vpop.permute.xlu1 %1463 }
 0x1f3   : > { %7911 = vst [vmem:[#allocation109_spill] sm:$0xff] %v5357_v30  ;;  %v7916_v30 = vmov 8  }
 0x1f4   : > { %1392 = vrot.lane.b32.xlu1 %v4991_v13, %s4481_s28 }
 0x1f5   : > { %1744 = vperm.xlu0 %4408, %v4700_v35   ;;  %v5384_v35 = vmul.f32 %v5115_v59, %v1536_v15  ;;  %v421_v15 = vld [vmem:[%s7506_s4 + $0x10] sm:$0xff] }
 0x1f7   : > { %v5370_v2 = vpop.permute.xlu1 %1740  ;;  %7914 = vst [vmem:[#allocation112_spill] sm:$0xff] %v5384_v35 }
 0x1f8   : > { %7913 = vst [vmem:[#allocation111_spill] sm:$0xff] %v5370_v2  ;;  %1688 = vperm.xlu1 %4409, %v5378_v31  }
 0x1f9   : > { %1611 = vrot.lane.b32.xlu0 %v5366_v22, %s4479_s26 }
 0x1fa   : > { %v1056_v52 = vpop.permute.xlu0 %1055 }
 0x1fb   : > { %v5386_v29 = vpop.permute.xlu1 %865  ;;  %v1107_v25 = vsel %vm1081_vm7, %v1056_v52, 0.0 }
 0x1fc   : > { %7915 = vst [vmem:[#allocation113_spill] sm:$0xff] %v5386_v29  ;;  %4410 = vset.pattern.permute.xlu1 %v7916_v30 }
 0x1fd   : > { %1868 = vperm.xlu1 %4410, %v4419_v42   ;;  %1615 = vrot.lane.b32.xlu0 %v5384_v35, %s4479_s26  ;;  %v422_v42 = vld [vmem:[%s7506_s4 + $0x18] sm:$0xff] }
 0x1fe   : > { %v5412_v2 = vpop.permute.xlu0 %1599 }
 0x1ff   : > { %v5394_v48 = vpop.permute.xlu1 %1049 }
 0x200   : > { %7917 = vst [vmem:[#allocation114_spill] sm:$0xff] %v5394_v48  ;;  %v4420_v48 = vld [vmem:[%s7505_s3 + $0x8] sm:$0xff] }
 0x201   : > { %4411 = vset.pattern.permute.xlu1 %v7918_v9  ;;  %1748 = vperm.xlu0 %4408, %v4688_v33  }
 0x202   : > { %1927 = vperm.xlu1 %4411, %v421_v15   ;;  %v5417_v15 = vmul.f32 %v5130_v55, %v1559_v61  ;;  %v5432_v61 = vpop.permute.xlu0 %1791 }
 0x203   : > { %v5401_v29 = vpop.permute.xlu1 %867  ;;  %7923 = vst [vmem:[#allocation119_spill] sm:$0xff] %v5432_v61 }
 0x204   : > { %7919 = vst [vmem:[#allocation115_spill] sm:$0xff] %v5401_v29  ;;  %v1560_v29 = vsel %vm1530_vm5, %v5283_v49, 0.0  ;;  %v4422_v49 = vld [vmem:[%s7505_s3 + $0x28] sm:$0xff] }
 0x205   : > { %4412 = vset.pattern.permute.xlu0 %v7916_v30 }
 0x206   : > { %1932 = vperm.xlu1 %4411, %v422_v42   ;;  %1856 = vperm.xlu0 %4412, %v4420_v48   ;;  %v5430_v48 = vmul.f32 %v5130_v55, %v1560_v29 }
 0x207   : > { %v5414_v33 = vpop.permute.xlu1 %1595 }
 0x208   : > { %7920 = vst [vmem:[#allocation116_spill] sm:$0xff] %v5414_v33  ;;  %7922 = vst [vmem:[#allocation118_spill] sm:$0xff] %v5430_v48 }
 0x20a   : > { %1613 = vrot.lane.b32.xlu1 %v5417_v15, %s4479_s26  ;;  %1864 = vperm.xlu0 %4412, %v4421_v58   ;;  %v922_v58 = vsel %vm534_vm0, 0.0, %v870_v39 }
 0x20b   : > { %v5426_v42 = vpop.permute.xlu1 %1597  ;;  %4413 = vset.pattern.permute.xlu1 %v7874_v50  ;;  %v874_v50 = vpop.permute.xlu0 %873  ;;  %v971_v61 = vmul.f32 %v4751_v43, %v922_v58 }
 0x20c   : > { %7921 = vst [vmem:[#allocation117_spill] sm:$0xff] %v5426_v42 }
 0x20e   : > { %1617 = vrot.lane.b32.xlu1 %v5430_v48, %s4479_s26  ;;  %1872 = vperm.xlu0 %4412, %v4422_v49   ;;  %v1019_v49 = vmul.f32 %v4756_v45, %v5099_v44 }
 0x20f   : > { %v5439_v33 = vpop.permute.xlu1 %1787 }
 0x210   : > { %7924 = vst [vmem:[#allocation120_spill] sm:$0xff] %v5439_v33 }
 0x212   : > { %1752 = vperm.xlu1 %4413, %v5378_v31   ;;  %1797 = vrot.lane.b32.xlu0 %v5180_v41, %s4481_s28  ;;  %v5454_v33 = vpop.permute.xlu0 %1605  ;;  %v1235_v41 = vsel %vm534_vm0, 0.0, %v5108_v46 }
 0x213   : > { %v5445_v29 = vpop.permute.xlu1 %1789  ;;  %7926 = vst [vmem:[#allocation122_spill] sm:$0xff] %v5454_v33  ;;  %v1276_v44 = vmul.f32 %v4963_v21, %v1235_v41  ;;  %v1211_v41 = vsel %vm534_vm0, %v5108_v46, %v5120_v32 }
 0x214   : > { %7925 = vst [vmem:[#allocation121_spill] sm:$0xff] %v5445_v29  ;;  %v1035_v29 = vadd.f32 %v1019_v49, %v971_v61  ;;  %v1340_v61 = vmul.f32 %v5017_v0, %v4841_v63 }
 0x216   : > { %1795 = vrot.lane.b32.xlu1 %v5217_v10, %s4481_s28  ;;  %1801 = vrot.lane.b32.xlu0 %v5220_v36, %s4481_s28  ;;  %v5473_v49 = vpop.permute.xlu0 %877 }
 0x217   : > { %v1054_v42 = vpop.permute.xlu1 %1053  ;;  %4414 = vset.pattern.permute.xlu1 %v7916_v30  ;;  %v1403_v30 = vsel %vm1081_vm7, %v5112_v4, %v5144_v37  ;;  %v1652_v4 = vsel %vm534_vm0, 0.0, %v5412_v2 }
 0x218   : > { %v1083_v58 = vsel %vm1081_vm7, %v1054_v42, %v1056_v52  ;;  %v1468_v63 = vmul.f32 %v4802_v5, %v1403_v30  ;;  %v1693_v46 = vmul.f32 %v4858_v17, %v1652_v4  ;;  %v4424_v4 = vld [vmem:[%s7505_s3] sm:$0xff] }
 0x219   : > { %v1148_v10 = vmul.f32 %v4909_v20, %v1083_v58 }
 0x21a   : > { %1799 = vrot.lane.b32.xlu1 %v5256_v54, %s4481_s28  ;;  %1396 = vrot.lane.b32.xlu0 %v5035_v6, %s4481_s28  ;;  %v5500_v30 = vpop.permute.xlu0 %1061 }
 0x21b   : > { %v1164_v33 = vadd.f32 %v1148_v10, %v1035_v29  ;;  %v872_v36 = vpop.permute.xlu1 %871  ;;  %v1020_v10 = vmul.f32 %v4756_v45, %v5127_v57  ;;  %v7949_v45 = vld [vmem:[#allocation34_spill] sm:$0xff] }
 0x21c   : > { %v898_v42 = vsel %vm534_vm0, %v870_v39, %v872_v36  ;;  %v1149_v36 = vmul.f32 %v4909_v20, %v1107_v25  ;;  %v1757_v25 = vmul.f32 %v4939_v26, %v5142_v8  ;;  %v7948_v20 = vld [vmem:[#allocation91_spill] sm:$0xff] }
 0x21d   : > { %v1292_v58 = vadd.f32 %v1276_v44, %v1164_v33  ;;  %v972_v54 = vmul.f32 %v4751_v43, %v898_v42  ;;  %v1277_v33 = vmul.f32 %v4963_v21, %v1211_v41  ;;  %v1341_v44 = vmul.f32 %v5017_v0, %v4873_v14 }
 0x21e   : > { %1394 = vrot.lane.b32.xlu1 %v5001_v16, %s4481_s28  ;;  %1400 = vrot.lane.b32.xlu0 %v5050_v18, %s4481_s28  ;;  %v923_v41 = vsel %vm534_vm0, 0.0, %v874_v50  ;;  %v1025_v43 = vmul.f32 %v7949_v45, %v7948_v20 }
 0x21f   : > { %v1356_v52 = vadd.f32 %v1340_v61, %v1292_v58  ;;  %v1036_v39 = vadd.f32 %v1020_v10, %v972_v54  ;;  %v5489_v57 = vpop.permute.xlu1 %1601 }
 0x221   : > { %v1484_v32 = vadd.f32 %v1468_v63, %v1356_v52  ;;  %v1165_v29 = vadd.f32 %v1149_v36, %v1036_v39  ;;  %v423_v36 = vld [vmem:[%s7506_s4 + $0x20] sm:$0xff]  ;;  %v1537_v52 = vsel %vm1530_vm5, %v5280_v53, %v5297_v11  ;;  %v973_v39 = vmul.f32 %v4765_v47, %v923_v41 }
 0x222   : > { %1398 = vrot.lane.b32.xlu1 %v5019_v23, %s4481_s28  ;;  %1880 = vperm.xlu0 %4412, %v5378_v31   ;;  %v4423_v31 = vld [vmem:[%s7505_s3 + $0x30] sm:$0xff]  ;;  %v5511_v14 = vpop.permute.xlu0 %1609  ;;  %v1212_v53 = vsel %vm534_vm0, %v5151_v38, %v5157_v27  ;;  %v1561_v27 = vsel %vm1530_vm5, %v5297_v11, 0.0  ;;  %v1343_v11 = vmul.f32 %v4820_v28, %v4899_v1 }
 0x223   : > { %v1709_v54 = vadd.f32 %v1693_v46, %v1484_v32  ;;  %v1293_v42 = vadd.f32 %v1277_v33, %v1165_v29  ;;  %v1058_v61 = vpop.permute.xlu1 %1057  ;;  %v1236_v46 = vsel %vm534_vm0, 0.0, %v5151_v38  ;;  %v1022_v32 = vmul.f32 %v4867_v3, %v5202_v19 }
 0x224   : > { %v1278_v38 = vmul.f32 %v4792_v56, %v1236_v46 }
 0x225   : > { %v5502_v58 = vadd.f32 %v1341_v44, %v1293_v42  ;;  %v5504_v10 = vadd.f32 %v1757_v25, %v1709_v54  ;;  %v5536_v44 = vmul.f32 %v5115_v59, %v1537_v52  ;;  %v1342_v52 = vmul.f32 %v4820_v28, %v4883_v24 }
 0x226   : > { %1876 = vperm.xlu1 %4414, %v4423_v31   ;;  %4415 = vset.pattern.permute.xlu0 %v7918_v9  ;;  %v5543_v19 = vpop.permute.xlu0 %881 }
 0x227   : > { %v876_v8 = vpop.permute.xlu1 %875  ;;  %931 = vperm.xlu0 %4415, %v4424_v4   ;;  %7927 = vst [vmem:[#allocation123_spill] sm:$0xff] %v5536_v44 }
 0x228   : > { %v899_v63 = vsel %vm534_vm0, %v874_v50, %v876_v8  ;;  %v1021_v50 = vmul.f32 %v4867_v3, %v5160_v12  ;;  %v424_v12 = vld [vmem:[%s7506_s4 + $0x28] sm:$0xff]  ;;  %v1279_v8 = vmul.f32 %v4792_v56, %v1212_v53 }
 0x229   : > { %v974_v33 = vmul.f32 %v4765_v47, %v899_v63  ;;  %v7946_v47 = vld [vmem:[#allocation15_spill] sm:$0xff] }
 0x22a   : > { %4416 = vset.pattern.permute.xlu1 %v7918_v9  ;;  %v1037_v54 = vadd.f32 %v1021_v50, %v973_v39  ;;  %v5563_v39 = vmul.f32 %v5130_v55, %v1561_v27  ;;  %v1562_v50 = vsel %vm1530_vm5, %v5332_v51, 0.0 }
 0x22b   : > { %v1060_v29 = vpop.permute.xlu1 %1059  ;;  %1937 = vperm.xlu1 %4416, %v423_v36   ;;  %961 = vperm.xlu0 %4415, %v4423_v31   ;;  %v1038_v42 = vadd.f32 %v1022_v32, %v974_v33  ;;  %v924_v32 = vsel %vm534_vm0, 0.0, %v5473_v49 }
 0x22c   : > { %v1084_v9 = vsel %vm1081_vm7, %v1058_v61, %v1060_v29  ;;  %v1108_v25 = vsel %vm1081_vm7, %v1060_v29, 0.0  ;;  %v1538_v61 = vsel %vm1530_vm5, %v5326_v34, %v5332_v51  ;;  %7928 = vst [vmem:[#allocation124_spill] sm:$0xff] %v5563_v39  ;;  %v5572_v29 = vpop.permute.xlu0 %885  ;;  %v5585_v51 = vmul.f32 %v5130_v55, %v1562_v50  ;;  %v7950_v55 = vld [vmem:[#allocation43_spill] sm:$0xff] }
 0x22d   : > { %v1150_v41 = vmul.f32 %v4921_v40, %v1084_v9  ;;  %v1151_v31 = vmul.f32 %v4921_v40, %v1108_v25  ;;  %v5566_v34 = vmul.f32 %v5115_v59, %v1538_v61  ;;  %v7931_v25 = vld [vmem:[#allocation10_spill] sm:$0xff]  ;;  %v7935_v61 = vld [vmem:[#allocation92_spill] sm:$0xff] }
 0x22e   : > { %7930 = vst [vmem:[#allocation126_spill] sm:$0xff] %v5585_v51 }
 0x22f   : > { %v1166_v4 = vadd.f32 %v1150_v41, %v1037_v54  ;;  %v1167_v63 = vadd.f32 %v1151_v31, %v1038_v42  ;;  %v5554_v36 = vpop.permute.xlu1 %1603  ;;  %1942 = vperm.xlu1 %4416, %v424_v12   ;;  %1619 = vrot.lane.b32.xlu0 %v5536_v44, %s4479_s26  ;;  %7929 = vst [vmem:[#allocation125_spill] sm:$0xff] %v5566_v34  ;;  %v7932_v42 = vld [vmem:[#allocation86_spill] sm:$0xff]  ;;  %v7933_v31 = vld [vmem:[#allocation85_spill] sm:$0xff] }
 0x230   : > { %v975_v12 = vmul.f32 %v7931_v25, %v924_v32  ;;  %v1237_v41 = vsel %vm534_vm0, 0.0, %v7932_v42  ;;  %v7937_v32 = vld [vmem:[#allocation13_spill] sm:$0xff] }
 0x231   : > { %v1294_v33 = vadd.f32 %v1278_v38, %v1166_v4  ;;  %v1295_v46 = vadd.f32 %v1279_v8, %v1167_v63  ;;  %v7934_v38 = vld [vmem:[#allocation11_spill] sm:$0xff] }
 0x232   : > { %v1023_v27 = vmul.f32 %v7934_v38, %v7933_v31  ;;  %v1024_v8 = vmul.f32 %v7934_v38, %v7935_v61  ;;  %v7938_v31 = vld [vmem:[#allocation50_spill] sm:$0xff] }
 0x233   : > { %v5574_v24 = vadd.f32 %v1342_v52, %v1294_v33  ;;  %v5576_v53 = vadd.f32 %v1343_v11, %v1295_v46  ;;  %v880_v1 = vpop.permute.xlu1 %879  ;;  %1621 = vrot.lane.b32.xlu1 %v5563_v39, %s4479_s26  ;;  %1623 = vrot.lane.b32.xlu0 %v5566_v34, %s4479_s26  ;;  %v5605_v46 = vpop.permute.xlu0 %1069  ;;  %v1280_v61 = vmul.f32 %v7938_v31, %v1237_v41  ;;  %v7941_v41 = vld [vmem:[#allocation44_spill] sm:$0xff] }
 0x234   : > { %v900_v9 = vsel %vm534_vm0, %v5473_v49, %v880_v1  ;;  %v7936_v49 = vld [vmem:[#allocation84_spill] sm:$0xff]  ;;  %v1039_v33 = vadd.f32 %v1023_v27, %v975_v12  ;;  %v7939_v12 = vld [vmem:[#allocation39_spill] sm:$0xff] }
 0x235   : > { %v976_v54 = vmul.f32 %v7931_v25, %v900_v9  ;;  %v1213_v63 = vsel %vm534_vm0, %v7932_v42, %v7936_v49 }
 0x236   : > { %v1281_v25 = vmul.f32 %v7938_v31, %v1213_v63  ;;  %v925_v31 = vsel %vm534_vm0, 0.0, %v5543_v19 }
 0x237   : > { %v1064_v4 = vpop.permute.xlu1 %1063  ;;  %1625 = vrot.lane.b32.xlu1 %v5585_v51, %s4479_s26  ;;  %1803 = vrot.lane.b32.xlu0 %v5366_v22, %s4481_s28  ;;  %v1040_v50 = vadd.f32 %v1024_v8, %v976_v54  ;;  %v7940_v54 = vld [vmem:[#allocation58_spill] sm:$0xff]  ;;  %v5624_v63 = vpop.permute.xlu0 %1073  ;;  %v977_v3 = vmul.f32 %v7946_v47, %v925_v31 }
 0x238   : > { %v1085_v52 = vsel %vm1081_vm7, %v5500_v30, %v1064_v4  ;;  %v1109_v11 = vsel %vm1081_vm7, %v1064_v4, 0.0  ;;  %v425_v30 = vld [vmem:[%s7506_s4 + $0x30] sm:$0xff]  ;;  %v1344_v27 = vmul.f32 %v7940_v54, %v7939_v12  ;;  %v1345_v8 = vmul.f32 %v7940_v54, %v7941_v41 }
 0x239   : > { %v1152_v1 = vmul.f32 %v7937_v32, %v1085_v52  ;;  %v1153_v9 = vmul.f32 %v7937_v32, %v1109_v11 }
 0x23b   : > { %v1168_v38 = vadd.f32 %v1152_v1, %v1039_v33  ;;  %v1169_v28 = vadd.f32 %v1153_v9, %v1040_v50  ;;  %v5611_v42 = vpop.permute.xlu1 %1607  ;;  %1805 = vrot.lane.b32.xlu1 %v5417_v15, %s4481_s28  ;;  %1807 = vrot.lane.b32.xlu0 %v5384_v35, %s4481_s28  ;;  %v426_v50 = vld [vmem:[%s7506_s4 + $0x38] sm:$0xff] }
 0x23d   : > { %v1296_v4 = vadd.f32 %v1280_v61, %v1168_v38  ;;  %v1297_v49 = vadd.f32 %v1281_v25, %v1169_v28 }
 0x23f   : > { %v5626_v52 = vadd.f32 %v1344_v27, %v1296_v4  ;;  %v5628_v11 = vadd.f32 %v1345_v8, %v1297_v49  ;;  %v1066_v33 = vpop.permute.xlu1 %1065  ;;  %1809 = vrot.lane.b32.xlu1 %v5430_v48, %s4481_s28  ;;  %1947 = vperm.xlu0 %4415, %v425_v30  }
 0x242   : > { %v5635_v1 = vpop.permute.xlu0 %891 }
 0x243   : > { %7942 = vst [vmem:[#allocation86_spill] sm:$0xff] %v5635_v1  ;;  %v5637_v9 = vpop.permute.xlu1 %883  ;;  %1952 = vperm.xlu1 %4416, %v426_v50   ;;  %1813 = vrot.lane.b32.xlu0 %v5563_v39, %s4481_s28 }
 0x246   : > { %v5647_v25 = vpop.permute.xlu0 %1077 }
 0x247   : > { %v5641_v28 = vpop.permute.xlu1 %1067  ;;  %1811 = vrot.lane.b32.xlu1 %v5536_v44, %s4481_s28  ;;  %1817 = vrot.lane.b32.xlu0 %v5585_v51, %s4481_s28  ;;  %v1041_v51 = vadd.f32 %v1025_v43, %v977_v3  ;;  %v7957_v43 = vld [vmem:[#allocation14_spill] sm:$0xff] }
 0x248   : > { %v1086_v56 = vsel %vm1081_vm7, %v1066_v33, %v5641_v28  ;;  %v7953_v33 = vld [vmem:[#allocation52_spill] sm:$0xff] }
 0x249   : > { %v1154_v59 = vmul.f32 %v7950_v55, %v1086_v56  ;;  %v7956_v56 = vld [vmem:[#allocation23_spill] sm:$0xff] }
 0x24a   : > { %v5653_v61 = vpop.permute.xlu0 %895  ;;  %v5702_v3 = vmul.f32 %v7957_v43, %v7956_v56  ;;  %v7966_v56 = vld [vmem:[#allocation70_spill] sm:$0xff] }
 0x24b   : > { %v5649_v38 = vpop.permute.xlu1 %887  ;;  %1815 = vrot.lane.b32.xlu1 %v5566_v34, %s4481_s28  ;;  %v7951_v34 = vld [vmem:[#allocation93_spill] sm:$0xff]  ;;  %v1170_v48 = vadd.f32 %v1154_v59, %v1041_v51  ;;  %v7961_v59 = vld [vmem:[#allocation60_spill] sm:$0xff] }
 0x24c   : > { %v1238_v39 = vsel %vm534_vm0, 0.0, %v7951_v34  ;;  %7958 = vst [vmem:[#allocation23_spill] sm:$0xff] %v5702_v3  ;;  %v5710_v51 = vmul.f32 %v7961_v59, %v4973_v7 }
 0x24d   : > { %v1282_v31 = vmul.f32 %v7953_v33, %v1238_v39  ;;  %v5714_v39 = vmul.f32 %v7961_v59, %v4991_v13  ;;  %v7971_v59 = vld [vmem:[#allocation62_spill] sm:$0xff] }
 0x24e   : > { %v5659_v27 = vpop.permute.xlu0 %1202  ;;  %7962 = vst [vmem:[#allocation127_spill] sm:$0xff] %v5710_v51 }
 0x24f   : > { %v5655_v30 = vpop.permute.xlu1 %1071  ;;  %7963 = vst [vmem:[#allocation128_spill] sm:$0xff] %v5714_v39 }
 0x252   : > { %v5663_v8 = vpop.permute.xlu0 %1206 }
 0x253   : > { %v5657_v12 = vpop.permute.xlu1 %889 }
 0x254   : > { %7943 = vst [vmem:[#allocation85_spill] sm:$0xff] %v5657_v12  ;;  %v7959_v12 = vld [vmem:[#allocation27_spill] sm:$0xff] }
 0x255   : > { %v5706_v1 = vmul.f32 %v7957_v43, %v7959_v12  ;;  %v7967_v12 = vld [vmem:[#allocation57_spill] sm:$0xff] }
 0x256   : > { %v1387_v50 = vpop.permute.xlu0 %1386 }
 0x257   : > { %v5661_v41 = vpop.permute.xlu1 %1075  ;;  %7960 = vst [vmem:[#allocation27_spill] sm:$0xff] %v5706_v1  ;;  %v7968_v1 = vld [vmem:[#allocation61_spill] sm:$0xff] }
 0x258   : > { %v5726_v7 = vmul.f32 %v7968_v1, %v5019_v23  ;;  %v5730_v13 = vmul.f32 %v7968_v1, %v5050_v18  ;;  %v7975_v23 = vld [vmem:[#allocation74_spill] sm:$0xff]  ;;  %v1427_v18 = vsel %vm1081_vm7, %v5144_v37, 0.0 }
 0x259   : > { %v1426_v37 = vsel %vm1081_vm7, %v7975_v23, 0.0 }
 0x25a   : > { %v5673_v32 = vpop.permute.xlu0 %1390  ;;  %7970 = vst [vmem:[#allocation70_spill] sm:$0xff] %v5730_v13 }
 0x25b   : > { %v5665_v4 = vpop.permute.xlu1 %893  ;;  %7944 = vst [vmem:[#allocation92_spill] sm:$0xff] %v5673_v32  ;;  %v1298_v32 = vadd.f32 %v1282_v31, %v1170_v48  ;;  %v7964_v48 = vld [vmem:[#allocation49_spill] sm:$0xff]  ;;  %v7965_v31 = vld [vmem:[#allocation67_spill] sm:$0xff] }
 0x25c   : > { %v1210_v3 = vsel %vm534_vm0, %v7965_v31, %v7966_v56  ;;  %7969 = vst [vmem:[#allocation67_spill] sm:$0xff] %v5726_v7  ;;  %v8024_v7 = vld [vmem:[#allocation100_spill] sm:$0xff] }
 0x25f   : > { %v5667_v49 = vpop.permute.xlu1 %1079 }
 0x263   : > { %v5669_v54 = vpop.permute.xlu1 %1793 }
 0x267   : > { %v5675_v40 = vpop.permute.xlu1 %1204 }
 0x268   : > { %7945 = vst [vmem:[#allocation84_spill] sm:$0xff] %v5675_v40 }
 0x26b   : > { %v5680_v21 = vpop.permute.xlu1 %1208  ;;  %v5682_v0 = vpop.permute.xlu0 %1684 }
 0x26c   : > { %7947 = vst [vmem:[#allocation39_spill] sm:$0xff] %v5682_v0 }
 0x26f   : > { %v5689_v44 = vpop.permute.xlu1 %1388 }
 0x270   : > { %7952 = vst [vmem:[#allocation44_spill] sm:$0xff] %v5689_v44  ;;  %v5691_v35 = vpop.permute.xlu0 %1732  ;;  %v1406_v40 = vsel %vm1081_vm7, %v1387_v50, %v5689_v44  ;;  %v1346_v50 = vmul.f32 %v7964_v48, %v4945_v60  ;;  %v5734_v60 = vmul.f32 %v7964_v48, %v4965_v62  ;;  %v5738_v44 = vmul.f32 %v7971_v59, %v5001_v16  ;;  %v7978_v48 = vld [vmem:[#allocation12_spill] sm:$0xff]  ;;  %v7980_v16 = vld [vmem:[#allocation73_spill] sm:$0xff] }
 0x271   : > { %v1474_v43 = vmul.f32 %v7967_v12, %v1406_v40  ;;  %v5744_v40 = vmul.f32 %v7971_v59, %v5035_v6  ;;  %v5761_v6 = vmul.f32 %v7978_v48, %v1210_v3  ;;  %v7988_v12 = vld [vmem:[#allocation42_spill] sm:$0xff] }
 0x272   : > { %7972 = vst [vmem:[#allocation129_spill] sm:$0xff] %v5738_v44  ;;  %v1362_v1 = vadd.f32 %v1346_v50, %v1298_v32  ;;  %v7981_v44 = vld [vmem:[#allocation30_spill] sm:$0xff] }
 0x273   : > { %v5696_v0 = vpop.permute.xlu1 %1392  ;;  %7974 = vst [vmem:[#allocation131_spill] sm:$0xff] %v5744_v40  ;;  %7983 = vst [vmem:[#allocation132_spill] sm:$0xff] %v5761_v6 }
 0x274   : > { %7954 = vst [vmem:[#allocation91_spill] sm:$0xff] %v5696_v0  ;;  %v5698_v20 = vpop.permute.xlu0 %1744  ;;  %v1490_v32 = vadd.f32 %v1474_v43, %v1362_v1  ;;  %v7996_v43 = vld [vmem:[#allocation111_spill] sm:$0xff] }
 0x275   : > { %7955 = vst [vmem:[#allocation93_spill] sm:$0xff] %v5698_v20  ;;  %v1234_v20 = vsel %vm534_vm0, 0.0, %v7965_v31  ;;  %v7976_v31 = vld [vmem:[#allocation68_spill] sm:$0xff] }
 0x276   : > { %v1402_v56 = vsel %vm1081_vm7, %v7976_v31, %v7975_v23  ;;  %v5754_v13 = vmul.f32 %v7978_v48, %v1234_v20  ;;  %v7984_v31 = vld [vmem:[#allocation71_spill] sm:$0xff]  ;;  %v7986_v20 = vld [vmem:[#allocation108_spill] sm:$0xff] }
 0x277   : > { %v5740_v0 = vpop.permute.xlu1 %1688  ;;  %v5767_v40 = vmul.f32 %v7981_v44, %v7984_v31  ;;  %v7992_v48 = vld [vmem:[#allocation20_spill] sm:$0xff]  ;;  %v1469_v31 = vmul.f32 %v4802_v5, %v1427_v18 }
 0x278   : > { %7973 = vst [vmem:[#allocation130_spill] sm:$0xff] %v5740_v0  ;;  %v5751_v62 = vpop.permute.xlu0 %1611  ;;  %7979 = vst [vmem:[#allocation68_spill] sm:$0xff] %v5754_v13  ;;  %v5758_v0 = vmul.f32 %v7981_v44, %v7980_v16  ;;  %v7987_v13 = vld [vmem:[#allocation76_spill] sm:$0xff]  ;;  %v5781_v6 = vmul.f32 %v7992_v48, %v1402_v56  ;;  %v7994_v44 = vld [vmem:[#allocation83_spill] sm:$0xff]  ;;  %v5796_v56 = vmul.f32 %v7992_v48, %v1426_v37 }
 0x279   : > { %7977 = vst [vmem:[#allocation74_spill] sm:$0xff] %v5751_v62  ;;  %v1655_v59 = vsel %vm534_vm0, 0.0, %v5751_v62  ;;  %7985 = vst [vmem:[#allocation71_spill] sm:$0xff] %v5767_v40  ;;  %v5774_v16 = vmul.f32 %v7988_v12, %v7987_v13  ;;  %v7995_v40 = vld [vmem:[#allocation79_spill] sm:$0xff]  ;;  %v1428_v1 = vsel %vm1081_vm7, %v7994_v44, 0.0  ;;  %v8001_v18 = vld [vmem:[#allocation80_spill] sm:$0xff]  ;;  %v1485_v37 = vadd.f32 %v1469_v31, %v5502_v58 }
 0x27a   : > { %7982 = vst [vmem:[#allocation73_spill] sm:$0xff] %v5758_v0  ;;  %v1699_v50 = vmul.f32 %v7986_v20, %v1655_v59  ;;  %v7990_v0 = vld [vmem:[#allocation78_spill] sm:$0xff]  ;;  %7993 = vst [vmem:[#allocation133_spill] sm:$0xff] %v5781_v6  ;;  %v1404_v23 = vsel %vm1081_vm7, %v7995_v40, %v7994_v44  ;;  %v1763_v59 = vmul.f32 %v7996_v43, %v5366_v22  ;;  %v8010_v62 = vld [vmem:[#allocation95_spill] sm:$0xff] }
 0x27b   : > { %7989 = vst [vmem:[#allocation76_spill] sm:$0xff] %v5774_v16  ;;  %v5778_v3 = vmul.f32 %v7988_v12, %v7990_v0  ;;  %7999 = vst [vmem:[#allocation134_spill] sm:$0xff] %v5796_v56  ;;  %v8000_v12 = vld [vmem:[#allocation90_spill] sm:$0xff]  ;;  %v1628_v44 = vsel %vm534_vm0, %v5412_v2, %v5489_v57 }
 0x27c   : > { %v1715_v13 = vadd.f32 %v1699_v50, %v1490_v32  ;;  %v5791_v16 = vpop.permute.xlu1 %1868  ;;  %v5793_v0 = vpop.permute.xlu0 %1615  ;;  %v1405_v5 = vsel %vm1081_vm7, %v8001_v18, %v8000_v12  ;;  %v1429_v22 = vsel %vm1081_vm7, %v8000_v12, 0.0  ;;  %v8003_v32 = vld [vmem:[#allocation87_spill] sm:$0xff]  ;;  %v8008_v2 = vld [vmem:[#allocation98_spill] sm:$0xff]  ;;  %v8009_v12 = vld [vmem:[#allocation64_spill] sm:$0xff]  ;;  %v1694_v58 = vmul.f32 %v4858_v17, %v1628_v44 }
 0x27d   : > { %7991 = vst [vmem:[#allocation78_spill] sm:$0xff] %v5778_v3  ;;  %7997 = vst [vmem:[#allocation83_spill] sm:$0xff] %v5791_v16  ;;  %v8002_v3 = vld [vmem:[#allocation81_spill] sm:$0xff]  ;;  %v1214_v50 = vsel %vm534_vm0, %v7951_v34, %v8003_v32  ;;  %v8005_v16 = vld [vmem:[#allocation40_spill] sm:$0xff]  ;;  %v1239_v57 = vsel %vm534_vm0, 0.0, %v8008_v2  ;;  %v1472_v20 = vmul.f32 %v8009_v12, %v1405_v5  ;;  %v1215_v34 = vsel %vm534_vm0, %v8008_v2, %v8010_v62 }
 0x27e   : > { %7998 = vst [vmem:[#allocation79_spill] sm:$0xff] %v5793_v0  ;;  %v1758_v40 = vmul.f32 %v4939_v26, %v8002_v3  ;;  %v5812_v48 = vadd.f32 %v1763_v59, %v1715_v13  ;;  %v1470_v18 = vmul.f32 %v8005_v16, %v1404_v23  ;;  %v1471_v56 = vmul.f32 %v8005_v16, %v1428_v1  ;;  %v8006_v3 = vld [vmem:[#allocation89_spill] sm:$0xff]  ;;  %v8007_v26 = vld [vmem:[#allocation59_spill] sm:$0xff]  ;;  %v8012_v23 = vld [vmem:[#allocation96_spill] sm:$0xff] }
 0x27f   : > { %v5818_v6 = vmul.f32 %v8007_v26, %v8006_v3  ;;  %v5831_v1 = vmul.f32 %v8007_v26, %v8012_v23  ;;  %v1473_v59 = vmul.f32 %v8009_v12, %v1429_v22  ;;  %v5835_v13 = vmul.f32 %v7953_v33, %v1214_v50  ;;  %v8013_v32 = vld [vmem:[#allocation110_spill] sm:$0xff]  ;;  %v8015_v16 = vld [vmem:[#allocation17_spill] sm:$0xff]  ;;  %v8018_v2 = vld [vmem:[#allocation35_spill] sm:$0xff] }
 0x280   : > { %8004 = vst [vmem:[#allocation90_spill] sm:$0xff] %v5812_v48  ;;  %v5827_v31 = vpop.permute.xlu0 %1748  ;;  %v1106_v5 = vsel %vm1081_vm7, %v8013_v32, 0.0  ;;  %v8014_v3 = vld [vmem:[#allocation94_spill] sm:$0xff]  ;;  %v8017_v44 = vld [vmem:[#allocation97_spill] sm:$0xff]  ;;  %v1710_v26 = vadd.f32 %v1694_v58, %v1485_v37  ;;  %v8021_v22 = vld [vmem:[#allocation99_spill] sm:$0xff]  ;;  %v5863_v0 = vmul.f32 %v8015_v16, %v8024_v7 }
 0x281   : > { %8011 = vst [vmem:[#allocation80_spill] sm:$0xff] %v5827_v31  ;;  %v1027_v48 = vmul.f32 %v8015_v16, %v8014_v3  ;;  %v5841_v62 = vpop.permute.xlu1 %1927  ;;  %v5845_v17 = vmul.f32 %v8018_v2, %v8017_v44  ;;  %v8020_v31 = vld [vmem:[#allocation37_spill] sm:$0xff]  ;;  %v5852_v50 = vmul.f32 %v7949_v45, %v8021_v22  ;;  %v8025_v44 = vld [vmem:[#allocation102_spill] sm:$0xff]  ;;  %v8027_v37 = vld [vmem:[#allocation103_spill] sm:$0xff] }
 0x282   : > { %8016 = vst [vmem:[#allocation81_spill] sm:$0xff] %v5841_v62  ;;  %v5848_v23 = vmul.f32 %v8020_v31, %v1239_v57  ;;  %v5855_v33 = vmul.f32 %v8020_v31, %v1215_v34  ;;  %v8022_v12 = vld [vmem:[#allocation101_spill] sm:$0xff]  ;;  %v8029_v22 = vld [vmem:[#allocation8_spill] sm:$0xff]  ;;  %v8031_v34 = vld [vmem:[#allocation114_spill] sm:$0xff]  ;;  %v1774_v51 = vadd.f32 %v1758_v40, %v1710_v26 }
 0x283   : > { %8019 = vst [vmem:[#allocation87_spill] sm:$0xff] %v5845_v17  ;;  %v5859_v3 = vmul.f32 %v8018_v2, %v8022_v12  ;;  %v8026_v17 = vld [vmem:[#allocation36_spill] sm:$0xff]  ;;  %v5874_v45 = vmul.f32 %v8029_v22, %v1106_v5  ;;  %v1082_v12 = vsel %vm1081_vm7, %v8031_v34, %v8013_v32  ;;  %v8033_v7 = vld [vmem:[#allocation117_spill] sm:$0xff] }
 0x284   : > { %v5867_v57 = vmul.f32 %v8026_v17, %v8025_v44  ;;  %v5871_v58 = vmul.f32 %v8026_v17, %v8027_v37  ;;  %v8032_v2 = vld [vmem:[#allocation116_spill] sm:$0xff]  ;;  %v8034_v44 = vld [vmem:[#allocation121_spill] sm:$0xff]  ;;  %v8036_v37 = vld [vmem:[#allocation119_spill] sm:$0xff]  ;;  %v1844_v17 = vsel %vm1081_vm7, %v5669_v54, 0.0 }
 0x285   : > { %8023 = vst [vmem:[#allocation89_spill] sm:$0xff] %v5859_v3  ;;  %8030 = vst [vmem:[#allocation95_spill] sm:$0xff] %v5874_v45  ;;  %v1651_v31 = vsel %vm534_vm0, 0.0, %v8032_v2  ;;  %v1627_v16 = vsel %vm534_vm0, %v8032_v2, %v8033_v7  ;;  %v8035_v3 = vld [vmem:[#allocation120_spill] sm:$0xff]  ;;  %v1820_v5 = vsel %vm1081_vm7, %v8036_v37, %v5669_v54  ;;  %v5892_v45 = vpop.permute.xlu1 %1932  ;;  %v5894_v32 = vpop.permute.xlu0 %1856  ;;  %v1843_v34 = vsel %vm1081_vm7, %v8034_v44, 0.0  ;;  %v8040_v37 = vld [vmem:[#allocation113_spill] sm:$0xff] }
 0x286   : > { %8028 = vst [vmem:[#allocation98_spill] sm:$0xff] %v5871_v58  ;;  %v1819_v39 = vsel %vm1081_vm7, %v8035_v3, %v8034_v44  ;;  %8037 = vst [vmem:[#allocation96_spill] sm:$0xff] %v5892_v45  ;;  %v1885_v2 = vmul.f32 %v5894_v32, %v1820_v5  ;;  %v1886_v7 = vmul.f32 %v5894_v32, %v1844_v17  ;;  %v5906_v58 = vsel %vm534_vm0, 0.0, %v8040_v37  ;;  %v8042_v44 = vld [vmem:[#allocation115_spill] sm:$0xff]  ;;  %v8044_v5 = vld [vmem:[#allocation29_spill] sm:$0xff] }
 0x287   : > { %8038 = vst [vmem:[#allocation110_spill] sm:$0xff] %v5894_v32  ;;  %v5902_v3 = vmul.f32 %v7996_v43, %v5417_v15  ;;  %v5909_v54 = vmul.f32 %v8029_v22, %v1082_v12  ;;  %v926_v45 = vsel %vm534_vm0, 0.0, %v5572_v29  ;;  %v5916_v26 = vsel %vm534_vm0, %v8040_v37, %v8042_v44  ;;  %v8046_v32 = vld [vmem:[#allocation53_spill] sm:$0xff] }
 0x288   : > { %8043 = vst [vmem:[#allocation99_spill] sm:$0xff] %v5916_v26  ;;  %v1653_v17 = vsel %vm534_vm0, 0.0, %v5554_v36  ;;  %v1901_v15 = vadd.f32 %v1885_v2, %v5504_v10  ;;  %v1902_v40 = vadd.f32 %v1886_v7, %v1774_v51  ;;  %v5922_v43 = vmul.f32 %v8044_v5, %v1651_v31  ;;  %v8051_v51 = vld [vmem:[#allocation107_spill] sm:$0xff]  ;;  %v8052_v2 = vld [vmem:[#allocation122_spill] sm:$0xff] }
 0x289   : > { %8039 = vst [vmem:[#allocation94_spill] sm:$0xff] %v5902_v3  ;;  %8041 = vst [vmem:[#allocation97_spill] sm:$0xff] %v5909_v54  ;;  %v5925_v12 = vmul.f32 %v8044_v5, %v1627_v16  ;;  %v5928_v22 = vmul.f32 %v8046_v32, %v1819_v39  ;;  %v5931_v3 = vmul.f32 %v8046_v32, %v1843_v34  ;;  %v5933_v37 = vpop.permute.xlu1 %1613  ;;  %v5935_v44 = vpop.permute.xlu0 %1864  ;;  %v8050_v54 = vld [vmem:[#allocation16_spill] sm:$0xff]  ;;  %v8053_v7 = vld [vmem:[#allocation106_spill] sm:$0xff] }
 0x28a   : > { %8049 = vst [vmem:[#allocation103_spill] sm:$0xff] %v5935_v44  ;;  %v979_v26 = vmul.f32 %v8050_v54, %v926_v45  ;;  %v901_v10 = vsel %vm534_vm0, %v5543_v19, %v5637_v9  ;;  %v1957_v31 = vadd.f32 %v8051_v51, %v1901_v15  ;;  %v1958_v16 = vadd.f32 %v8051_v51, %v1902_v40 }
 0x28b   : > { %8045 = vst [vmem:[#allocation101_spill] sm:$0xff] %v5925_v12  ;;  %8047 = vst [vmem:[#allocation100_spill] sm:$0xff] %v5928_v22  ;;  %v1486_v39 = vadd.f32 %v1470_v18, %v5574_v24  ;;  %v1629_v34 = vsel %vm534_vm0, %v5554_v36, %v8052_v2  ;;  %v1695_v32 = vmul.f32 %v8053_v7, %v1653_v17  ;;  %v1654_v19 = vsel %vm534_vm0, 0.0, %v5611_v42 }
 0x28c   : > { %8048 = vst [vmem:[#allocation102_spill] sm:$0xff] %v5931_v3  ;;  %v1630_v45 = vsel %vm534_vm0, %v5611_v42, %v5511_v14  ;;  %v1489_v5 = vadd.f32 %v1473_v59, %v5628_v11  ;;  %v1973_v9 = vadd.f32 3.0, %v1957_v31  ;;  %v1974_v15 = vadd.f32 3.0, %v1958_v16  ;;  %v8055_v11 = vld [vmem:[#allocation51_spill] sm:$0xff] }
 0x28d   : > { %v1487_v40 = vadd.f32 %v1471_v56, %v5576_v53  ;;  %v1488_v24 = vadd.f32 %v1472_v20, %v5626_v52  ;;  %v978_v18 = vmul.f32 %v7946_v47, %v901_v10  ;;  %v1110_v36 = vsel %vm1081_vm7, %v5641_v28, 0.0  ;;  %v5959_v17 = vpop.permute.xlu1 %1617  ;;  %v5961_v2 = vpop.permute.xlu0 %1872  ;;  %v8056_v52 = vld [vmem:[#allocation82_spill] sm:$0xff] }
 0x28e   : > { %8054 = vst [vmem:[#allocation114_spill] sm:$0xff] %v5961_v2  ;;  %v1043_v14 = vadd.f32 %v1027_v48, %v979_v26  ;;  %v1698_v59 = vmul.f32 %v8055_v11, %v1630_v45  ;;  %v1989_v51 = vmax.f32 %v1973_v9, 0.0  ;;  %v1990_v42 = vmax.f32 %v1974_v15, 0.0  ;;  %v8058_v45 = vld [vmem:[#allocation88_spill] sm:$0xff]  ;;  %v8059_v9 = vld [vmem:[#allocation65_spill] sm:$0xff] }
 0x28f   : > { %v1696_v3 = vmul.f32 %v8053_v7, %v1629_v34  ;;  %v1711_v22 = vadd.f32 %v1695_v32, %v1486_v39  ;;  %v1697_v53 = vmul.f32 %v8055_v11, %v1654_v19  ;;  %v1760_v20 = vmul.f32 %v5691_v35, %v8056_v52 }
 0x290   : > { %v1714_v56 = vadd.f32 %v1698_v59, %v1489_v5  ;;  %v1155_v28 = vmul.f32 %v7950_v55, %v1110_v36  ;;  %v2005_v10 = vmin.f32 %v1989_v51, 6.0  ;;  %v2006_v47 = vmin.f32 %v1990_v42, 6.0  ;;  %v8062_v42 = vld [vmem:[#allocation24_spill] sm:$0xff] }
 0x291   : > { %v1712_v12 = vadd.f32 %v1696_v3, %v1487_v40  ;;  %v1713_v2 = vadd.f32 %v1697_v53, %v1488_v24  ;;  %v1042_v48 = vadd.f32 %v5852_v50, %v978_v18  ;;  %v902_v26 = vsel %vm534_vm0, %v5572_v29, %v5649_v38  ;;  %v5973_v34 = vpop.permute.xlu1 %1752  ;;  %v1798_v32 = vpop.permute.xlu0 %1797 }
 0x292   : > { %8057 = vst [vmem:[#allocation116_spill] sm:$0xff] %v5973_v34  ;;  %v1087_v39 = vsel %vm1081_vm7, %v5605_v46, %v5655_v30  ;;  %v1111_v5 = vsel %vm1081_vm7, %v5655_v30, 0.0  ;;  %v1845_v51 = vsel %vm1081_vm7, %v1798_v32, 0.0  ;;  %v2021_v3 = vmul.f32 %v2005_v10, %v1957_v31 }
 0x293   : > { %v1759_v50 = vmul.f32 %v5691_v35, %v8058_v45  ;;  %v1776_v19 = vadd.f32 %v1760_v20, %v1712_v12  ;;  %v1888_v15 = vmul.f32 %v8059_v9, %v1845_v51  ;;  %v2022_v29 = vmul.f32 %v2006_v47, %v1958_v16 }
 0x294   : > { %v1171_v38 = vadd.f32 %v1155_v28, %v1042_v48  ;;  %v980_v40 = vmul.f32 %v8050_v54, %v902_v26  ;;  %v1778_v24 = vadd.f32 %v5818_v6, %v1714_v56  ;;  %v5986_v18 = vmul.f32 0.16666667, %v2021_v3  ;;  %v8063_v48 = vld [vmem:[#allocation33_spill] sm:$0xff] }
 0x295   : > { %v928_v46 = vsel %vm534_vm0, 0.0, %v5665_v4  ;;  %v1904_v30 = vadd.f32 %v1888_v15, %v1776_v19  ;;  %v1796_v36 = vpop.permute.xlu1 %1795  ;;  %v1802_v31 = vpop.permute.xlu0 %1801  ;;  %v5990_v59 = vmul.f32 0.16666667, %v2022_v29  ;;  %v1777_v12 = vadd.f32 %v5831_v1, %v1713_v2 }
 0x296   : > { %8060 = vst [vmem:[#allocation117_spill] sm:$0xff] %v5986_v18  ;;  %v1156_v53 = vmul.f32 %v8062_v42, %v1087_v39  ;;  %v1157_v47 = vmul.f32 %v8062_v42, %v1111_v5  ;;  %v1089_v6 = vsel %vm1081_vm7, %v5647_v25, %v5667_v49  ;;  %v1821_v16 = vsel %vm1081_vm7, %v1796_v36, %v1798_v32 }
 0x297   : > { %8061 = vst [vmem:[#allocation121_spill] sm:$0xff] %v5990_v59  ;;  %v1775_v52 = vadd.f32 %v1759_v50, %v1711_v22  ;;  %v1887_v20 = vmul.f32 %v8059_v9, %v1821_v16  ;;  %v2054_v56 = vadd.f32 %v5990_v59, %v5986_v18  ;;  %v1960_v28 = vadd.f32 %v5841_v62, %v1904_v30  ;;  %v8091_v59 = vld [vmem:[#allocation71_spill] sm:$0xff] }
 0x298   : > { %v1299_v1 = vadd.f32 %v5835_v13, %v1171_v38  ;;  %v1044_v2 = vadd.f32 %v5863_v0, %v980_v40  ;;  %v1240_v10 = vsel %vm534_vm0, 0.0, %v5659_v27  ;;  %v983_v26 = vmul.f32 %v8063_v48, %v928_v46  ;;  %v8064_v0 = vld [vmem:[#allocation47_spill] sm:$0xff] }
 0x299   : > { %v904_v25 = vsel %vm534_vm0, %v5665_v4, %v5653_v61  ;;  %v1903_v22 = vadd.f32 %v1887_v20, %v1775_v52  ;;  %v1846_v32 = vsel %vm1081_vm7, %v1802_v31, 0.0  ;;  %2055 = vadd.xlane.f32.xlu0 %v2054_v56  ;;  %v1800_v39 = vpop.permute.xlu1 %1799  ;;  %v6012_v5 = vpop.permute.xlu0 %1396  ;;  %v1976_v51 = vadd.f32 3.0, %v1960_v28 }
 0x29a   : > { %v1172_v13 = vadd.f32 %v1156_v53, %v1043_v14  ;;  %v1173_v3 = vadd.f32 %v1157_v47, %v1044_v2  ;;  %v1160_v45 = vmul.f32 %v8064_v0, %v1089_v6  ;;  %v1822_v50 = vsel %vm1081_vm7, %v1800_v39, %v1802_v31  ;;  %v8065_v47 = vld [vmem:[#allocation54_spill] sm:$0xff] }
 0x29b   : > { %v1241_v19 = vsel %vm534_vm0, 0.0, %v5663_v8  ;;  %v1113_v61 = vsel %vm1081_vm7, %v5667_v49, 0.0  ;;  %v1959_v4 = vadd.f32 %v5841_v62, %v1903_v22  ;;  %v1992_v15 = vmax.f32 %v1976_v51, 0.0  ;;  %v8068_v22 = vld [vmem:[#allocation86_spill] sm:$0xff] }
 0x29c   : > { %v984_v29 = vmul.f32 %v8063_v48, %v904_v25  ;;  %v1047_v38 = vadd.f32 %v5867_v57, %v983_v26  ;;  %v1890_v14 = vmul.f32 %v5935_v44, %v1846_v32  ;;  %v1889_v40 = vmul.f32 %v5935_v44, %v1822_v50  ;;  %v8099_v48 = vld [vmem:[#allocation87_spill] sm:$0xff] }
 0x29d   : > { %v1217_v46 = vsel %vm534_vm0, %v5663_v8, %v5680_v21  ;;  %v6029_v30 = vadd.f32 %v5734_v60, %v1299_v1  ;;  %v1975_v36 = vadd.f32 3.0, %v1959_v4  ;;  %v6031_v49 = vpop.permute.xlu1 %1394  ;;  %v6033_v31 = vpop.permute.xlu0 %1400  ;;  %v2008_v53 = vmin.f32 %v1992_v15, 6.0  ;;  %v8066_v21 = vld [vmem:[#allocation55_spill] sm:$0xff]  ;;  %v8067_v1 = vld [vmem:[#allocation98_spill] sm:$0xff]  ;;  %v8073_v15 = vld [vmem:[#allocation128_spill] sm:$0xff] }
 0x29e   : > { %v6036_v6 = vmul.f32 %v8065_v47, %v1240_v10  ;;  %v1300_v57 = vadd.f32 %v5848_v23, %v1172_v13  ;;  %v1161_v16 = vmul.f32 %v8064_v0, %v1113_v61  ;;  %v1176_v52 = vadd.f32 %v1160_v45, %v1047_v38  ;;  %v8069_v23 = vld [vmem:[#allocation85_spill] sm:$0xff]  ;;  %v8074_v38 = vld [vmem:[#allocation91_spill] sm:$0xff] }
 0x29f   : > { %v1301_v20 = vadd.f32 %v5855_v33, %v1173_v3  ;;  %v1288_v8 = vmul.f32 %v8066_v21, %v1241_v19  ;;  %v1088_v60 = vsel %vm1081_vm7, %v5624_v63, %v5661_v41  ;;  %v1991_v56 = vmax.f32 %v1975_v36, 0.0  ;;  %v8072_v19 = vld [vmem:[#allocation46_spill] sm:$0xff]  ;;  %v8076_v36 = vld [vmem:[#allocation96_spill] sm:$0xff]  ;;  %v8096_v0 = vld [vmem:[#allocation95_spill] sm:$0xff] }
 0x2a0   : > { %v1048_v2 = vadd.f32 %v8067_v1, %v984_v29  ;;  %v1289_v26 = vmul.f32 %v8066_v21, %v1217_v46  ;;  %v1906_v10 = vadd.f32 %v1890_v14, %v1778_v24  ;;  %v1905_v25 = vadd.f32 %v1889_v40, %v1777_v12  ;;  %v8071_v24 = vld [vmem:[#allocation127_spill] sm:$0xff]  ;;  %v8082_v1 = vld [vmem:[#allocation84_spill] sm:$0xff] }
 0x2a1   : > { %v903_v32 = vsel %vm534_vm0, %v8069_v23, %v8068_v22  ;;  %v1112_v33 = vsel %vm1081_vm7, %v5661_v41, 0.0  ;;  %v6052_v39 = vpop.permute.xlu1 %1398  ;;  %v6054_v51 = vpop.permute.xlu0 %1880  ;;  %v2007_v13 = vmin.f32 %v1991_v56, 6.0  ;;  %v2024_v63 = vmul.f32 %v2008_v53, %v1960_v28  ;;  %v8075_v41 = vld [vmem:[#allocation92_spill] sm:$0xff]  ;;  %v8084_v22 = vld [vmem:[#allocation67_spill] sm:$0xff] }
 0x2a2   : > { %8070 = vst [vmem:[#allocation120_spill] sm:$0xff] %v6054_v51  ;;  %v927_v3 = vsel %vm534_vm0, 0.0, %v8069_v23  ;;  %v1177_v45 = vadd.f32 %v1161_v16, %v1048_v2  ;;  %v1304_v50 = vadd.f32 %v1288_v8, %v1176_v52  ;;  %v1364_v12 = vadd.f32 %v8071_v24, %v1300_v57  ;;  %v8077_v57 = vld [vmem:[#allocation44_spill] sm:$0xff]  ;;  %v8078_v8 = vld [vmem:[#allocation79_spill] sm:$0xff] }
 0x2a3   : > { %v6060_v61 = vmul.f32 %v8072_v19, %v1088_v60  ;;  %v1365_v29 = vadd.f32 %v8073_v15, %v1301_v20  ;;  %v1407_v14 = vsel %vm1081_vm7, %v8075_v41, %v8074_v38  ;;  %v2023_v40 = vmul.f32 %v2007_v13, %v1959_v4  ;;  %v8085_v13 = vld [vmem:[#allocation74_spill] sm:$0xff]  ;;  %v8086_v24 = vld [vmem:[#allocation99_spill] sm:$0xff] }
 0x2a4   : > { %v1159_v46 = vmul.f32 %v8072_v19, %v1112_v33  ;;  %v1305_v28 = vadd.f32 %v1289_v26, %v1177_v45  ;;  %v6068_v53 = vadd.f32 %v8076_v36, %v1905_v25  ;;  %v6071_v16 = vadd.f32 %v8076_v36, %v1906_v10  ;;  %v8083_v10 = vld [vmem:[#allocation66_spill] sm:$0xff]  ;;  %v8100_v19 = vld [vmem:[#allocation89_spill] sm:$0xff] }
 0x2a5   : > { %v1430_v52 = vsel %vm1081_vm7, %v8077_v57, 0.0  ;;  %v1656_v20 = vsel %vm534_vm0, 0.0, %v8078_v8  ;;  %v6077_v60 = vpop.permute.xlu1 %1876  ;;  %v6079_v56 = vmul.f32 0.16666667, %v2023_v40  ;;  %v6081_v4 = vmul.f32 0.16666667, %v2024_v63 }
 0x2a6   : > { %8079 = vst [vmem:[#allocation119_spill] sm:$0xff] %v6077_v60  ;;  %v1216_v2 = vsel %vm534_vm0, %v5659_v27, %v8082_v1  ;;  %v1431_v26 = vsel %vm1081_vm7, %v8074_v38, 0.0  ;;  %v1476_v25 = vmul.f32 %v8083_v10, %v1407_v14  ;;  %v6090_v23 = vadd.f32 %v8084_v22, %v1304_v50  ;;  %v6092_v33 = vpop.permute.xlu0 %931  ;;  %v8087_v38 = vld [vmem:[#allocation57_spill] sm:$0xff]  ;;  %v8088_v14 = vld [vmem:[#allocation63_spill] sm:$0xff] }
 0x2a7   : > { %8080 = vst [vmem:[#allocation113_spill] sm:$0xff] %v6079_v56  ;;  %8081 = vst [vmem:[#allocation115_spill] sm:$0xff] %v6081_v4  ;;  %v1631_v45 = vsel %vm534_vm0, %v8085_v13, %v5933_v37  ;;  %v969_v63 = vmul.f32 %v6092_v33, %v5906_v58  ;;  %v970_v27 = vmul.f32 %v6092_v33, %v8086_v24  ;;  %v1977_v40 = vadd.f32 3.0, %v6068_v53  ;;  %v8089_v37 = vld [vmem:[#allocation70_spill] sm:$0xff]  ;;  %v8090_v58 = vld [vmem:[#allocation73_spill] sm:$0xff] }
 0x2a8   : > { %v2057_v15 = vadd.f32 %v6081_v4, %v6079_v56  ;;  %v1475_v41 = vmul.f32 %v8087_v38, %v1430_v52  ;;  %v1701_v50 = vmul.f32 %v8088_v14, %v1656_v20  ;;  %v1978_v57 = vadd.f32 3.0, %v6071_v16  ;;  %v8092_v52 = vld [vmem:[#allocation108_spill] sm:$0xff] }
 0x2a9   : > { %v1287_v1 = vmul.f32 %v8065_v47, %v1216_v2  ;;  %v6109_v22 = vadd.f32 %v8089_v37, %v1305_v28  ;;  %v1033_v13 = vadd.f32 %v8090_v58, %v969_v63  ;;  %v1034_v24 = vadd.f32 %v8091_v59, %v970_v27  ;;  %v8095_v28 = vld [vmem:[#allocation97_spill] sm:$0xff] }
 0x2aa   : > { %2058 = vadd.xlane.f32.xlu0 %v2057_v15  ;;  %v1477_v4 = vmul.f32 %v8083_v10, %v1431_v26  ;;  %v1492_v56 = vadd.f32 %v1476_v25, %v1364_v12  ;;  %v1700_v18 = vmul.f32 %v8092_v52, %v1631_v45  ;;  %v1632_v20 = vsel %vm534_vm0, %v8078_v8, %v5959_v17  ;;  %v6118_v21 = vpop.permute.xlu1 %1937  ;;  %v6120_v2 = vpop.permute.xlu0 %961  ;;  %v8097_v15 = vld [vmem:[#allocation68_spill] sm:$0xff] }
 0x2ab   : > { %8093 = vst [vmem:[#allocation122_spill] sm:$0xff] %v6118_v21  ;;  %8094 = vst [vmem:[#allocation106_spill] sm:$0xff] %v6120_v2  ;;  %v1162_v37 = vadd.f32 %v8095_v28, %v1033_v13  ;;  %v1163_v63 = vadd.f32 %v8096_v0, %v1034_v24  ;;  %v981_v59 = vmul.f32 %v6120_v2, %v927_v3  ;;  %v1993_v25 = vmax.f32 %v1977_v40, 0.0  ;;  %v8098_v17 = vld [vmem:[#allocation132_spill] sm:$0xff]  ;;  %v8102_v28 = vld [vmem:[#allocation93_spill] sm:$0xff] }
 0x2ac   : > { %v982_v27 = vmul.f32 %v6120_v2, %v903_v32  ;;  %v1491_v12 = vadd.f32 %v1475_v41, %v6029_v30  ;;  %v1717_v26 = vadd.f32 %v1701_v50, %v1492_v56  ;;  %v1994_v45 = vmax.f32 %v1978_v57, 0.0  ;;  %v8101_v13 = vld [vmem:[#allocation112_spill] sm:$0xff]  ;;  %v8103_v24 = vld [vmem:[#allocation118_spill] sm:$0xff]  ;;  %v8105_v40 = vld [vmem:[#allocation23_spill] sm:$0xff] }
 0x2ad   : > { %v1290_v58 = vadd.f32 %v8097_v15, %v1162_v37  ;;  %v1291_v8 = vadd.f32 %v8098_v17, %v1163_v63  ;;  %v1045_v47 = vadd.f32 %v8099_v48, %v981_v59  ;;  %v1765_v0 = vmul.f32 %v8102_v28, %v8101_v13  ;;  %v8106_v37 = vld [vmem:[#allocation27_spill] sm:$0xff]  ;;  %v8109_v15 = vld [vmem:[#allocation124_spill] sm:$0xff] }
 0x2ae   : > { %v1046_v10 = vadd.f32 %v8100_v19, %v982_v27  ;;  %v1766_v3 = vmul.f32 %v8102_v28, %v8103_v24  ;;  %v1716_v32 = vadd.f32 %v1700_v18, %v1491_v12  ;;  %v1702_v30 = vmul.f32 %v8088_v14, %v1632_v20  ;;  %v6136_v56 = vpop.permute.xlu1 %1942  ;;  %v1620_v41 = vpop.permute.xlu0 %1619  ;;  %v8107_v59 = vld [vmem:[#allocation123_spill] sm:$0xff]  ;;  %v8108_v19 = vld [vmem:[#allocation80_spill] sm:$0xff] }
 0x2af   : > { %8104 = vst [vmem:[#allocation82_spill] sm:$0xff] %v6136_v56  ;;  %v1493_v50 = vadd.f32 %v1477_v4, %v1365_v29  ;;  %v1354_v57 = vadd.f32 %v8105_v40, %v1290_v58  ;;  %v1355_v63 = vadd.f32 %v8106_v37, %v1291_v8  ;;  %v6142_v27 = vmul.f32 %v8108_v19, %v8107_v59  ;;  %v8110_v4 = vld [vmem:[#allocation133_spill] sm:$0xff]  ;;  %v8112_v59 = vld [vmem:[#allocation134_spill] sm:$0xff] }
 0x2b0   : > { %v1175_v48 = vadd.f32 %v1159_v46, %v1046_v10  ;;  %v6146_v17 = vmul.f32 %v8108_v19, %v8109_v15  ;;  %v1433_v18 = vsel %vm1081_vm7, %v6033_v31, 0.0  ;;  %v2009_v20 = vmin.f32 %v1993_v25, 6.0  ;;  %v8111_v46 = vld [vmem:[#allocation94_spill] sm:$0xff]  ;;  %v8113_v19 = vld [vmem:[#allocation125_spill] sm:$0xff] }
 0x2b1   : > { %v1174_v12 = vadd.f32 %v6060_v61, %v1045_v47  ;;  %v6151_v29 = vadd.f32 %v1765_v0, %v1717_v26  ;;  %v1482_v58 = vadd.f32 %v8110_v4, %v1354_v57  ;;  %v2010_v8 = vmin.f32 %v1994_v45, 6.0  ;;  %v8114_v61 = vld [vmem:[#allocation109_spill] sm:$0xff] }
 0x2b2   : > { %v1780_v10 = vadd.f32 %v8111_v46, %v1716_v32  ;;  %v1718_v13 = vadd.f32 %v1702_v30, %v1493_v50  ;;  %v1409_v24 = vsel %vm1081_vm7, %v6052_v39, %v6033_v31  ;;  %v1622_v40 = vpop.permute.xlu1 %1621  ;;  %v1624_v37 = vpop.permute.xlu0 %1623  ;;  %v1483_v15 = vadd.f32 %v8112_v59, %v1355_v63  ;;  %v8115_v39 = vld [vmem:[#allocation101_spill] sm:$0xff]  ;;  %v8116_v50 = vld [vmem:[#allocation126_spill] sm:$0xff] }
 0x2b3   : > { %v6161_v25 = vmul.f32 %v5973_v34, %v8113_v19  ;;  %v1432_v47 = vsel %vm1081_vm7, %v6012_v5, 0.0  ;;  %v1481_v26 = vmul.f32 %v8114_v61, %v1433_v18  ;;  %v1303_v45 = vadd.f32 %v1287_v1, %v1175_v48  ;;  %v8117_v18 = vld [vmem:[#allocation104_spill] sm:$0xff]  ;;  %v8119_v46 = vld [vmem:[#allocation78_spill] sm:$0xff] }
 0x2b4   : > { %v1408_v0 = vsel %vm1081_vm7, %v6031_v49, %v6012_v5  ;;  %v1707_v31 = vadd.f32 %v5922_v43, %v1482_v58  ;;  %v1708_v32 = vadd.f32 %v8115_v39, %v1483_v15  ;;  %v2025_v30 = vmul.f32 %v2009_v20, %v6068_v53  ;;  %v8118_v43 = vld [vmem:[#allocation76_spill] sm:$0xff]  ;;  %v8120_v15 = vld [vmem:[#allocation131_spill] sm:$0xff] }
 0x2b5   : > { %v6174_v57 = vmul.f32 %v5973_v34, %v8116_v50  ;;  %v1480_v63 = vmul.f32 %v8114_v61, %v1409_v24  ;;  %v1302_v19 = vadd.f32 %v6036_v6, %v1174_v12  ;;  %v2026_v1 = vmul.f32 %v2010_v8, %v6071_v16  ;;  %v8121_v16 = vld [vmem:[#allocation100_spill] sm:$0xff]  ;;  %v8122_v12 = vld [vmem:[#allocation102_spill] sm:$0xff] }
 0x2b6   : > { %v1782_v48 = vadd.f32 %v1766_v3, %v1718_v13  ;;  %v1479_v4 = vmul.f32 %v8117_v18, %v1432_v47  ;;  %v1626_v5 = vpop.permute.xlu1 %1625  ;;  %v1804_v49 = vpop.permute.xlu0 %1803  ;;  %v1771_v58 = vadd.f32 %v8118_v43, %v1707_v31  ;;  %v1772_v59 = vadd.f32 %v8119_v46, %v1708_v32  ;;  %v8124_v31 = vld [vmem:[#allocation129_spill] sm:$0xff] }
 0x2b7   : > { %v1478_v53 = vmul.f32 %v8117_v18, %v1408_v0  ;;  %v1497_v20 = vadd.f32 %v1481_v26, %v6109_v22  ;;  %v1367_v39 = vadd.f32 %v8120_v15, %v1303_v45  ;;  %v1658_v24 = vsel %vm534_vm0, 0.0, %v1624_v37  ;;  %v8126_v22 = vld [vmem:[#allocation130_spill] sm:$0xff]  ;;  %v8127_v46 = vld [vmem:[#allocation105_spill] sm:$0xff]  ;;  %v8128_v15 = vld [vmem:[#allocation39_spill] sm:$0xff] }
 0x2b8   : > { %v1633_v6 = vsel %vm534_vm0, %v1620_v41, %v1622_v40  ;;  %v1899_v3 = vadd.f32 %v8121_v16, %v1771_v58  ;;  %v1900_v8 = vadd.f32 %v8122_v12, %v1772_v59  ;;  %v6189_v13 = vmul.f32 0.16666667, %v2025_v30  ;;  %v8130_v12 = vld [vmem:[#allocation90_spill] sm:$0xff] }
 0x2b9   : > { %v1496_v47 = vadd.f32 %v1480_v63, %v6090_v23  ;;  %v1366_v32 = vadd.f32 %v8124_v31, %v1302_v19  ;;  %v1657_v0 = vsel %vm534_vm0, 0.0, %v1620_v41  ;;  %v6194_v50 = vmul.f32 0.16666667, %v2026_v1  ;;  %v8129_v41 = vld [vmem:[#allocation83_spill] sm:$0xff] }
 0x2ba   : > { %8123 = vst [vmem:[#allocation88_spill] sm:$0xff] %v6189_v13  ;;  %v1705_v26 = vmul.f32 %v8126_v22, %v1658_v24  ;;  %v1634_v45 = vsel %vm534_vm0, %v1624_v37, %v1626_v5  ;;  %v1806_v43 = vpop.permute.xlu1 %1805  ;;  %v1808_v40 = vpop.permute.xlu0 %1807  ;;  %v1955_v58 = vadd.f32 %v8127_v46, %v1899_v3  ;;  %v1956_v59 = vadd.f32 %v8127_v46, %v1900_v8 }
 0x2bb   : > { %8125 = vst [vmem:[#allocation65_spill] sm:$0xff] %v6194_v50  ;;  %v1495_v30 = vadd.f32 %v1479_v4, %v1367_v39  ;;  %v1704_v16 = vmul.f32 %v8128_v15, %v1633_v6  ;;  %v1823_v23 = vsel %vm1081_vm7, %v1804_v49, %v1806_v43  ;;  %v1847_v63 = vsel %vm1081_vm7, %v1806_v43, 0.0 }
 0x2bc   : > { %v1891_v19 = vmul.f32 %v8129_v41, %v1823_v23  ;;  %v1892_v1 = vmul.f32 %v8129_v41, %v1847_v63  ;;  %v1971_v24 = vadd.f32 3.0, %v1955_v58  ;;  %v6207_v37 = vadd.f32 %v6194_v50, %v6189_v13 }
 0x2bd   : > { %v1494_v5 = vadd.f32 %v1478_v53, %v1366_v32  ;;  %v1703_v3 = vmul.f32 %v8128_v15, %v1657_v0  ;;  %v1706_v4 = vmul.f32 %v8126_v22, %v1634_v45  ;;  %v1972_v39 = vadd.f32 3.0, %v1956_v59  ;;  %v8132_v53 = vld [vmem:[#allocation114_spill] sm:$0xff] }
 0x2be   : > { %v1721_v6 = vadd.f32 %v1705_v26, %v1496_v47  ;;  %v1907_v49 = vadd.f32 %v1891_v19, %v8130_v12  ;;  %v1908_v8 = vadd.f32 %v1892_v1, %v1780_v10  ;;  %v1810_v31 = vpop.permute.xlu1 %1809  ;;  %v6212_v43 = vpop.permute.xlu0 %1947  ;;  %v1987_v23 = vmax.f32 %v1971_v24, 0.0 }
 0x2bf   : > { %8131 = vst [vmem:[#allocation98_spill] sm:$0xff] %v6212_v43  ;;  %v1720_v63 = vadd.f32 %v1704_v16, %v1495_v30  ;;  %v1824_v34 = vsel %vm1081_vm7, %v1808_v40, %v1810_v31  ;;  %v1848_v50 = vsel %vm1081_vm7, %v1810_v31, 0.0  ;;  %v1988_v13 = vmax.f32 %v1972_v39, 0.0 }
 0x2c0   : > { %v1893_v32 = vmul.f32 %v8132_v53, %v1824_v34  ;;  %v1894_v0 = vmul.f32 %v8132_v53, %v1848_v50  ;;  %v2003_v45 = vmin.f32 %v1987_v23, 6.0  ;;  %v1963_v47 = vadd.f32 %v6118_v21, %v1907_v49 }
 0x2c1   : > { %v1719_v26 = vadd.f32 %v1703_v3, %v1494_v5  ;;  %v1722_v19 = vadd.f32 %v1706_v4, %v1497_v20  ;;  %v2004_v10 = vmin.f32 %v1988_v13, 6.0  ;;  %v1964_v1 = vadd.f32 %v6118_v21, %v1908_v8 }
 0x2c2   : > { %v1909_v24 = vadd.f32 %v1893_v32, %v6151_v29  ;;  %v1910_v30 = vadd.f32 %v1894_v0, %v1782_v48  ;;  %v6221_v16 = vpop.permute.xlu1 %1952  ;;  %v1814_v40 = vpop.permute.xlu0 %1813  ;;  %v2019_v12 = vmul.f32 %v2003_v45, %v1955_v58  ;;  %v1979_v39 = vadd.f32 3.0, %v1963_v47 }
 0x2c3   : > { %8133 = vst [vmem:[#allocation86_spill] sm:$0xff] %v6221_v16  ;;  %v1784_v34 = vadd.f32 %v6146_v17, %v1720_v63  ;;  %v1849_v50 = vsel %vm1081_vm7, %v1814_v40, 0.0  ;;  %v2020_v31 = vmul.f32 %v2004_v10, %v1956_v59  ;;  %v1980_v23 = vadd.f32 3.0, %v1964_v1 }
 0x2c4   : > { %v1896_v5 = vmul.f32 %v6077_v60, %v1849_v50  ;;  %v6226_v20 = vmul.f32 0.16666667, %v2019_v12  ;;  %v1995_v13 = vmax.f32 %v1979_v39, 0.0  ;;  %v1965_v3 = vadd.f32 %v6136_v56, %v1909_v24 }
 0x2c5   : > { %v1783_v29 = vadd.f32 %v6142_v27, %v1719_v26  ;;  %v6230_v48 = vmul.f32 0.16666667, %v2020_v31  ;;  %v1996_v4 = vmax.f32 %v1980_v23, 0.0  ;;  %v1966_v58 = vadd.f32 %v6136_v56, %v1910_v30 }
 0x2c6   : > { %8134 = vst [vmem:[#allocation85_spill] sm:$0xff] %v6226_v20  ;;  %v1786_v17 = vadd.f32 %v6174_v57, %v1722_v19  ;;  %v1912_v49 = vadd.f32 %v1896_v5, %v1784_v34  ;;  %v1812_v8 = vpop.permute.xlu1 %1811  ;;  %v1818_v59 = vpop.permute.xlu0 %1817  ;;  %v2011_v63 = vmin.f32 %v1995_v13, 6.0  ;;  %v1981_v32 = vadd.f32 3.0, %v1965_v3 }
 0x2c7   : > { %8135 = vst [vmem:[#allocation127_spill] sm:$0xff] %v6230_v48  ;;  %v1825_v0 = vsel %vm1081_vm7, %v1812_v8, %v1814_v40  ;;  %v1850_v45 = vsel %vm1081_vm7, %v1818_v59, 0.0  ;;  %v2051_v10 = vadd.f32 %v6230_v48, %v6226_v20  ;;  %v2012_v27 = vmin.f32 %v1996_v4, 6.0 }
 0x2c8   : > { %v1895_v26 = vmul.f32 %v6077_v60, %v1825_v0  ;;  %v1898_v24 = vmul.f32 %v6054_v51, %v1850_v45  ;;  %v2027_v30 = vmul.f32 %v2011_v63, %v1963_v47  ;;  %v1982_v12 = vadd.f32 3.0, %v1966_v58  ;;  %v8165_v60 = vld [vmem:[#allocation75_spill] sm:$0xff] }
 0x2c9   : > { %2052 = vadd.xlane.f32.xlu1 %v2051_v10  ;;  %v1785_v57 = vadd.f32 %v6161_v25, %v1721_v6  ;;  %v2028_v19 = vmul.f32 %v2012_v27, %v1964_v1  ;;  %v1997_v39 = vmax.f32 %v1981_v32, 0.0  ;;  %v1968_v34 = vadd.f32 %v6212_v43, %v1912_v49 }
 0x2ca   : > { %v1911_v40 = vadd.f32 %v1895_v26, %v1783_v29  ;;  %v1914_v50 = vadd.f32 %v1898_v24, %v1786_v17  ;;  %v1816_v31 = vpop.permute.xlu1 %1815  ;;  %v6242_v23 = vmul.f32 0.16666667, %v2027_v30  ;;  %v1998_v5 = vmax.f32 %v1982_v12, 0.0 }
 0x2cb   : > { %v1826_v13 = vsel %vm1081_vm7, %v1816_v31, %v1818_v59  ;;  %v6245_v4 = vmul.f32 0.16666667, %v2028_v19  ;;  %v2013_v8 = vmin.f32 %v1997_v39, 6.0  ;;  %v1984_v47 = vadd.f32 3.0, %v1968_v34 }
 0x2cc   : > { %8136 = vst [vmem:[#allocation128_spill] sm:$0xff] %v6242_v23  ;;  %v1967_v63 = vadd.f32 %v6212_v43, %v1911_v40  ;;  %v1897_v25 = vmul.f32 %v6054_v51, %v1826_v13  ;;  %v2014_v6 = vmin.f32 %v1998_v5, 6.0  ;;  %v1970_v1 = vadd.f32 %v6221_v16, %v1914_v50  ;;  %v8164_v51 = vld [vmem:[#allocation69_spill] sm:$0xff] }
 0x2cd   : > { %8137 = vst [vmem:[#allocation91_spill] sm:$0xff] %v6245_v4  ;;  %2061 = vadd.xlane.f32.xlu1 %v6207_v37  ;;  %v2063_v29 = vadd.f32 %v6245_v4, %v6242_v23  ;;  %v2029_v17 = vmul.f32 %v2013_v8, %v1965_v3  ;;  %v2000_v49 = vmax.f32 %v1984_v47, 0.0  ;;  %v8148_v23 = vld [vmem:[#allocation3_spill] sm:$0xff] }
 0x2ce   : > { %v1983_v32 = vadd.f32 3.0, %v1967_v63  ;;  %v1913_v59 = vadd.f32 %v1897_v25, %v1785_v57  ;;  %v2030_v0 = vmul.f32 %v2014_v6, %v1966_v58  ;;  %v1986_v45 = vadd.f32 3.0, %v1970_v1 }
 0x2cf   : > { %2064 = vadd.xlane.f32.xlu0 %v2063_v29  ;;  %v6253_v10 = vmul.f32 0.16666667, %v2029_v17  ;;  %v2016_v27 = vmin.f32 %v2000_v49, 6.0 }
 0x2d0   : > { %v1969_v26 = vadd.f32 %v6221_v16, %v1913_v59  ;;  %v6256_v24 = vmul.f32 0.16666667, %v2030_v0  ;;  %v1999_v30 = vmax.f32 %v1983_v32, 0.0  ;;  %v2002_v12 = vmax.f32 %v1986_v45, 0.0 }
 0x2d1   : > { %8138 = vst [vmem:[#allocation92_spill] sm:$0xff] %v6253_v10  ;;  %v2032_v37 = vmul.f32 %v2016_v27, %v1968_v34 }
 0x2d2   : > { %8139 = vst [vmem:[#allocation44_spill] sm:$0xff] %v6256_v24  ;;  %v1985_v19 = vadd.f32 3.0, %v1969_v26  ;;  %v2066_v3 = vadd.f32 %v6256_v24, %v6253_v10  ;;  %v2015_v39 = vmin.f32 %v1999_v30, 6.0  ;;  %v2018_v40 = vmin.f32 %v2002_v12, 6.0 }
 0x2d3   : > { %v6262_v31 = vmul.f32 0.16666667, %v2032_v37 }
 0x2d4   : > { %2067 = vadd.xlane.f32.xlu1 %v2066_v3  ;;  %v2031_v58 = vmul.f32 %v2015_v39, %v1967_v63  ;;  %v2001_v57 = vmax.f32 %v1985_v19, 0.0  ;;  %v2034_v13 = vmul.f32 %v2018_v40, %v1970_v1  ;;  %v427_v63 = vld [vmem:[%s7507_s5] sm:$0xff] }
 0x2d5   : > { %8141 = vst [vmem:[#allocation84_spill] sm:$0xff] %v6262_v31  ;;  %4212 = vmatprep.mubr.msk.f32.mxu1 %vm2083_vm8, %v427_v63 }
 0x2d6   : > { %v6260_v50 = vmul.f32 0.16666667, %v2031_v58  ;;  %v2017_v5 = vmin.f32 %v2001_v57, 6.0  ;;  %v6268_v25 = vmul.f32 0.16666667, %v2034_v13  ;;  %v428_v13 = vld [vmem:[%s7507_s5 + $0x8] sm:$0xff] }
 0x2d8   : > { %8140 = vst [vmem:[#allocation79_spill] sm:$0xff] %v6260_v50  ;;  %v2069_v8 = vadd.f32 %v6262_v31, %v6260_v50  ;;  %v2033_v47 = vmul.f32 %v2017_v5, %v1969_v26  ;;  %8143 = vst [vmem:[#allocation74_spill] sm:$0xff] %v6268_v25 }
 0x2da   : > { %2070 = vadd.xlane.f32.xlu0 %v2069_v8  ;;  %v6266_v34 = vmul.f32 0.16666667, %v2033_v47  ;;  %v431_v8 = vld [vmem:[%s7509_s7] sm:$0xff]  ;;  %v430_v47 = vld [vmem:[%s7508_s6 + $0x8] sm:$0xff] }
 0x2dc   : > { %8142 = vst [vmem:[#allocation67_spill] sm:$0xff] %v6266_v34  ;;  %v2072_v6 = vadd.f32 %v6268_v25, %v6266_v34 }
 0x2de   : > { %2073 = vadd.xlane.f32.xlu1 %v2072_v6  ;;  %v429_v6 = vld [vmem:[%s7508_s6] sm:$0xff] }
 0x326   : > { %v2056_v1 = vpop.xlane.xlu0 %2055 }
 0x327   : > { %v2076_v17 = vmul.f32 0.00390625, %v2056_v1 }
 0x337   : > { %v2059_v32 = vpop.xlane.xlu0 %2058 }
 0x338   : > { %v2077_v45 = vmul.f32 0.00390625, %v2059_v32  ;;  %v4125_v32 = vld [vmem:[%s4574_s12 + $0x28] sm:$0xff] }
 0x356   : > { %v2053_v29 = vpop.xlane.xlu1 %2052 }
 0x357   : > { %v2075_v49 = vmul.f32 0.00390625, %v2053_v29 }
 0x359   : > { %v4270_v59 = vpack.c.bf16 %v2076_v17, %v2075_v49 }
 0x35a   : > { %v2062_v0 = vpop.xlane.xlu1 %2061 }
 0x35b   : > { %v2078_v27 = vmul.f32 0.00390625, %v2062_v0  ;;  %4271 = vmatprep.subr.bf16.mxu1 %v4270_v59 }
 0x35c   : > { %4273 = vmatpush3.bf16.msra.mxu1 %v4270_v59  ;;  %v2065_v30 = vpop.xlane.xlu0 %2064  ;;  %v4127_v59 = vld [vmem:[%s4574_s12 + $0x38] sm:$0xff] }
 0x35d   : > { %v4274_v26 = vpack.c.bf16 %v2078_v27, %v2077_v45  ;;  %v2079_v37 = vmul.f32 0.00390625, %v2065_v30  ;;  %v4306_v27 = vpack.c.bf16 %v4127_v59, %v4125_v32  ;;  %v4126_v30 = vld [vmem:[%s4574_s12 + $0x30] sm:$0xff] }
 0x35f   : > { %4275 = vmatprep.subr.bf16.mxu1 %v4274_v26 }
 0x360   : > { %4277 = vmatpush3.bf16.msra.mxu1 %v4274_v26  ;;  %v4124_v26 = vld [vmem:[%s4574_s12 + $0x20] sm:$0xff] }
 0x361   : > { %v2068_v12 = vpop.xlane.xlu1 %2067 }
 0x362   : > { %v2080_v19 = vmul.f32 0.00390625, %v2068_v12  ;;  %v432_v12 = vld [vmem:[%s7509_s7 + $0x8] sm:$0xff] }
 0x364   : > { %v4278_v3 = vpack.c.bf16 %v2080_v19, %v2079_v37  ;;  %v4308_v37 = vpack.c.bf16 %v4126_v30, %v4124_v26  ;;  %v433_v19 = vld [vmem:[%s7509_s7 + $0x10] sm:$0xff] }
 0x366   : > { %4279 = vmatprep.subr.bf16.mxu1 %v4278_v3 }
 0x367   : > { %4281 = vmatpush3.bf16.msra.mxu1 %v4278_v3  ;;  %v2071_v39 = vpop.xlane.xlu0 %2070  ;;  %v434_v3 = vld [vmem:[%s7509_s7 + $0x18] sm:$0xff] }
 0x368   : > { %v2081_v58 = vmul.f32 0.00390625, %v2071_v39  ;;  %v435_v39 = vld [vmem:[%s7509_s7 + $0x20] sm:$0xff] }
 0x36b   : > { %v2074_v40 = vpop.xlane.xlu1 %2073 }
 0x36c   : > { %v2082_v57 = vmul.f32 0.00390625, %v2074_v40  ;;  %v436_v40 = vld [vmem:[%s7509_s7 + $0x28] sm:$0xff] }
 0x36e   : > { %v4282_v5 = vpack.c.bf16 %v2082_v57, %v2081_v58  ;;  %v437_v58 = vld [vmem:[%s7509_s7 + $0x30] sm:$0xff]  ;;  %v438_v57 = vld [vmem:[%s7509_s7 + $0x38] sm:$0xff] }
 0x370   : > { %4283 = vmatprep.subr.bf16.mxu1 %v4282_v5 }
 0x371   : > { %4285 = vmatpush3.bf16.msra.mxu1 %v4282_v5  ;;  %v8144_v5 = vmov 0.0  }
 0x374   : > { %4213 = vmatmul.mubr.msk.f32.vlgmr.msra.gmra.mrb[0].mxu1 %vm2083_vm8, %v428_v13  ;;  %v4425_v13 = vld [vmem:[%s7503_s1] sm:$0xff] }
 0x375   : > { %4219 = vmatprep.mubr.msk.f32.mxu1 %vm534_vm0, %v431_v8  ;;  %v4426_v8 = vld [vmem:[%s7503_s1 + $0x8] sm:$0xff] }
 0x447   : > { %v4214_v63 = vpop.f32.mrb[0].mxu1 }
 0x448   : > { %v2162_v1 = vadd.f32 %v4214_v63, %v430_v47  ;;  %v2156_v29 = vpop.f32.mrb[1].mxu1  ;;  %v4427_v47 = vld [vmem:[%s7503_s1 + $0x10] sm:$0xff]  ;;  %v4429_v63 = vld [vmem:[%s7503_s1 + $0x20] sm:$0xff] }
 0x449   : > { %v2157_v17 = vadd.f32 %v2156_v29, %v429_v6  ;;  %v4428_v6 = vld [vmem:[%s7503_s1 + $0x18] sm:$0xff]  ;;  %v4431_v29 = vld [vmem:[%s7503_s1 + $0x30] sm:$0xff] }
 0x44a   : > { %v2166_v49 = vmax.f32 %v2162_v1, 0.0  ;;  %v4430_v1 = vld [vmem:[%s7503_s1 + $0x28] sm:$0xff] }
 0x44b   : > { %v2165_v0 = vmax.f32 %v2157_v17, 0.0  ;;  %v4432_v17 = vld [vmem:[%s7503_s1 + $0x38] sm:$0xff] }
 0x44d   : > { %v4286_v45 = vpack.c.bf16 %v2166_v49, %v2165_v0 }
 0x44f   : > { %4287 = vmatprep.subr.bf16.mxu1 %v4286_v45 }
 0x450   : > { %4289 = vmatpush3.bf16.msra.mxu1 %v4286_v45 }
 0x451   : > { %4307 = vmatprep.subr.bf16.mxu1 %v4306_v27 }
 0x453   : > { %4220 = vmatmul.mubr.msk.f32.vlgmr.msra.gmra.mrb[2].mxu1 %vm534_vm0, %v432_v12 }
 0x454   : > { %4222 = vmatprep.mubr.msk.f32.mxu1 %vm534_vm0, %v433_v19  ;;  %4309 = vmatpush1.bf16.msra.mxu1 %v4308_v37  ;;  %v8145_v37 = vld [vmem:[#allocation19_spill] sm:$0xff] }
 0x457   : > { %4223 = vmatmul.mubr.msk.f32.gmra.mrb[4].mxu1 %vm534_vm0, %v434_v3 }
 0x458   : > { %4225 = vmatprep.mubr.msk.f32.mxu1 %vm534_vm0, %v435_v39 }
 0x45b   : > { %4226 = vmatmul.mubr.msk.f32.gmra.mrb[6].mxu1 %vm534_vm0, %v436_v40 }
 0x45c   : > { %4228 = vmatprep.mubr.msk.f32.mxu1 %vm534_vm0, %v437_v58 }
 0x45f   : > { %4229 = vmatmul.mubr.msk.f32.gmra.mrb[8].mxu1 %vm534_vm0, %v438_v57 }
 0x460   : > { %2554 = vmatprep.mubr.f32.mxu1 %v8144_v5 }
 0x463   : > { %4128 = vmatmul.mubr.msk.f32.vlgmr.msra.gmra.mrb[10].mxu1 %vm534_vm0, %v4425_v13 }
 0x464   : > { %2560 = vmatprep.mubr.f32.mxu1 %v8144_v5 }
 0x467   : > { %4129 = vmatmul.mubr.msk.f32.gmra.mrb[12].mxu1 %vm534_vm0, %v4426_v8 }
 0x468   : > { %2566 = vmatprep.mubr.f32.mxu1 %v8144_v5 }
 0x46b   : > { %4130 = vmatmul.mubr.msk.f32.gmra.mrb[14].mxu1 %vm534_vm0, %v4427_v47 }
 0x46c   : > { %2572 = vmatprep.mubr.f32.mxu1 %v8144_v5 }
 0x46f   : > { %4131 = vmatmul.mubr.msk.f32.gmra.mrb[16].mxu1 %vm534_vm0, %v4428_v6 }
 0x470   : > { %2578 = vmatprep.mubr.f32.mxu1 %v8144_v5 }
 0x473   : > { %4132 = vmatmul.mubr.msk.f32.gmra.mrb[18].mxu1 %vm534_vm0, %v4429_v63  ;;  %v8146_v63 = vld [vmem:[#allocation21_spill] sm:$0xff] }
 0x474   : > { %2584 = vmatprep.mubr.f32.mxu1 %v8144_v5 }
 0x477   : > { %4133 = vmatmul.mubr.msk.f32.gmra.mrb[20].mxu1 %vm534_vm0, %v4430_v1 }
 0x478   : > { %2590 = vmatprep.mubr.f32.mxu1 %v8144_v5 }
 0x47b   : > { %4134 = vmatmul.mubr.msk.f32.gmra.mrb[22].mxu1 %vm534_vm0, %v4431_v29 }
 0x47c   : > { %2596 = vmatprep.mubr.f32.mxu1 %v8144_v5 }
 0x47f   : > { %4135 = vmatmul.mubr.msk.f32.gmra.mrb[24].mxu1 %vm534_vm0, %v4432_v17 }
 0x480   : > { %4009 = vmatprep.mubr.f32.mxu1 %v8144_v5 }
 0x526   : > { %v6363_v49 = vpop.f32.mrb[2].mxu1 }
 0x527   : > { %v6365_v32 = vpop.f32.mrb[3].mxu1 }
 0x52a   : > { %v6367_v59 = vpop.f32.mrb[4].mxu1 }
 0x52b   : > { %v6369_v0 = vpop.f32.mrb[5].mxu1 }
 0x52e   : > { %v6371_v45 = vpop.f32.mrb[6].mxu1 }
 0x52f   : > { %v6373_v27 = vpop.f32.mrb[7].mxu1 }
 0x532   : > { %v6375_v26 = vpop.f32.mrb[8].mxu1 }
 0x533   : > { %v6377_v30 = vpop.f32.mrb[9].mxu1 }
 0x536   : > { %v2556_v12 = vpop.f32.mrb[10].mxu1 }
 0x537   : > { %v2557_v19 = vadd.f32 %v2556_v12, %v8145_v37  ;;  %v2558_v3 = vpop.f32.mrb[11].mxu1 }
 0x538   : > { %v2559_v39 = vadd.f32 %v2558_v3, %v8145_v37 }
 0x539   : > { %v2603_v40 = vadd.f32 3.0, %v2557_v19 }
 0x53a   : > { %v2604_v58 = vadd.f32 3.0, %v2559_v39  ;;  %v2562_v57 = vpop.f32.mrb[12].mxu1 }
 0x53b   : > { %v2619_v13 = vmax.f32 %v2603_v40, 0.0  ;;  %v2564_v8 = vpop.f32.mrb[13].mxu1  ;;  %v2563_v1 = vadd.f32 %v2562_v57, %v8146_v63 }
 0x53c   : > { %v2620_v47 = vmax.f32 %v2604_v58, 0.0  ;;  %v2565_v29 = vadd.f32 %v2564_v8, %v8146_v63  ;;  %v8147_v63 = vld [vmem:[#allocation2_spill] sm:$0xff] }
 0x53d   : > { %v2635_v6 = vmin.f32 %v2619_v13, 6.0  ;;  %v2605_v34 = vadd.f32 3.0, %v2563_v1 }
 0x53e   : > { %v2636_v17 = vmin.f32 %v2620_v47, 6.0  ;;  %v2568_v5 = vpop.f32.mrb[14].mxu1  ;;  %v2606_v37 = vadd.f32 3.0, %v2565_v29 }
 0x53f   : > { %v2651_v31 = vmul.f32 %v2635_v6, %v2557_v19  ;;  %v2570_v50 = vpop.f32.mrb[15].mxu1  ;;  %v2621_v58 = vmax.f32 %v2605_v34, 0.0 }
 0x540   : > { %v2652_v12 = vmul.f32 %v2636_v17, %v2559_v39  ;;  %v2622_v57 = vmax.f32 %v2606_v37, 0.0  ;;  %v2569_v17 = vadd.f32 %v2568_v5, %v8147_v63 }
 0x541   : > { %v6383_v25 = vmul.f32 0.16666667, %v2651_v31  ;;  %v2637_v31 = vmin.f32 %v2621_v58, 6.0 }
 0x542   : > { %v2574_v3 = vpop.f32.mrb[16].mxu1  ;;  %v6389_v40 = vmul.f32 0.16666667, %v2652_v12  ;;  %v2638_v39 = vmin.f32 %v2622_v57, 6.0  ;;  %v2571_v12 = vadd.f32 %v2570_v50, %v8147_v63 }
 0x543   : > { %v2576_v24 = vpop.f32.mrb[17].mxu1  ;;  %3227 = vrot.lane.b32.xlu1 %v6383_v25, %s4482_s29  ;;  %2699 = vrot.lane.b32.xlu0 %v6383_v25, %s4480_s27  ;;  %v2653_v34 = vmul.f32 %v2637_v31, %v2563_v1  ;;  %v2607_v1 = vadd.f32 3.0, %v2569_v17  ;;  %v2575_v48 = vadd.f32 %v2574_v3, %v8148_v23 }
 0x544   : > { %v2654_v6 = vmul.f32 %v2638_v39, %v2565_v29  ;;  %v2608_v29 = vadd.f32 3.0, %v2571_v12 }
 0x545   : > { %v6413_v57 = vmul.f32 0.16666667, %v2653_v34  ;;  %v2623_v50 = vmax.f32 %v2607_v1, 0.0  ;;  %v2577_v1 = vadd.f32 %v2576_v24, %v8148_v23 }
 0x546   : > { %v2580_v13 = vpop.f32.mrb[18].mxu1  ;;  %v6415_v10 = vmul.f32 0.16666667, %v2654_v6  ;;  %v2624_v39 = vmax.f32 %v2608_v29, 0.0 }
 0x547   : > { %v2582_v19 = vpop.f32.mrb[19].mxu1  ;;  %3003 = vrot.lane.b32.xlu1 %v6383_v25, %s4479_s26  ;;  %3229 = vrot.lane.b32.xlu0 %v6389_v40, %s4482_s29  ;;  %v2639_v34 = vmin.f32 %v2623_v50, 6.0  ;;  %v2610_v20 = vadd.f32 3.0, %v2577_v1 }
 0x548   : > { %v2640_v6 = vmin.f32 %v2624_v39, 6.0  ;;  %v2609_v39 = vadd.f32 3.0, %v2575_v48 }
 0x549   : > { %v2655_v63 = vmul.f32 %v2639_v34, %v2569_v17  ;;  %v2626_v23 = vmax.f32 %v2610_v20, 0.0  ;;  %v8149_v34 = vld [vmem:[#allocation25_spill] sm:$0xff] }
 0x54a   : > { %v6395_v8 = vpop.f32.mrb[20].mxu1  ;;  %v2656_v4 = vmul.f32 %v2640_v6, %v2571_v12  ;;  %v2625_v3 = vmax.f32 %v2609_v39, 0.0  ;;  %v2581_v6 = vadd.f32 %v2580_v13, %v8149_v34  ;;  %v2583_v20 = vadd.f32 %v2582_v19, %v8149_v34 }
 0x54b   : > { %v6397_v47 = vpop.f32.mrb[21].mxu1  ;;  %3131 = vrot.lane.b32.xlu1 %v6383_v25, %s4481_s28  ;;  %3005 = vrot.lane.b32.xlu0 %v6389_v40, %s4479_s26  ;;  %v6439_v29 = vmul.f32 0.16666667, %v2655_v63  ;;  %v2642_v17 = vmin.f32 %v2626_v23, 6.0 }
 0x54c   : > { %v6441_v50 = vmul.f32 0.16666667, %v2656_v4  ;;  %v2641_v24 = vmin.f32 %v2625_v3, 6.0  ;;  %v2611_v3 = vadd.f32 3.0, %v2581_v6  ;;  %v2612_v23 = vadd.f32 3.0, %v2583_v20 }
 0x54d   : > { %v2658_v12 = vmul.f32 %v2642_v17, %v2577_v1 }
 0x54e   : > { %v6405_v37 = vpop.f32.mrb[22].mxu1  ;;  %v2657_v4 = vmul.f32 %v2641_v24, %v2575_v48  ;;  %v2627_v48 = vmax.f32 %v2611_v3, 0.0  ;;  %v2628_v13 = vmax.f32 %v2612_v23, 0.0 }
 0x54f   : > { %v6407_v58 = vpop.f32.mrb[23].mxu1  ;;  %2701 = vrot.lane.b32.xlu1 %v6389_v40, %s4480_s27  ;;  %3133 = vrot.lane.b32.xlu0 %v6389_v40, %s4481_s28  ;;  %v6463_v39 = vmul.f32 0.16666667, %v2658_v12 }
 0x550   : > { %v6461_v63 = vmul.f32 0.16666667, %v2657_v4  ;;  %v2643_v19 = vmin.f32 %v2627_v48, 6.0  ;;  %v2644_v1 = vmin.f32 %v2628_v13, 6.0  ;;  %v8152_v4 = vld [vmem:[#allocation4_spill] sm:$0xff] }
 0x551   : > { %8151 = vst [vmem:[#allocation70_spill] sm:$0xff] %v6463_v39  ;;  %v2587_v12 = vadd.f32 %v6395_v8, %v8152_v4  ;;  %v2589_v34 = vadd.f32 %v6397_v47, %v8152_v4 }
 0x552   : > { %v6417_v31 = vpop.f32.mrb[24].mxu1  ;;  %8150 = vst [vmem:[#allocation99_spill] sm:$0xff] %v6461_v63  ;;  %v2659_v24 = vmul.f32 %v2643_v19, %v2581_v6  ;;  %v2660_v17 = vmul.f32 %v2644_v1, %v2583_v20 }
 0x553   : > { %v6419_v5 = vpop.f32.mrb[25].mxu1  ;;  %2703 = vrot.lane.b32.xlu1 %v6413_v57, %s4480_s27  ;;  %2705 = vrot.lane.b32.xlu0 %v6415_v10, %s4480_s27  ;;  %v2613_v48 = vadd.f32 3.0, %v2587_v12  ;;  %v2614_v13 = vadd.f32 3.0, %v2589_v34 }
 0x554   : > { %v6485_v3 = vmul.f32 0.16666667, %v2659_v24  ;;  %v6487_v23 = vmul.f32 0.16666667, %v2660_v17  ;;  %v8155_v24 = vld [vmem:[#allocation28_spill] sm:$0xff] }
 0x555   : > { %v2629_v8 = vmax.f32 %v2613_v48, 0.0  ;;  %v2630_v47 = vmax.f32 %v2614_v13, 0.0  ;;  %v2593_v17 = vadd.f32 %v6405_v37, %v8155_v24  ;;  %v2595_v4 = vadd.f32 %v6407_v58, %v8155_v24 }
 0x556   : > { %8153 = vst [vmem:[#allocation73_spill] sm:$0xff] %v6485_v3  ;;  %8154 = vst [vmem:[#allocation71_spill] sm:$0xff] %v6487_v23 }
 0x557   : > { %3231 = vrot.lane.b32.xlu1 %v6413_v57, %s4482_s29  ;;  %3233 = vrot.lane.b32.xlu0 %v6415_v10, %s4482_s29  ;;  %v2645_v6 = vmin.f32 %v2629_v8, 6.0  ;;  %v2646_v20 = vmin.f32 %v2630_v47, 6.0  ;;  %v2615_v8 = vadd.f32 3.0, %v2593_v17  ;;  %v2616_v47 = vadd.f32 3.0, %v2595_v4 }
 0x559   : > { %v2661_v19 = vmul.f32 %v2645_v6, %v2587_v12  ;;  %v2662_v1 = vmul.f32 %v2646_v20, %v2589_v34  ;;  %v2631_v37 = vmax.f32 %v2615_v8, 0.0  ;;  %v2632_v58 = vmax.f32 %v2616_v47, 0.0 }
 0x55b   : > { %3007 = vrot.lane.b32.xlu1 %v6413_v57, %s4479_s26  ;;  %3009 = vrot.lane.b32.xlu0 %v6415_v10, %s4479_s26  ;;  %v6509_v48 = vmul.f32 0.16666667, %v2661_v19  ;;  %v6511_v13 = vmul.f32 0.16666667, %v2662_v1  ;;  %v2647_v12 = vmin.f32 %v2631_v37, 6.0  ;;  %v2648_v34 = vmin.f32 %v2632_v58, 6.0 }
 0x55c   : > { %v8158_v19 = vld [vmem:[#allocation5_spill] sm:$0xff] }
 0x55d   : > { %8156 = vst [vmem:[#allocation97_spill] sm:$0xff] %v6509_v48  ;;  %8157 = vst [vmem:[#allocation95_spill] sm:$0xff] %v6511_v13  ;;  %v2663_v6 = vmul.f32 %v2647_v12, %v2593_v17  ;;  %v2664_v20 = vmul.f32 %v2648_v34, %v2595_v4  ;;  %v2599_v1 = vadd.f32 %v6417_v31, %v8158_v19 }
 0x55e   : > { %v2601_v24 = vadd.f32 %v6419_v5, %v8158_v19 }
 0x55f   : > { %3135 = vrot.lane.b32.xlu1 %v6413_v57, %s4481_s28  ;;  %3137 = vrot.lane.b32.xlu0 %v6415_v10, %s4481_s28  ;;  %v6533_v8 = vmul.f32 0.16666667, %v2663_v6  ;;  %v6535_v47 = vmul.f32 0.16666667, %v2664_v20  ;;  %v2617_v37 = vadd.f32 3.0, %v2599_v1 }
 0x560   : > { %v2618_v58 = vadd.f32 3.0, %v2601_v24 }
 0x561   : > { %8159 = vst [vmem:[#allocation68_spill] sm:$0xff] %v6533_v8  ;;  %8160 = vst [vmem:[#allocation132_spill] sm:$0xff] %v6535_v47  ;;  %v2633_v31 = vmax.f32 %v2617_v37, 0.0 }
 0x562   : > { %v2634_v5 = vmax.f32 %v2618_v58, 0.0 }
 0x563   : > { %2707 = vrot.lane.b32.xlu1 %v6439_v29, %s4480_s27  ;;  %2709 = vrot.lane.b32.xlu0 %v6441_v50, %s4480_s27  ;;  %v2649_v17 = vmin.f32 %v2633_v31, 6.0 }
 0x564   : > { %v2650_v4 = vmin.f32 %v2634_v5, 6.0 }
 0x565   : > { %v2665_v12 = vmul.f32 %v2649_v17, %v2599_v1  ;;  %v8163_v17 = vld [vmem:[#allocation72_spill] sm:$0xff] }
 0x566   : > { %v2666_v34 = vmul.f32 %v2650_v4, %v2601_v24 }
 0x567   : > { %3235 = vrot.lane.b32.xlu1 %v6439_v29, %s4482_s29  ;;  %3237 = vrot.lane.b32.xlu0 %v6441_v50, %s4482_s29  ;;  %v6553_v6 = vmul.f32 0.16666667, %v2665_v12 }
 0x568   : > { %v6555_v20 = vmul.f32 0.16666667, %v2666_v34 }
 0x569   : > { %8161 = vst [vmem:[#allocation87_spill] sm:$0xff] %v6553_v6 }
 0x56a   : > { %8162 = vst [vmem:[#allocation89_spill] sm:$0xff] %v6555_v20 }
 0x56b   : > { %3011 = vrot.lane.b32.xlu1 %v6439_v29, %s4479_s26  ;;  %3013 = vrot.lane.b32.xlu0 %v6441_v50, %s4479_s26 }
 0x56f   : > { %3139 = vrot.lane.b32.xlu1 %v6439_v29, %s4481_s28  ;;  %3141 = vrot.lane.b32.xlu0 %v6441_v50, %s4481_s28 }
 0x573   : > { %2711 = vrot.lane.b32.xlu1 %v6461_v63, %s4480_s27  ;;  %2713 = vrot.lane.b32.xlu0 %v6463_v39, %s4480_s27 }
 0x577   : > { %3239 = vrot.lane.b32.xlu1 %v6461_v63, %s4482_s29  ;;  %3241 = vrot.lane.b32.xlu0 %v6463_v39, %s4482_s29 }
 0x57b   : > { %3015 = vrot.lane.b32.xlu1 %v6461_v63, %s4479_s26  ;;  %3017 = vrot.lane.b32.xlu0 %v6463_v39, %s4479_s26 }
 0x57f   : > { %3143 = vrot.lane.b32.xlu1 %v6461_v63, %s4481_s28  ;;  %3145 = vrot.lane.b32.xlu0 %v6463_v39, %s4481_s28 }
 0x583   : > { %2715 = vrot.lane.b32.xlu1 %v6485_v3, %s4480_s27  ;;  %2717 = vrot.lane.b32.xlu0 %v6487_v23, %s4480_s27 }
 0x587   : > { %3243 = vrot.lane.b32.xlu1 %v6485_v3, %s4482_s29  ;;  %3245 = vrot.lane.b32.xlu0 %v6487_v23, %s4482_s29 }
 0x58b   : > { %3019 = vrot.lane.b32.xlu1 %v6485_v3, %s4479_s26  ;;  %3021 = vrot.lane.b32.xlu0 %v6487_v23, %s4479_s26 }
 0x58f   : > { %3147 = vrot.lane.b32.xlu1 %v6485_v3, %s4481_s28  ;;  %3149 = vrot.lane.b32.xlu0 %v6487_v23, %s4481_s28 }
 0x593   : > { %2719 = vrot.lane.b32.xlu1 %v6509_v48, %s4480_s27  ;;  %2721 = vrot.lane.b32.xlu0 %v6511_v13, %s4480_s27 }
 0x597   : > { %3247 = vrot.lane.b32.xlu1 %v6509_v48, %s4482_s29  ;;  %3249 = vrot.lane.b32.xlu0 %v6511_v13, %s4482_s29 }
 0x59b   : > { %3023 = vrot.lane.b32.xlu1 %v6509_v48, %s4479_s26  ;;  %3025 = vrot.lane.b32.xlu0 %v6511_v13, %s4479_s26 }
 0x59f   : > { %3151 = vrot.lane.b32.xlu1 %v6509_v48, %s4481_s28  ;;  %3153 = vrot.lane.b32.xlu0 %v6511_v13, %s4481_s28 }
 0x5a3   : > { %2723 = vrot.lane.b32.xlu1 %v6533_v8, %s4480_s27  ;;  %2725 = vrot.lane.b32.xlu0 %v6535_v47, %s4480_s27 }
 0x5a7   : > { %3251 = vrot.lane.b32.xlu1 %v6533_v8, %s4482_s29  ;;  %3253 = vrot.lane.b32.xlu0 %v6535_v47, %s4482_s29 }
 0x5ab   : > { %3027 = vrot.lane.b32.xlu1 %v6533_v8, %s4479_s26  ;;  %3029 = vrot.lane.b32.xlu0 %v6535_v47, %s4479_s26 }
 0x5af   : > { %3155 = vrot.lane.b32.xlu1 %v6533_v8, %s4481_s28  ;;  %3157 = vrot.lane.b32.xlu0 %v6535_v47, %s4481_s28 }
 0x5b3   : > { %2727 = vrot.lane.b32.xlu1 %v6553_v6, %s4480_s27  ;;  %2729 = vrot.lane.b32.xlu0 %v6555_v20, %s4480_s27 }
 0x5b5   : > { %v3228_v19 = vpop.permute.xlu1 %3227  ;;  %v2700_v37 = vpop.permute.xlu0 %2699 }
 0x5b6   : > { %v2755_v5 = vsel %vm800_vm3, 0.0, %v2700_v37 }
 0x5b7   : > { %3255 = vrot.lane.b32.xlu1 %v6553_v6, %s4482_s29  ;;  %3257 = vrot.lane.b32.xlu0 %v6555_v20, %s4482_s29  ;;  %v6581_v4 = vmul.f32 %v8163_v17, %v2755_v5 }
 0x5b9   : > { %v6565_v1 = vpop.permute.xlu1 %3003  ;;  %v3230_v24 = vpop.permute.xlu0 %3229 }
 0x5ba   : > { %v3283_v5 = vsel %vm1530_vm5, %v3230_v24, 0.0 }
 0x5bb   : > { %3031 = vrot.lane.b32.xlu1 %v6553_v6, %s4479_s26  ;;  %3033 = vrot.lane.b32.xlu0 %v6555_v20, %s4479_s26 }
 0x5bd   : > { %v6571_v58 = vpop.permute.xlu1 %3131  ;;  %v6573_v31 = vpop.permute.xlu0 %3005 }
 0x5bf   : > { %3159 = vrot.lane.b32.xlu1 %v6553_v6, %s4481_s28  ;;  %3161 = vrot.lane.b32.xlu0 %v6555_v20, %s4481_s28  ;;  %v3259_v20 = vsel %vm1530_vm5, %v3228_v19, %v3230_v24  ;;  %v8166_v6 = vld [vmem:[#allocation77_spill] sm:$0xff] }
 0x5c0   : > { %v6603_v15 = vmul.f32 %v8166_v6, %v3283_v5 }
 0x5c1   : > { %v2702_v12 = vpop.permute.xlu1 %2701  ;;  %v6583_v34 = vpop.permute.xlu0 %3133 }
 0x5c2   : > { %v2731_v16 = vsel %vm800_vm3, %v2700_v37, %v2702_v12  ;;  %v6598_v37 = vmul.f32 %v8165_v60, %v3259_v20 }
 0x5c3   : > { %v6587_v43 = vmul.f32 %v8164_v51, %v2731_v16  ;;  %2795 = vrot.lane.b32.xlu1 %v6581_v4, %s4479_s26 }
 0x5c5   : > { %v2704_v22 = vpop.permute.xlu1 %2703  ;;  %2797 = vrot.lane.b32.xlu0 %v6587_v43, %s4479_s26  ;;  %v2706_v61 = vpop.permute.xlu0 %2705 }
 0x5c6   : > { %v2756_v20 = vsel %vm800_vm3, 0.0, %v2704_v22  ;;  %v2732_v47 = vsel %vm800_vm3, %v2704_v22, %v2706_v61 }
 0x5c7   : > { %2907 = vrot.lane.b32.xlu1 %v6581_v4, %s4481_s28  ;;  %v6618_v5 = vmul.f32 %v8163_v17, %v2756_v20  ;;  %v6627_v56 = vmul.f32 %v8164_v51, %v2732_v47 }
 0x5c9   : > { %v3232_v16 = vpop.permute.xlu1 %3231  ;;  %2909 = vrot.lane.b32.xlu0 %v6587_v43, %s4481_s28  ;;  %v3234_v12 = vpop.permute.xlu0 %3233 }
 0x5ca   : > { %v3260_v22 = vsel %vm1530_vm5, %v3232_v16, %v3234_v12  ;;  %v3284_v20 = vsel %vm1530_vm5, %v3234_v12, 0.0 }
 0x5cb   : > { %3323 = vrot.lane.b32.xlu1 %v6598_v37, %s4479_s26  ;;  %v6638_v53 = vmul.f32 %v8165_v60, %v3260_v22  ;;  %v6643_v28 = vmul.f32 %v8166_v6, %v3284_v20 }
 0x5cd   : > { %v6607_v19 = vpop.permute.xlu1 %3007  ;;  %3325 = vrot.lane.b32.xlu0 %v6603_v15, %s4479_s26  ;;  %v6611_v24 = vpop.permute.xlu0 %3009 }
 0x5cf   : > { %3451 = vrot.lane.b32.xlu1 %v6598_v37, %s4481_s28 }
 0x5d1   : > { %v6620_v18 = vpop.permute.xlu1 %3135  ;;  %3453 = vrot.lane.b32.xlu0 %v6603_v15, %s4481_s28  ;;  %v6624_v8 = vpop.permute.xlu0 %3137 }
 0x5d3   : > { %2799 = vrot.lane.b32.xlu1 %v6618_v5, %s4479_s26 }
 0x5d5   : > { %v2708_v2 = vpop.permute.xlu1 %2707  ;;  %2801 = vrot.lane.b32.xlu0 %v6627_v56, %s4479_s26  ;;  %v2710_v61 = vpop.permute.xlu0 %2709 }
 0x5d6   : > { %v2757_v22 = vsel %vm800_vm3, 0.0, %v2708_v2  ;;  %v2733_v13 = vsel %vm800_vm3, %v2708_v2, %v2710_v61 }
 0x5d7   : > { %2911 = vrot.lane.b32.xlu1 %v6618_v5, %s4481_s28  ;;  %v6658_v20 = vmul.f32 %v8163_v17, %v2757_v22  ;;  %v6667_v21 = vmul.f32 %v8164_v51, %v2733_v13 }
 0x5d9   : > { %v3236_v47 = vpop.permute.xlu1 %3235  ;;  %2913 = vrot.lane.b32.xlu0 %v6627_v56, %s4481_s28  ;;  %v3238_v14 = vpop.permute.xlu0 %3237 }
 0x5da   : > { %v3261_v61 = vsel %vm1530_vm5, %v3236_v47, %v3238_v14  ;;  %v3285_v22 = vsel %vm1530_vm5, %v3238_v14, 0.0 }
 0x5db   : > { %3327 = vrot.lane.b32.xlu1 %v6638_v53, %s4479_s26  ;;  %v6678_v41 = vmul.f32 %v8165_v60, %v3261_v61  ;;  %v6683_v38 = vmul.f32 %v8166_v6, %v3285_v22 }
 0x5dd   : > { %v6647_v16 = vpop.permute.xlu1 %3011  ;;  %3329 = vrot.lane.b32.xlu0 %v6643_v28, %s4479_s26  ;;  %v6651_v12 = vpop.permute.xlu0 %3013 }
 0x5df   : > { %3455 = vrot.lane.b32.xlu1 %v6638_v53, %s4481_s28 }
 0x5e1   : > { %v6660_v48 = vpop.permute.xlu1 %3139  ;;  %3457 = vrot.lane.b32.xlu0 %v6643_v28, %s4481_s28  ;;  %v6664_v42 = vpop.permute.xlu0 %3141 }
 0x5e3   : > { %2803 = vrot.lane.b32.xlu1 %v6658_v20, %s4479_s26 }
 0x5e5   : > { %v2712_v54 = vpop.permute.xlu1 %2711  ;;  %2805 = vrot.lane.b32.xlu0 %v6667_v21, %s4479_s26  ;;  %v2714_v2 = vpop.permute.xlu0 %2713 }
 0x5e6   : > { %v2758_v61 = vsel %vm800_vm3, 0.0, %v2712_v54  ;;  %v2734_v23 = vsel %vm800_vm3, %v2712_v54, %v2714_v2 }
 0x5e7   : > { %2915 = vrot.lane.b32.xlu1 %v6658_v20, %s4481_s28  ;;  %v6698_v22 = vmul.f32 %v8163_v17, %v2758_v61  ;;  %v6707_v36 = vmul.f32 %v8164_v51, %v2734_v23 }
 0x5e9   : > { %v3240_v13 = vpop.permute.xlu1 %3239  ;;  %2917 = vrot.lane.b32.xlu0 %v6667_v21, %s4481_s28  ;;  %v3242_v52 = vpop.permute.xlu0 %3241  ;;  %8171 = vst [vmem:[#allocation123_spill] sm:$0xff] %v6707_v36 }
 0x5ea   : > { %v3262_v2 = vsel %vm1530_vm5, %v3240_v13, %v3242_v52  ;;  %v3286_v61 = vsel %vm1530_vm5, %v3242_v52, 0.0 }
 0x5eb   : > { %3331 = vrot.lane.b32.xlu1 %v6678_v41, %s4479_s26  ;;  %v6718_v11 = vmul.f32 %v8165_v60, %v3262_v2  ;;  %v6723_v63 = vmul.f32 %v8166_v6, %v3286_v61 }
 0x5ed   : > { %v6687_v47 = vpop.permute.xlu1 %3015  ;;  %3333 = vrot.lane.b32.xlu0 %v6683_v38, %s4479_s26  ;;  %v6691_v14 = vpop.permute.xlu0 %3017  ;;  %8172 = vst [vmem:[#allocation124_spill] sm:$0xff] %v6718_v11  ;;  %8173 = vst [vmem:[#allocation133_spill] sm:$0xff] %v6723_v63 }
 0x5ee   : > { %8167 = vst [vmem:[#allocation112_spill] sm:$0xff] %v6687_v47  ;;  %8168 = vst [vmem:[#allocation118_spill] sm:$0xff] %v6691_v14 }
 0x5ef   : > { %3459 = vrot.lane.b32.xlu1 %v6678_v41, %s4481_s28 }
 0x5f1   : > { %v6700_v3 = vpop.permute.xlu1 %3143  ;;  %3461 = vrot.lane.b32.xlu0 %v6683_v38, %s4481_s28  ;;  %v6704_v55 = vpop.permute.xlu0 %3145 }
 0x5f2   : > { %8169 = vst [vmem:[#allocation23_spill] sm:$0xff] %v6700_v3  ;;  %8170 = vst [vmem:[#allocation27_spill] sm:$0xff] %v6704_v55 }
 0x5f3   : > { %2807 = vrot.lane.b32.xlu1 %v6698_v22, %s4479_s26 }
 0x5f5   : > { %v2716_v44 = vpop.permute.xlu1 %2715  ;;  %2809 = vrot.lane.b32.xlu0 %v6707_v36, %s4479_s26  ;;  %v2718_v54 = vpop.permute.xlu0 %2717 }
 0x5f6   : > { %v2759_v2 = vsel %vm800_vm3, 0.0, %v2716_v44  ;;  %v2735_v3 = vsel %vm800_vm3, %v2716_v44, %v2718_v54 }
 0x5f7   : > { %2919 = vrot.lane.b32.xlu1 %v6698_v22, %s4481_s28  ;;  %v6738_v61 = vmul.f32 %v8163_v17, %v2759_v2  ;;  %v6747_v62 = vmul.f32 %v8164_v51, %v2735_v3 }
 0x5f9   : > { %v3244_v23 = vpop.permute.xlu1 %3243  ;;  %2921 = vrot.lane.b32.xlu0 %v6707_v36, %s4481_s28  ;;  %v3246_v39 = vpop.permute.xlu0 %3245  ;;  %8176 = vst [vmem:[#allocation125_spill] sm:$0xff] %v6738_v61  ;;  %8179 = vst [vmem:[#allocation76_spill] sm:$0xff] %v6747_v62 }
 0x5fa   : > { %v3263_v54 = vsel %vm1530_vm5, %v3244_v23, %v3246_v39  ;;  %v3287_v2 = vsel %vm1530_vm5, %v3246_v39, 0.0 }
 0x5fb   : > { %3335 = vrot.lane.b32.xlu1 %v6718_v11, %s4479_s26 }
 0x5fd   : > { %v6727_v13 = vpop.permute.xlu1 %3019  ;;  %3337 = vrot.lane.b32.xlu0 %v6723_v63, %s4479_s26  ;;  %v6731_v52 = vpop.permute.xlu0 %3021 }
 0x5fe   : > { %8174 = vst [vmem:[#allocation94_spill] sm:$0xff] %v6727_v13  ;;  %8175 = vst [vmem:[#allocation134_spill] sm:$0xff] %v6731_v52 }
 0x5ff   : > { %3463 = vrot.lane.b32.xlu1 %v6718_v11, %s4481_s28 }
 0x601   : > { %v6740_v55 = vpop.permute.xlu1 %3147  ;;  %3465 = vrot.lane.b32.xlu0 %v6723_v63, %s4481_s28  ;;  %v6744_v13 = vpop.permute.xlu0 %3149  ;;  %v6763_v63 = vmul.f32 %v8166_v6, %v3287_v2 }
 0x602   : > { %8177 = vst [vmem:[#allocation101_spill] sm:$0xff] %v6740_v55  ;;  %8178 = vst [vmem:[#allocation126_spill] sm:$0xff] %v6744_v13  ;;  %v6758_v55 = vmul.f32 %v8165_v60, %v3263_v54 }
 0x603   : > { %2811 = vrot.lane.b32.xlu1 %v6738_v61, %s4479_s26  ;;  %8181 = vst [vmem:[#allocation131_spill] sm:$0xff] %v6763_v63 }
 0x604   : > { %8180 = vst [vmem:[#allocation78_spill] sm:$0xff] %v6758_v55 }
 0x605   : > { %v2720_v52 = vpop.permute.xlu1 %2719  ;;  %2813 = vrot.lane.b32.xlu0 %v6747_v62, %s4479_s26  ;;  %v2722_v44 = vpop.permute.xlu0 %2721 }
 0x606   : > { %v2760_v54 = vsel %vm800_vm3, 0.0, %v2720_v52 }
 0x607   : > { %2923 = vrot.lane.b32.xlu1 %v6738_v61, %s4481_s28  ;;  %v6778_v2 = vmul.f32 %v8163_v17, %v2760_v54 }
 0x609   : > { %v3248_v3 = vpop.permute.xlu1 %3247  ;;  %2925 = vrot.lane.b32.xlu0 %v6747_v62, %s4481_s28  ;;  %v3250_v13 = vpop.permute.xlu0 %3249  ;;  %v2736_v62 = vsel %vm800_vm3, %v2720_v52, %v2722_v44  ;;  %8184 = vst [vmem:[#allocation129_spill] sm:$0xff] %v6778_v2 }
 0x60a   : > { %v6787_v11 = vmul.f32 %v8164_v51, %v2736_v62  ;;  %v3264_v44 = vsel %vm1530_vm5, %v3248_v3, %v3250_v13  ;;  %v3288_v54 = vsel %vm1530_vm5, %v3250_v13, 0.0 }
 0x60b   : > { %3339 = vrot.lane.b32.xlu1 %v6758_v55, %s4479_s26 }
 0x60c   : > { %8187 = vst [vmem:[#allocation19_spill] sm:$0xff] %v6787_v11 }
 0x60d   : > { %v6767_v23 = vpop.permute.xlu1 %3023  ;;  %3341 = vrot.lane.b32.xlu0 %v6763_v63, %s4479_s26  ;;  %v6771_v39 = vpop.permute.xlu0 %3025 }
 0x60e   : > { %8182 = vst [vmem:[#allocation100_spill] sm:$0xff] %v6767_v23  ;;  %8183 = vst [vmem:[#allocation102_spill] sm:$0xff] %v6771_v39 }
 0x60f   : > { %3467 = vrot.lane.b32.xlu1 %v6758_v55, %s4481_s28 }
 0x611   : > { %v6780_v61 = vpop.permute.xlu1 %3151  ;;  %3469 = vrot.lane.b32.xlu0 %v6763_v63, %s4481_s28  ;;  %v6784_v23 = vpop.permute.xlu0 %3153  ;;  %v6803_v63 = vmul.f32 %v8166_v6, %v3288_v54 }
 0x612   : > { %8185 = vst [vmem:[#allocation105_spill] sm:$0xff] %v6780_v61  ;;  %8186 = vst [vmem:[#allocation90_spill] sm:$0xff] %v6784_v23  ;;  %v6798_v61 = vmul.f32 %v8165_v60, %v3264_v44 }
 0x613   : > { %2815 = vrot.lane.b32.xlu1 %v6778_v2, %s4479_s26  ;;  %8189 = vst [vmem:[#allocation2_spill] sm:$0xff] %v6803_v63 }
 0x614   : > { %8188 = vst [vmem:[#allocation21_spill] sm:$0xff] %v6798_v61 }
 0x615   : > { %v2724_v39 = vpop.permute.xlu1 %2723  ;;  %2817 = vrot.lane.b32.xlu0 %v6787_v11, %s4479_s26  ;;  %v2726_v52 = vpop.permute.xlu0 %2725 }
 0x616   : > { %v2761_v44 = vsel %vm800_vm3, 0.0, %v2724_v39 }
 0x617   : > { %2927 = vrot.lane.b32.xlu1 %v6778_v2, %s4481_s28  ;;  %v6818_v54 = vmul.f32 %v8163_v17, %v2761_v44 }
 0x619   : > { %v3252_v62 = vpop.permute.xlu1 %3251  ;;  %2929 = vrot.lane.b32.xlu0 %v6787_v11, %s4481_s28  ;;  %v3254_v23 = vpop.permute.xlu0 %3253  ;;  %v2737_v11 = vsel %vm800_vm3, %v2724_v39, %v2726_v52  ;;  %8192 = vst [vmem:[#allocation4_spill] sm:$0xff] %v6818_v54  ;;  %v440_v39 = vld [vmem:[%s7510_s8 + $0x8] sm:$0xff] }
 0x61a   : > { %v6827_v55 = vmul.f32 %v8164_v51, %v2737_v11  ;;  %v2263_v11 = vadd.f32 %v6363_v49, %v440_v39 }
 0x61b   : > { %3343 = vrot.lane.b32.xlu1 %v6798_v61, %s4479_s26 }
 0x61c   : > { %8195 = vst [vmem:[#allocation72_spill] sm:$0xff] %v6827_v55  ;;  %v2297_v49 = vadd.f32 3.0, %v2263_v11 }
 0x61d   : > { %v6807_v3 = vpop.permute.xlu1 %3027  ;;  %3345 = vrot.lane.b32.xlu0 %v6803_v63, %s4479_s26  ;;  %v6811_v13 = vpop.permute.xlu0 %3029 }
 0x61e   : > { %8190 = vst [vmem:[#allocation3_spill] sm:$0xff] %v6807_v3  ;;  %8191 = vst [vmem:[#allocation25_spill] sm:$0xff] %v6811_v13  ;;  %v3289_v13 = vsel %vm1530_vm5, %v3254_v23, 0.0 }
 0x61f   : > { %3471 = vrot.lane.b32.xlu1 %v6798_v61, %s4481_s28 }
 0x621   : > { %v6820_v2 = vpop.permute.xlu1 %3155  ;;  %3473 = vrot.lane.b32.xlu0 %v6803_v63, %s4481_s28  ;;  %v6824_v3 = vpop.permute.xlu0 %3157 }
 0x622   : > { %8193 = vst [vmem:[#allocation28_spill] sm:$0xff] %v6820_v2  ;;  %8194 = vst [vmem:[#allocation5_spill] sm:$0xff] %v6824_v3  ;;  %v439_v2 = vld [vmem:[%s7510_s8] sm:$0xff]  ;;  %v3265_v3 = vsel %vm1530_vm5, %v3252_v62, %v3254_v23  ;;  %v6852_v62 = vmul.f32 %v8166_v6, %v3289_v13  ;;  %v442_v13 = vld [vmem:[%s7510_s8 + $0x18] sm:$0xff] }
 0x623   : > { %2819 = vrot.lane.b32.xlu1 %v6818_v54, %s4479_s26  ;;  %v2258_v63 = vadd.f32 %v6365_v32, %v439_v2  ;;  %v6846_v61 = vmul.f32 %v8165_v60, %v3265_v3 }
 0x624   : > { %8197 = vst [vmem:[#allocation75_spill] sm:$0xff] %v6852_v62 }
 0x625   : > { %v2728_v52 = vpop.permute.xlu1 %2727  ;;  %2821 = vrot.lane.b32.xlu0 %v6827_v55, %s4479_s26  ;;  %v2730_v44 = vpop.permute.xlu0 %2729  ;;  %8196 = vst [vmem:[#allocation69_spill] sm:$0xff] %v6846_v61  ;;  %v2296_v32 = vadd.f32 3.0, %v2258_v63  ;;  %v441_v63 = vld [vmem:[%s7510_s8 + $0x10] sm:$0xff] }
 0x626   : > { %v2762_v36 = vsel %vm800_vm3, 0.0, %v2728_v52  ;;  %v2738_v23 = vsel %vm800_vm3, %v2728_v52, %v2730_v44  ;;  %v2273_v44 = vadd.f32 %v6367_v59, %v442_v13 }
 0x627   : > { %2931 = vrot.lane.b32.xlu1 %v6818_v54, %s4481_s28  ;;  %v6858_v2 = vmul.f32 %v8163_v17, %v2762_v36  ;;  %v6875_v36 = vmul.f32 %v8164_v51, %v2738_v23  ;;  %v2305_v17 = vmax.f32 %v2297_v49, 0.0  ;;  %v2304_v52 = vmax.f32 %v2296_v32, 0.0  ;;  %v444_v51 = vld [vmem:[%s7510_s8 + $0x28] sm:$0xff]  ;;  %v443_v49 = vld [vmem:[%s7510_s8 + $0x20] sm:$0xff] }
 0x628   : > { %v2299_v32 = vadd.f32 3.0, %v2273_v44 }
 0x629   : > { %v3256_v14 = vpop.permute.xlu1 %3255  ;;  %2933 = vrot.lane.b32.xlu0 %v6827_v55, %s4481_s28  ;;  %v3258_v47 = vpop.permute.xlu0 %3257  ;;  %8198 = vst [vmem:[#allocation77_spill] sm:$0xff] %v6858_v2  ;;  %8201 = vst [vmem:[#allocation137_spill] sm:$0xff] %v6875_v36  ;;  %v2313_v59 = vmin.f32 %v2305_v17, 6.0  ;;  %v2312_v23 = vmin.f32 %v2304_v52, 6.0  ;;  %v446_v17 = vld [vmem:[%s7510_s8 + $0x38] sm:$0xff] }
 0x62a   : > { %v2293_v54 = vadd.f32 %v6375_v26, %v446_v17  ;;  %v3059_v26 = vsel %vm534_vm0, 0.0, %v6565_v1 }
 0x62b   : > { %3347 = vrot.lane.b32.xlu1 %v6846_v61, %s4479_s26  ;;  %v6908_v44 = vmul.f32 0.16666667, %v2313_v59 }
 0x62d   : > { %v6860_v3 = vpop.permute.xlu1 %3031  ;;  %3349 = vrot.lane.b32.xlu0 %v6852_v62, %s4479_s26  ;;  %v3034_v39 = vpop.permute.xlu0 %3033 }
 0x62e   : > { %8199 = vst [vmem:[#allocation135_spill] sm:$0xff] %v6860_v3  ;;  %v6869_v55 = vsel %vm534_vm0, %v6860_v3, %v3034_v39 }
 0x62f   : > { %8200 = vst [vmem:[#allocation136_spill] sm:$0xff] %v6869_v55  ;;  %2823 = vrot.lane.b32.xlu1 %v6858_v2, %s4479_s26  ;;  %v2268_v55 = vadd.f32 %v6369_v0, %v441_v63  ;;  %v2283_v63 = vadd.f32 %v6371_v45, %v444_v51  ;;  %v2307_v51 = vmax.f32 %v2299_v32, 0.0  ;;  %v445_v32 = vld [vmem:[%s7510_s8 + $0x30] sm:$0xff] }
 0x631   : > { %v3160_v11 = vpop.permute.xlu1 %3159  ;;  %2825 = vrot.lane.b32.xlu0 %v6875_v36, %s4479_s26  ;;  %v6882_v39 = vpop.permute.xlu0 %3161  ;;  %v2298_v0 = vadd.f32 3.0, %v2268_v55  ;;  %v3290_v55 = vsel %vm1530_vm5, %v3258_v47, 0.0  ;;  %v2301_v59 = vadd.f32 3.0, %v2283_v63 }
 0x632   : > { %8202 = vst [vmem:[#allocation138_spill] sm:$0xff] %v6882_v39  ;;  %v6887_v3 = vsel %vm1081_vm7, %v3160_v11, %v6882_v39  ;;  %v3266_v11 = vsel %vm1530_vm5, %v3256_v14, %v3258_v47  ;;  %v2278_v39 = vadd.f32 %v6373_v27, %v443_v49 }
 0x633   : > { %8203 = vst [vmem:[#allocation139_spill] sm:$0xff] %v6887_v3  ;;  %2935 = vrot.lane.b32.xlu1 %v6858_v2, %s4481_s28  ;;  %v6913_v14 = vmul.f32 %v8165_v60, %v3266_v11  ;;  %v2320_v2 = vmul.f32 0.16666667, %v2312_v23  ;;  %v6924_v60 = vmul.f32 %v8166_v6, %v3290_v55  ;;  %v8205_v11 = vld [vmem:[#allocation8_spill] sm:$0xff]  ;;  %v2315_v55 = vmin.f32 %v2307_v51, 6.0 }
 0x634   : > { %v2300_v47 = vadd.f32 3.0, %v2278_v39  ;;  %v3035_v39 = vsel %vm534_vm0, %v6565_v1, %v6573_v31  ;;  %v8206_v1 = vld [vmem:[#allocation12_spill] sm:$0xff]  ;;  %v3163_v51 = vsel %vm1081_vm7, %v6571_v58, %v6583_v34 }
 0x635   : > { %v2796_v13 = vpop.permute.xlu1 %2795  ;;  %2937 = vrot.lane.b32.xlu0 %v6875_v36, %s4481_s28  ;;  %v3067_v31 = vmul.f32 %v3059_v26, %v8206_v1 }
 0x636   : > { %v2851_v3 = vsel %vm534_vm0, 0.0, %v2796_v13 }
 0x637   : > { %3475 = vrot.lane.b32.xlu1 %v6846_v61, %s4481_s28  ;;  %v2798_v52 = vpop.permute.xlu0 %2797  ;;  %v2859_v27 = vmul.f32 %v2851_v3, %v6092_v33  ;;  %v2306_v61 = vmax.f32 %v2298_v0, 0.0  ;;  %v8204_v3 = vld [vmem:[#allocation30_spill] sm:$0xff] }
 0x638   : > { %v2827_v45 = vsel %vm534_vm0, %v2796_v13, %v2798_v52  ;;  %v2876_v13 = vmul.f32 %v6587_v43, %v8204_v3 }
 0x639   : > { %v2860_v49 = vmul.f32 %v2827_v45, %v6092_v33  ;;  %v2908_v36 = vpop.permute.xlu1 %2907  ;;  %3477 = vrot.lane.b32.xlu0 %v6852_v62, %s4481_s28  ;;  %v2875_v33 = vmul.f32 %v6581_v4, %v8204_v3  ;;  %v2314_v45 = vmin.f32 %v2306_v61, 6.0  ;;  %v2303_v3 = vadd.f32 3.0, %v2293_v54 }
 0x63a   : > { %v2288_v62 = vadd.f32 %v6377_v30, %v445_v32  ;;  %v3187_v61 = vsel %vm1081_vm7, %v6583_v34, 0.0  ;;  %v8207_v32 = vld [vmem:[#allocation14_spill] sm:$0xff] }
 0x63b   : > { %3351 = vrot.lane.b32.xlu1 %v6913_v14, %s4479_s26  ;;  %v2910_v23 = vpop.permute.xlu0 %2909  ;;  %v2891_v63 = vadd.f32 %v2875_v33, %v2859_v27  ;;  %v2892_v4 = vadd.f32 %v2876_v13, %v2860_v49  ;;  %v2309_v33 = vmax.f32 %v2301_v59, 0.0  ;;  %v2308_v13 = vmax.f32 %v2300_v47, 0.0 }
 0x63c   : > { %v2939_v6 = vsel %vm1081_vm7, %v2908_v36, %v2910_v23  ;;  %v2963_v0 = vsel %vm1081_vm7, %v2910_v23, 0.0  ;;  %v3068_v36 = vmul.f32 %v3035_v39, %v8206_v1  ;;  %v3099_v26 = vmul.f32 %v6383_v25, %v8207_v32 }
 0x63d   : > { %v2971_v17 = vmul.f32 %v2939_v6, %v8205_v11  ;;  %v2972_v43 = vmul.f32 %v2963_v0, %v8205_v11  ;;  %v3324_v52 = vpop.permute.xlu1 %3323  ;;  %3353 = vrot.lane.b32.xlu0 %v6924_v60, %s4479_s26  ;;  %v3100_v39 = vmul.f32 %v6389_v40, %v8207_v32  ;;  %v2311_v59 = vmax.f32 %v2303_v3, 0.0 }
 0x63e   : > { %v2302_v47 = vadd.f32 3.0, %v2288_v62  ;;  %v3379_v0 = vsel %vm534_vm0, 0.0, %v3324_v52  ;;  %v2322_v40 = vmul.f32 0.16666667, %v2314_v45  ;;  %v2316_v1 = vmin.f32 %v2308_v13, 6.0 }
 0x63f   : > { %v2987_v23 = vadd.f32 %v2971_v17, %v2891_v63  ;;  %v2988_v27 = vadd.f32 %v2972_v43, %v2892_v4  ;;  %3479 = vrot.lane.b32.xlu1 %v6913_v14, %s4481_s28  ;;  %v3326_v49 = vpop.permute.xlu0 %3325  ;;  %v8208_v63 = vld [vmem:[#allocation20_spill] sm:$0xff]  ;;  %v2323_v43 = vmul.f32 0.16666667, %v2315_v55 }
 0x640   : > { %v3355_v58 = vsel %vm534_vm0, %v3324_v52, %v3326_v49  ;;  %v3195_v34 = vmul.f32 %v3163_v51, %v8208_v63  ;;  %v3196_v4 = vmul.f32 %v3187_v61, %v8208_v63  ;;  %v2317_v52 = vmin.f32 %v2309_v33, 6.0  ;;  %v8211_v33 = vld [vmem:[#allocation6_spill] sm:$0xff] }
 0x641   : > { %v3083_v30 = vadd.f32 %v3067_v31, %v2987_v23  ;;  %v3084_v54 = vadd.f32 %v3068_v36, %v2988_v27  ;;  %v3452_v6 = vpop.permute.xlu1 %3451  ;;  %3481 = vrot.lane.b32.xlu0 %v6924_v60, %s4481_s28  ;;  %v8209_v36 = vld [vmem:[#allocation29_spill] sm:$0xff]  ;;  %v2319_v49 = vmin.f32 %v2311_v59, 6.0  ;;  %v2310_v51 = vmax.f32 %v2302_v47, 0.0 }
 0x642   : > { %v3387_v23 = vmul.f32 %v3379_v0, %v8209_v36  ;;  %v3388_v62 = vmul.f32 %v3355_v58, %v8209_v36  ;;  %v2324_v32 = vmul.f32 0.16666667, %v2316_v1  ;;  %v2325_v58 = vmul.f32 0.16666667, %v2317_v52 }
 0x643   : > { %v3115_v11 = vadd.f32 %v3099_v26, %v3083_v30  ;;  %v3116_v17 = vadd.f32 %v3100_v39, %v3084_v54  ;;  %v3454_v25 = vpop.permute.xlu0 %3453  ;;  %2330 = vperm.xlu1 %4416, %v2320_v2   ;;  %v8210_v2 = vld [vmem:[#allocation42_spill] sm:$0xff]  ;;  %v2327_v63 = vmul.f32 0.16666667, %v2319_v49  ;;  %v8215_v49 = vld [vmem:[#allocation48_spill] sm:$0xff] }
 0x644   : > { %v3419_v55 = vmul.f32 %v6598_v37, %v8210_v2  ;;  %v3420_v45 = vmul.f32 %v6603_v15, %v8210_v2  ;;  %v3060_v37 = vsel %vm534_vm0, 0.0, %v6607_v19  ;;  %v3036_v15 = vsel %vm534_vm0, %v6607_v19, %v6611_v24 }
 0x645   : > { %v3211_v31 = vadd.f32 %v3195_v34, %v3115_v11  ;;  %v3212_v3 = vadd.f32 %v3196_v4, %v3116_v17  ;;  %v2800_v27 = vpop.permute.xlu1 %2799  ;;  %2335 = vperm.xlu0 %4415, %v6908_v44   ;;  %v2318_v34 = vmin.f32 %v2310_v51, 6.0  ;;  %v8212_v4 = vld [vmem:[#allocation7_spill] sm:$0xff]  ;;  %v3507_v1 = vsel %vm1081_vm7, %v3454_v25, 0.0 }
 0x646   : > { %v2852_v61 = vsel %vm534_vm0, 0.0, %v2800_v27  ;;  %v2877_v11 = vmul.f32 %v6618_v5, %v8212_v4  ;;  %v2878_v17 = vmul.f32 %v6627_v56, %v8212_v4  ;;  %v8214_v56 = vld [vmem:[#allocation56_spill] sm:$0xff]  ;;  %v3188_v2 = vsel %vm1081_vm7, %v6624_v8, 0.0  ;;  %v8218_v4 = vld [vmem:[#allocation31_spill] sm:$0xff] }
 0x647   : > { %v3403_v30 = vadd.f32 %v3387_v23, %v3211_v31  ;;  %v3404_v54 = vadd.f32 %v3388_v62, %v3212_v3  ;;  %v2802_v13 = vpop.permute.xlu0 %2801  ;;  %2340 = vperm.xlu1 %4416, %v2322_v40   ;;  %v2861_v59 = vmul.f32 %v2852_v61, %v8211_v33  ;;  %v8213_v62 = vld [vmem:[#allocation38_spill] sm:$0xff]  ;;  %v3101_v52 = vmul.f32 %v6413_v57, %v8214_v56 }
 0x648   : > { %v2828_v26 = vsel %vm534_vm0, %v2800_v27, %v2802_v13  ;;  %v2326_v27 = vmul.f32 0.16666667, %v2318_v34 }
 0x649   : > { %v3436_v39 = vadd.f32 %v3420_v45, %v3404_v54  ;;  %v3435_v44 = vadd.f32 %v3419_v55, %v3403_v30  ;;  %v2862_v47 = vmul.f32 %v2828_v26, %v8211_v33  ;;  %v2912_v0 = vpop.permute.xlu1 %2911  ;;  %2345 = vperm.xlu0 %4415, %v2323_v43   ;;  %v3483_v43 = vsel %vm1081_vm7, %v3452_v6, %v3454_v25  ;;  %v8216_v55 = vld [vmem:[#allocation53_spill] sm:$0xff] }
 0x64a   : > { %v2893_v23 = vadd.f32 %v2877_v11, %v2861_v59  ;;  %v3069_v6 = vmul.f32 %v3060_v37, %v8215_v49  ;;  %v3070_v25 = vmul.f32 %v3036_v15, %v8215_v49  ;;  %v3164_v54 = vsel %vm1081_vm7, %v6620_v18, %v6624_v8 }
 0x64b   : > { %v2914_v40 = vpop.permute.xlu0 %2913  ;;  %2350 = vperm.xlu1 %4416, %v2324_v32   ;;  %v2894_v3 = vadd.f32 %v2878_v17, %v2862_v47  ;;  %v3515_v45 = vmul.f32 %v3483_v43, %v8216_v55  ;;  %v3516_v13 = vmul.f32 %v3507_v1, %v8216_v55  ;;  %v3102_v33 = vmul.f32 %v6415_v10, %v8214_v56  ;;  %v8219_v17 = vld [vmem:[#allocation45_spill] sm:$0xff] }
 0x64c   : > { %v2940_v31 = vsel %vm1081_vm7, %v2912_v0, %v2914_v40  ;;  %v2964_v36 = vsel %vm1081_vm7, %v2914_v40, 0.0  ;;  %v3421_v40 = vmul.f32 %v6638_v53, %v8219_v17  ;;  %v3422_v53 = vmul.f32 %v6643_v28, %v8219_v17 }
 0x64d   : > { %v2973_v19 = vmul.f32 %v2940_v31, %v8213_v62  ;;  %v2974_v24 = vmul.f32 %v2964_v36, %v8213_v62  ;;  %v3328_v5 = vpop.permute.xlu1 %3327  ;;  %2355 = vperm.xlu0 %4415, %v2325_v58   ;;  %v3531_v47 = vadd.f32 %v3515_v45, %v3435_v44  ;;  %v3532_v0 = vadd.f32 %v3516_v13, %v3436_v39  ;;  %v8217_v58 = vld [vmem:[#allocation22_spill] sm:$0xff] }
 0x64e   : > { %v3380_v26 = vsel %vm534_vm0, 0.0, %v3328_v5  ;;  %v3198_v8 = vmul.f32 %v3188_v2, %v8217_v58  ;;  %v3061_v56 = vsel %vm534_vm0, 0.0, %v6647_v16  ;;  %v8223_v13 = vld [vmem:[#allocation18_spill] sm:$0xff] }
 0x64f   : > { %v2989_v51 = vadd.f32 %v2973_v19, %v2893_v23  ;;  %v2990_v61 = vadd.f32 %v2974_v24, %v2894_v3  ;;  %v3330_v30 = vpop.permute.xlu0 %3329  ;;  %2365 = vperm.xlu1 %4416, %v2327_v63   ;;  %v3197_v63 = vmul.f32 %v3164_v54, %v8217_v58  ;;  %v3389_v11 = vmul.f32 %v3380_v26, %v8218_v4  ;;  %v8220_v24 = vld [vmem:[#allocation32_spill] sm:$0xff] }
 0x650   : > { %v3356_v18 = vsel %vm534_vm0, %v3328_v5, %v3330_v30  ;;  %v7012_v31 = vadd.f32 %v3531_v47, %v8127_v46  ;;  %v7015_v36 = vadd.f32 %v3532_v0, %v8127_v46  ;;  %v2879_v5 = vmul.f32 %v6658_v20, %v8220_v24  ;;  %v8222_v46 = vld [vmem:[#allocation9_spill] sm:$0xff] }
 0x651   : > { %v3085_v57 = vadd.f32 %v3069_v6, %v2989_v51  ;;  %v3086_v32 = vadd.f32 %v3070_v25, %v2990_v61  ;;  %v3456_v59 = vpop.permute.xlu1 %3455  ;;  %2360 = vperm.xlu0 %4415, %v2326_v27   ;;  %v3390_v1 = vmul.f32 %v3356_v18, %v8218_v4  ;;  %v3037_v20 = vsel %vm534_vm0, %v6647_v16, %v6651_v12  ;;  %v8224_v18 = vld [vmem:[#allocation107_spill] sm:$0xff] }
 0x652   : > { %v3563_v2 = vadd.f32 3.0, %v7012_v31  ;;  %v3564_v55 = vadd.f32 3.0, %v7015_v36  ;;  %v2880_v45 = vmul.f32 %v6667_v21, %v8220_v24  ;;  %v8225_v21 = vld [vmem:[#allocation41_spill] sm:$0xff] }
 0x653   : > { %v3117_v34 = vadd.f32 %v3101_v52, %v3085_v57  ;;  %v3118_v37 = vadd.f32 %v3102_v33, %v3086_v32  ;;  %v3458_v15 = vpop.permute.xlu0 %3457  ;;  %v8221_v52 = vld [vmem:[#allocation110_spill] sm:$0xff]  ;;  %v3071_v57 = vmul.f32 %v3061_v56, %v8223_v13  ;;  %v3165_v32 = vsel %vm1081_vm7, %v6660_v48, %v6664_v42 }
 0x654   : > { %v3484_v39 = vsel %vm1081_vm7, %v3456_v59, %v3458_v15  ;;  %v3508_v23 = vsel %vm1081_vm7, %v3458_v15, 0.0  ;;  %v3072_v48 = vmul.f32 %v3037_v20, %v8223_v13  ;;  %v3189_v15 = vsel %vm1081_vm7, %v6664_v42, 0.0 }
 0x655   : > { %v3213_v43 = vadd.f32 %v3197_v63, %v3117_v34  ;;  %v3214_v10 = vadd.f32 %v3198_v8, %v3118_v37  ;;  %v2804_v44 = vpop.permute.xlu1 %2803  ;;  %v3517_v49 = vmul.f32 %v3484_v39, %v8221_v52  ;;  %v3518_v30 = vmul.f32 %v3508_v23, %v8221_v52  ;;  %v8226_v39 = vld [vmem:[#allocation40_spill] sm:$0xff]  ;;  %v8227_v23 = vld [vmem:[#allocation26_spill] sm:$0xff] }
 0x656   : > { %v2853_v3 = vsel %vm534_vm0, 0.0, %v2804_v44  ;;  %v3579_v4 = vmax.f32 %v3563_v2, 0.0  ;;  %v3200_v56 = vmul.f32 %v3189_v15, %v8226_v39 }
 0x657   : > { %v3405_v62 = vadd.f32 %v3389_v11, %v3213_v43  ;;  %v3406_v19 = vadd.f32 %v3390_v1, %v3214_v10  ;;  %v2806_v27 = vpop.permute.xlu0 %2805  ;;  %v2863_v6 = vmul.f32 %v2853_v3, %v8222_v46  ;;  %v3580_v11 = vmax.f32 %v3564_v55, 0.0 }
 0x658   : > { %v2829_v25 = vsel %vm534_vm0, %v2804_v44, %v2806_v27  ;;  %v3199_v44 = vmul.f32 %v3165_v32, %v8226_v39  ;;  %v3103_v3 = vmul.f32 %v6439_v29, %v8227_v23 }
 0x659   : > { %v3437_v51 = vadd.f32 %v3421_v40, %v3405_v62  ;;  %v3438_v61 = vadd.f32 %v3422_v53, %v3406_v19  ;;  %v2864_v54 = vmul.f32 %v2829_v25, %v8222_v46  ;;  %v2916_v28 = vpop.permute.xlu1 %2915  ;;  %v2895_v47 = vadd.f32 %v2879_v5, %v2863_v6 }
 0x65a   : > { %v3104_v62 = vmul.f32 %v6441_v50, %v8227_v23  ;;  %v3423_v19 = vmul.f32 %v6678_v41, %v5691_v35  ;;  %v3595_v46 = vmin.f32 %v3579_v4, 6.0  ;;  %v3596_v50 = vmin.f32 %v3580_v11, 6.0 }
 0x65b   : > { %v3533_v26 = vadd.f32 %v3517_v49, %v3437_v51  ;;  %v3534_v33 = vadd.f32 %v3518_v30, %v3438_v61  ;;  %v2918_v59 = vpop.permute.xlu0 %2917  ;;  %v2896_v0 = vadd.f32 %v2880_v45, %v2864_v54  ;;  %v3424_v41 = vmul.f32 %v6683_v38, %v5691_v35  ;;  %v8228_v30 = vld [vmem:[#allocation11_spill] sm:$0xff] }
 0x65c   : > { %v2941_v16 = vsel %vm1081_vm7, %v2916_v28, %v2918_v59  ;;  %v2965_v12 = vsel %vm1081_vm7, %v2918_v59, 0.0  ;;  %v2881_v54 = vmul.f32 %v6698_v22, %v8228_v30  ;;  %v3611_v38 = vmul.f32 %v3595_v46, %v7012_v31  ;;  %v8237_v46 = vld [vmem:[#allocation23_spill] sm:$0xff] }
 0x65d   : > { %v3549_v58 = vadd.f32 %v3533_v26, %v8224_v18  ;;  %v3550_v63 = vadd.f32 %v3534_v33, %v8224_v18  ;;  %v2975_v8 = vmul.f32 %v2941_v16, %v8225_v21  ;;  %v2976_v34 = vmul.f32 %v2965_v12, %v8225_v21  ;;  %v3332_v37 = vpop.permute.xlu1 %3331  ;;  %v8229_v16 = vld [vmem:[#allocation10_spill] sm:$0xff]  ;;  %v8230_v12 = vld [vmem:[#allocation123_spill] sm:$0xff] }
 0x65e   : > { %v3381_v24 = vsel %vm534_vm0, 0.0, %v3332_v37  ;;  %v3612_v22 = vmul.f32 %v3596_v50, %v7015_v36  ;;  %v2882_v18 = vmul.f32 %v8230_v12, %v8228_v30  ;;  %v8232_v36 = vld [vmem:[#allocation118_spill] sm:$0xff] }
 0x65f   : > { %v3565_v17 = vadd.f32 3.0, %v3549_v58  ;;  %v3566_v40 = vadd.f32 3.0, %v3550_v63  ;;  %v2991_v43 = vadd.f32 %v2975_v8, %v2895_v47  ;;  %v2992_v10 = vadd.f32 %v2976_v34, %v2896_v0  ;;  %v3334_v1 = vpop.permute.xlu0 %3333 }
 0x660   : > { %v3357_v52 = vsel %vm534_vm0, %v3332_v37, %v3334_v1  ;;  %v3391_v61 = vmul.f32 %v3381_v24, %v8053_v7 }
 0x661   : > { %v3087_v53 = vadd.f32 %v3071_v57, %v2991_v43  ;;  %v3088_v42 = vadd.f32 %v3072_v48, %v2992_v10  ;;  %v3460_v5 = vpop.permute.xlu1 %3459  ;;  %v3581_v27 = vmax.f32 %v3565_v17, 0.0  ;;  %v3582_v49 = vmax.f32 %v3566_v40, 0.0  ;;  %v8231_v48 = vld [vmem:[#allocation112_spill] sm:$0xff] }
 0x662   : > { %v3392_v55 = vmul.f32 %v3357_v52, %v8053_v7  ;;  %v3062_v31 = vsel %vm534_vm0, 0.0, %v8231_v48  ;;  %v3038_v15 = vsel %vm534_vm0, %v8231_v48, %v8232_v36  ;;  %v7087_v10 = vmul.f32 0.16666667, %v3611_v38 }
 0x663   : > { %v3119_v6 = vadd.f32 %v3103_v3, %v3087_v53  ;;  %v3120_v29 = vadd.f32 %v3104_v62, %v3088_v42  ;;  %v3462_v25 = vpop.permute.xlu0 %3461  ;;  %v3597_v51 = vmin.f32 %v3581_v27, 6.0  ;;  %v3598_v28 = vmin.f32 %v3582_v49, 6.0  ;;  %v8233_v3 = vld [vmem:[#allocation81_spill] sm:$0xff]  ;;  %v8235_v27 = vld [vmem:[#allocation50_spill] sm:$0xff]  ;;  %v8236_v49 = vld [vmem:[#allocation27_spill] sm:$0xff] }
 0x664   : > { %v3485_v45 = vsel %vm1081_vm7, %v3460_v5, %v3462_v25  ;;  %v3509_v57 = vsel %vm1081_vm7, %v3462_v25, 0.0  ;;  %v8234_v53 = vld [vmem:[#allocation13_spill] sm:$0xff]  ;;  %v3074_v52 = vmul.f32 %v3038_v15, %v8235_v27  ;;  %v3190_v30 = vsel %vm1081_vm7, %v8236_v49, 0.0 }
 0x665   : > { %v3215_v20 = vadd.f32 %v3199_v44, %v3119_v6  ;;  %v3216_v2 = vadd.f32 %v3200_v56, %v3120_v29  ;;  %v2808_v13 = vpop.permute.xlu1 %2807  ;;  %v3613_v26 = vmul.f32 %v3597_v51, %v3549_v58  ;;  %v3614_v33 = vmul.f32 %v3598_v28, %v3550_v63  ;;  %v8239_v28 = vld [vmem:[#allocation99_spill] sm:$0xff] }
 0x666   : > { %v2854_v32 = vsel %vm534_vm0, 0.0, %v2808_v13  ;;  %v3519_v0 = vmul.f32 %v3485_v45, %v8059_v9  ;;  %v3520_v58 = vmul.f32 %v3509_v57, %v8059_v9  ;;  %v7089_v9 = vmul.f32 0.16666667, %v3612_v22 }
 0x667   : > { %v3407_v59 = vadd.f32 %v3391_v61, %v3215_v20  ;;  %v3408_v47 = vadd.f32 %v3392_v55, %v3216_v2  ;;  %v2810_v35 = vpop.permute.xlu0 %2809  ;;  %v2865_v7 = vmul.f32 %v2854_v32, %v8229_v16  ;;  %v7083_v4 = vmul.f32 0.16666667, %v3613_v26  ;;  %v8240_v2 = vld [vmem:[#allocation70_spill] sm:$0xff] }
 0x668   : > { %v2830_v21 = vsel %vm534_vm0, %v2808_v13, %v2810_v35  ;;  %v7085_v11 = vmul.f32 0.16666667, %v3614_v33  ;;  %v3073_v56 = vmul.f32 %v3062_v31, %v8235_v27  ;;  %v3166_v6 = vsel %vm1081_vm7, %v8237_v46, %v8236_v49  ;;  %v8241_v33 = vld [vmem:[#allocation64_spill] sm:$0xff] }
 0x669   : > { %v3439_v8 = vadd.f32 %v3423_v19, %v3407_v59  ;;  %v3440_v34 = vadd.f32 %v3424_v41, %v3408_v47  ;;  %v2866_v63 = vmul.f32 %v2830_v21, %v8229_v16  ;;  %v2920_v37 = vpop.permute.xlu1 %2919  ;;  %v2897_v1 = vadd.f32 %v2881_v54, %v2865_v7  ;;  %v8238_v54 = vld [vmem:[#allocation58_spill] sm:$0xff]  ;;  %v8243_v21 = vld [vmem:[#allocation124_spill] sm:$0xff] }
 0x66a   : > { %v3646_v29 = vadd.f32 %v7085_v11, %v7083_v4  ;;  %v3105_v20 = vmul.f32 %v8239_v28, %v8238_v54  ;;  %v3106_v55 = vmul.f32 %v8240_v2, %v8238_v54  ;;  %v3643_v32 = vadd.f32 %v7089_v9, %v7087_v10  ;;  %v8251_v54 = vld [vmem:[#allocation94_spill] sm:$0xff] }
 0x66b   : > { %v3535_v17 = vadd.f32 %v3519_v0, %v3439_v8  ;;  %v3536_v40 = vadd.f32 %v3520_v58, %v3440_v34  ;;  %v2922_v43 = vpop.permute.xlu0 %2921  ;;  %v2898_v39 = vadd.f32 %v2882_v18, %v2866_v63  ;;  %v3201_v59 = vmul.f32 %v3166_v6, %v8241_v33  ;;  %v8242_v18 = vld [vmem:[#allocation59_spill] sm:$0xff] }
 0x66c   : > { %v2942_v44 = vsel %vm1081_vm7, %v2920_v37, %v2922_v43  ;;  %v2966_v23 = vsel %vm1081_vm7, %v2922_v43, 0.0  ;;  %v3202_v22 = vmul.f32 %v3190_v30, %v8241_v33  ;;  %v3425_v8 = vmul.f32 %v8243_v21, %v8242_v18  ;;  %v8244_v37 = vld [vmem:[#allocation51_spill] sm:$0xff]  ;;  %v8256_v21 = vld [vmem:[#allocation126_spill] sm:$0xff] }
 0x66d   : > { %v3551_v62 = vadd.f32 %v3535_v17, %v8233_v3  ;;  %v3552_v19 = vadd.f32 %v3536_v40, %v8233_v3  ;;  %v2977_v42 = vmul.f32 %v2942_v44, %v8234_v53  ;;  %v2978_v24 = vmul.f32 %v2966_v23, %v8234_v53  ;;  %v3336_v5 = vpop.permute.xlu1 %3335  ;;  %v8245_v23 = vld [vmem:[#allocation133_spill] sm:$0xff]  ;;  %v8246_v53 = vld [vmem:[#allocation103_spill] sm:$0xff] }
 0x66e   : > { %v3382_v47 = vsel %vm534_vm0, 0.0, %v3336_v5  ;;  %v3426_v3 = vmul.f32 %v8245_v23, %v8242_v18  ;;  %v3063_v28 = vsel %vm534_vm0, 0.0, %v8251_v54 }
 0x66f   : > { %v3567_v25 = vadd.f32 3.0, %v3551_v62  ;;  %v3568_v51 = vadd.f32 3.0, %v3552_v19  ;;  %v2993_v50 = vadd.f32 %v2977_v42, %v2897_v1  ;;  %v2994_v61 = vadd.f32 %v2978_v24, %v2898_v39  ;;  %v3338_v41 = vpop.permute.xlu0 %3337 }
 0x670   : > { %3647 = vadd.xlane.f32.xlu0 %v3646_v29  ;;  %v3358_v35 = vsel %vm534_vm0, %v3336_v5, %v3338_v41  ;;  %v3393_v48 = vmul.f32 %v3382_v47, %v8244_v37  ;;  %v8247_v5 = vld [vmem:[#allocation15_spill] sm:$0xff] }
 0x671   : > { %v3089_v45 = vadd.f32 %v3073_v56, %v2993_v50  ;;  %v3090_v13 = vadd.f32 %v3074_v52, %v2994_v61  ;;  %v3464_v57 = vpop.permute.xlu1 %3463  ;;  %v3583_v26 = vmax.f32 %v3567_v25, 0.0  ;;  %v3584_v38 = vmax.f32 %v3568_v51, 0.0  ;;  %v8248_v25 = vld [vmem:[#allocation34_spill] sm:$0xff]  ;;  %v8249_v51 = vld [vmem:[#allocation125_spill] sm:$0xff]  ;;  %v8250_v61 = vld [vmem:[#allocation76_spill] sm:$0xff] }
 0x672   : > { %v3394_v36 = vmul.f32 %v3358_v35, %v8244_v37  ;;  %v2883_v50 = vmul.f32 %v8249_v51, %v8248_v25  ;;  %v2884_v41 = vmul.f32 %v8250_v61, %v8248_v25  ;;  %v8263_v25 = vld [vmem:[#allocation78_spill] sm:$0xff] }
 0x673   : > { %v3121_v0 = vadd.f32 %v3105_v20, %v3089_v45  ;;  %v3122_v16 = vadd.f32 %v3106_v55, %v3090_v13  ;;  %v3466_v7 = vpop.permute.xlu0 %3465  ;;  %3644 = vadd.xlane.f32.xlu1 %v3643_v32  ;;  %v3599_v12 = vmin.f32 %v3583_v26, 6.0  ;;  %v3600_v58 = vmin.f32 %v3584_v38, 6.0  ;;  %v8252_v20 = vld [vmem:[#allocation134_spill] sm:$0xff]  ;;  %v8254_v38 = vld [vmem:[#allocation43_spill] sm:$0xff] }
 0x674   : > { %v3486_v34 = vsel %vm1081_vm7, %v3464_v57, %v3466_v7  ;;  %v3510_v17 = vsel %vm1081_vm7, %v3466_v7, 0.0  ;;  %v3039_v2 = vsel %vm534_vm0, %v8251_v54, %v8252_v20  ;;  %v8255_v7 = vld [vmem:[#allocation52_spill] sm:$0xff] }
 0x675   : > { %v3217_v63 = vadd.f32 %v3201_v59, %v3121_v0  ;;  %v3218_v31 = vadd.f32 %v3202_v22, %v3122_v16  ;;  %v2812_v15 = vpop.permute.xlu1 %2811  ;;  %v3615_v43 = vmul.f32 %v3599_v12, %v3551_v62  ;;  %v3616_v1 = vmul.f32 %v3600_v58, %v3552_v19  ;;  %v8253_v59 = vld [vmem:[#allocation96_spill] sm:$0xff] }
 0x676   : > { %v2855_v40 = vsel %vm534_vm0, 0.0, %v2812_v15  ;;  %v3521_v42 = vmul.f32 %v3486_v34, %v8246_v53  ;;  %v3522_v62 = vmul.f32 %v3510_v17, %v8246_v53  ;;  %v3075_v12 = vmul.f32 %v3063_v28, %v8255_v7  ;;  %v8259_v17 = vld [vmem:[#allocation73_spill] sm:$0xff] }
 0x677   : > { %v3409_v39 = vadd.f32 %v3393_v48, %v3217_v63  ;;  %v3410_v44 = vadd.f32 %v3394_v36, %v3218_v31  ;;  %v2814_v24 = vpop.permute.xlu0 %2813  ;;  %v2867_v27 = vmul.f32 %v2855_v40, %v8247_v5  ;;  %v7128_v52 = vmul.f32 0.16666667, %v3615_v43  ;;  %v8261_v53 = vld [vmem:[#allocation57_spill] sm:$0xff] }
 0x678   : > { %v2831_v56 = vsel %vm534_vm0, %v2812_v15, %v2814_v24  ;;  %v7130_v49 = vmul.f32 0.16666667, %v3616_v1  ;;  %v3076_v18 = vmul.f32 %v3039_v2, %v8255_v7  ;;  %v3191_v36 = vsel %vm1081_vm7, %v8256_v21, 0.0  ;;  %v8258_v15 = vld [vmem:[#allocation49_spill] sm:$0xff] }
 0x679   : > { %v3441_v46 = vadd.f32 %v3425_v8, %v3409_v39  ;;  %v3442_v6 = vadd.f32 %v3426_v3, %v3410_v44  ;;  %v2868_v19 = vmul.f32 %v2831_v56, %v8247_v5  ;;  %v2924_v29 = vpop.permute.xlu1 %2923  ;;  %v2899_v57 = vadd.f32 %v2883_v50, %v2867_v27  ;;  %v8257_v8 = vld [vmem:[#allocation101_spill] sm:$0xff]  ;;  %v8260_v39 = vld [vmem:[#allocation71_spill] sm:$0xff] }
 0x67a   : > { %v3649_v30 = vadd.f32 %v7130_v49, %v7128_v52  ;;  %v3167_v34 = vsel %vm1081_vm7, %v8257_v8, %v8256_v21  ;;  %v3107_v40 = vmul.f32 %v8259_v17, %v8258_v15  ;;  %v3108_v44 = vmul.f32 %v8260_v39, %v8258_v15  ;;  %v8271_v17 = vld [vmem:[#allocation100_spill] sm:$0xff] }
 0x67b   : > { %v3537_v55 = vadd.f32 %v3521_v42, %v3441_v46  ;;  %v3538_v45 = vadd.f32 %v3522_v62, %v3442_v6  ;;  %v2926_v13 = vpop.permute.xlu0 %2925  ;;  %v2900_v32 = vadd.f32 %v2884_v41, %v2868_v19  ;;  %v3203_v42 = vmul.f32 %v3167_v34, %v8261_v53 }
 0x67c   : > { %v2943_v26 = vsel %vm1081_vm7, %v2924_v29, %v2926_v13  ;;  %v2967_v33 = vsel %vm1081_vm7, %v2926_v13, 0.0  ;;  %3650 = vadd.xlane.f32.xlu1 %v3649_v30  ;;  %v3204_v56 = vmul.f32 %v3191_v36, %v8261_v53  ;;  %v8262_v29 = vld [vmem:[#allocation111_spill] sm:$0xff]  ;;  %v8264_v30 = vld [vmem:[#allocation108_spill] sm:$0xff] }
 0x67d   : > { %v3553_v47 = vadd.f32 %v3537_v55, %v8253_v59  ;;  %v3554_v35 = vadd.f32 %v3538_v45, %v8253_v59  ;;  %v2979_v22 = vmul.f32 %v2943_v26, %v8254_v38  ;;  %v2980_v0 = vmul.f32 %v2967_v33, %v8254_v38  ;;  %v3340_v16 = vpop.permute.xlu1 %3339  ;;  %v8265_v33 = vld [vmem:[#allocation131_spill] sm:$0xff] }
 0x67e   : > { %v3383_v24 = vsel %vm534_vm0, 0.0, %v3340_v16  ;;  %v3427_v51 = vmul.f32 %v8263_v25, %v8262_v29  ;;  %v3428_v59 = vmul.f32 %v8265_v33, %v8262_v29  ;;  %v8266_v38 = vld [vmem:[#allocation83_spill] sm:$0xff]  ;;  %v8275_v29 = vld [vmem:[#allocation37_spill] sm:$0xff] }
 0x67f   : > { %v3569_v58 = vadd.f32 3.0, %v3553_v47  ;;  %v3570_v63 = vadd.f32 3.0, %v3554_v35  ;;  %v2995_v37 = vadd.f32 %v2979_v22, %v2899_v57  ;;  %v2996_v48 = vadd.f32 %v2980_v0, %v2900_v32  ;;  %v3342_v31 = vpop.permute.xlu0 %3341  ;;  %v8280_v33 = vld [vmem:[#allocation95_spill] sm:$0xff] }
 0x680   : > { %v3359_v5 = vsel %vm534_vm0, %v3340_v16, %v3342_v31  ;;  %v3395_v54 = vmul.f32 %v3383_v24, %v8264_v30  ;;  %v8267_v16 = vld [vmem:[#allocation16_spill] sm:$0xff]  ;;  %v8270_v31 = vld [vmem:[#allocation19_spill] sm:$0xff] }
 0x681   : > { %v3091_v43 = vadd.f32 %v3075_v12, %v2995_v37  ;;  %v3092_v1 = vadd.f32 %v3076_v18, %v2996_v48  ;;  %v3468_v23 = vpop.permute.xlu1 %3467  ;;  %v3585_v3 = vmax.f32 %v3569_v58, 0.0  ;;  %v3586_v27 = vmax.f32 %v3570_v63, 0.0  ;;  %v8268_v63 = vld [vmem:[#allocation17_spill] sm:$0xff] }
 0x682   : > { %v3396_v20 = vmul.f32 %v3359_v5, %v8264_v30  ;;  %v8269_v37 = vld [vmem:[#allocation129_spill] sm:$0xff]  ;;  %v2886_v36 = vmul.f32 %v8270_v31, %v8268_v63  ;;  %v8273_v5 = vld [vmem:[#allocation122_spill] sm:$0xff] }
 0x683   : > { %v3123_v46 = vadd.f32 %v3107_v40, %v3091_v43  ;;  %v3124_v6 = vadd.f32 %v3108_v44, %v3092_v1  ;;  %v3470_v62 = vpop.permute.xlu0 %3469  ;;  %v3601_v19 = vmin.f32 %v3585_v3, 6.0  ;;  %v3602_v61 = vmin.f32 %v3586_v27, 6.0  ;;  %v8272_v43 = vld [vmem:[#allocation102_spill] sm:$0xff] }
 0x684   : > { %v3487_v50 = vsel %vm1081_vm7, %v3468_v23, %v3470_v62  ;;  %v3511_v55 = vsel %vm1081_vm7, %v3470_v62, 0.0  ;;  %v2885_v48 = vmul.f32 %v8269_v37, %v8268_v63  ;;  %v3064_v40 = vsel %vm534_vm0, 0.0, %v8271_v17  ;;  %v8282_v37 = vld [vmem:[#allocation93_spill] sm:$0xff] }
 0x685   : > { %v3219_v41 = vadd.f32 %v3203_v42, %v3123_v46  ;;  %v3220_v28 = vadd.f32 %v3204_v56, %v3124_v6  ;;  %v2816_v2 = vpop.permute.xlu1 %2815  ;;  %v3617_v13 = vmul.f32 %v3601_v19, %v3553_v47  ;;  %v3618_v57 = vmul.f32 %v3602_v61, %v3554_v35  ;;  %v8274_v46 = vld [vmem:[#allocation24_spill] sm:$0xff]  ;;  %v8277_v61 = vld [vmem:[#allocation105_spill] sm:$0xff] }
 0x686   : > { %v2856_v45 = vsel %vm534_vm0, 0.0, %v2816_v2  ;;  %v3523_v22 = vmul.f32 %v3487_v50, %v8266_v38  ;;  %v3524_v47 = vmul.f32 %v3511_v55, %v8266_v38  ;;  %v3040_v1 = vsel %vm534_vm0, %v8271_v17, %v8272_v43  ;;  %v8276_v50 = vld [vmem:[#allocation90_spill] sm:$0xff] }
 0x687   : > { %v3411_v32 = vadd.f32 %v3395_v54, %v3219_v41  ;;  %v3412_v26 = vadd.f32 %v3396_v20, %v3220_v28  ;;  %v2818_v0 = vpop.permute.xlu0 %2817  ;;  %v2869_v7 = vmul.f32 %v2856_v45, %v8267_v16  ;;  %v7178_v18 = vmul.f32 0.16666667, %v3617_v13  ;;  %v8278_v45 = vld [vmem:[#allocation60_spill] sm:$0xff]  ;;  %v8279_v13 = vld [vmem:[#allocation97_spill] sm:$0xff] }
 0x688   : > { %v2832_v12 = vsel %vm534_vm0, %v2816_v2, %v2818_v0  ;;  %v7180_v21 = vmul.f32 0.16666667, %v3618_v57  ;;  %v3077_v25 = vmul.f32 %v3064_v40, %v8275_v29  ;;  %v3168_v41 = vsel %vm1081_vm7, %v8277_v61, %v8276_v50  ;;  %v8281_v0 = vld [vmem:[#allocation66_spill] sm:$0xff] }
 0x689   : > { %v3443_v8 = vadd.f32 %v3427_v51, %v3411_v32  ;;  %v3444_v34 = vadd.f32 %v3428_v59, %v3412_v26  ;;  %v2870_v35 = vmul.f32 %v2832_v12, %v8267_v16  ;;  %v2928_v58 = vpop.permute.xlu1 %2927  ;;  %v2901_v3 = vadd.f32 %v2885_v48, %v2869_v7  ;;  %v8283_v48 = vld [vmem:[#allocation21_spill] sm:$0xff]  ;;  %v8289_v61 = vld [vmem:[#allocation106_spill] sm:$0xff] }
 0x68a   : > { %v3652_v15 = vadd.f32 %v7180_v21, %v7178_v18  ;;  %v3078_v51 = vmul.f32 %v3040_v1, %v8275_v29  ;;  %v3192_v55 = vsel %vm1081_vm7, %v8276_v50, 0.0  ;;  %v3109_v57 = vmul.f32 %v8279_v13, %v8278_v45  ;;  %v8285_v1 = vld [vmem:[#allocation63_spill] sm:$0xff] }
 0x68b   : > { %v3539_v39 = vadd.f32 %v3523_v22, %v3443_v8  ;;  %v3540_v44 = vadd.f32 %v3524_v47, %v3444_v34  ;;  %v2930_v23 = vpop.permute.xlu0 %2929  ;;  %v2902_v53 = vadd.f32 %v2886_v36, %v2870_v35  ;;  %v3110_v59 = vmul.f32 %v8280_v33, %v8278_v45  ;;  %v8284_v36 = vld [vmem:[#allocation2_spill] sm:$0xff]  ;;  %v8287_v29 = vld [vmem:[#allocation35_spill] sm:$0xff] }
 0x68c   : > { %v2944_v42 = vsel %vm1081_vm7, %v2928_v58, %v2930_v23  ;;  %v2968_v24 = vsel %vm1081_vm7, %v2930_v23, 0.0  ;;  %3653 = vadd.xlane.f32.xlu0 %v3652_v15  ;;  %v3205_v16 = vmul.f32 %v3168_v41, %v8281_v0  ;;  %v3206_v34 = vmul.f32 %v3192_v55, %v8281_v0  ;;  %v8290_v45 = vld [vmem:[#allocation3_spill] sm:$0xff] }
 0x68d   : > { %v3555_v27 = vadd.f32 %v3539_v39, %v8273_v5  ;;  %v3556_v56 = vadd.f32 %v3540_v44, %v8273_v5  ;;  %v2981_v6 = vmul.f32 %v2944_v42, %v8274_v46  ;;  %v2982_v62 = vmul.f32 %v2968_v24, %v8274_v46  ;;  %v3344_v19 = vpop.permute.xlu1 %3343 }
 0x68e   : > { %v3384_v7 = vsel %vm534_vm0, 0.0, %v3344_v19  ;;  %v3429_v31 = vmul.f32 %v8283_v48, %v8282_v37  ;;  %v3430_v15 = vmul.f32 %v8284_v36, %v8282_v37  ;;  %v3065_v13 = vsel %vm534_vm0, 0.0, %v8290_v45 }
 0x68f   : > { %v3571_v30 = vadd.f32 3.0, %v3555_v27  ;;  %v3572_v54 = vadd.f32 3.0, %v3556_v56  ;;  %v2997_v28 = vadd.f32 %v2981_v6, %v2901_v3  ;;  %v2998_v20 = vadd.f32 %v2982_v62, %v2902_v53  ;;  %v3346_v2 = vpop.permute.xlu0 %3345  ;;  %v8286_v62 = vld [vmem:[#allocation114_spill] sm:$0xff] }
 0x690   : > { %v3360_v12 = vsel %vm534_vm0, %v3344_v19, %v3346_v2  ;;  %v3397_v39 = vmul.f32 %v3384_v7, %v8285_v1 }
 0x691   : > { %v3093_v32 = vadd.f32 %v3077_v25, %v2997_v28  ;;  %v3094_v26 = vadd.f32 %v3078_v51, %v2998_v20  ;;  %v3472_v38 = vpop.permute.xlu1 %3471  ;;  %v3587_v22 = vmax.f32 %v3571_v30, 0.0  ;;  %v3588_v8 = vmax.f32 %v3572_v54, 0.0  ;;  %v8288_v25 = vld [vmem:[#allocation4_spill] sm:$0xff] }
 0x692   : > { %v3398_v23 = vmul.f32 %v3360_v12, %v8285_v1  ;;  %v2887_v51 = vmul.f32 %v8288_v25, %v8287_v29  ;;  %v8302_v25 = vld [vmem:[#allocation80_spill] sm:$0xff] }
 0x693   : > { %v3125_v47 = vadd.f32 %v3109_v57, %v3093_v32  ;;  %v3126_v35 = vadd.f32 %v3110_v59, %v3094_v26  ;;  %v3474_v58 = vpop.permute.xlu0 %3473  ;;  %v3603_v63 = vmin.f32 %v3587_v22, 6.0  ;;  %v3604_v40 = vmin.f32 %v3588_v8, 6.0  ;;  %v8291_v57 = vld [vmem:[#allocation25_spill] sm:$0xff]  ;;  %v8292_v26 = vld [vmem:[#allocation72_spill] sm:$0xff] }
 0x694   : > { %v3488_v17 = vsel %vm1081_vm7, %v3472_v38, %v3474_v58  ;;  %v3512_v53 = vsel %vm1081_vm7, %v3474_v58, 0.0  ;;  %v3041_v32 = vsel %vm534_vm0, %v8290_v45, %v8291_v57  ;;  %v2888_v33 = vmul.f32 %v8292_v26, %v8287_v29  ;;  %v8293_v38 = vld [vmem:[#allocation5_spill] sm:$0xff]  ;;  %v8294_v22 = vld [vmem:[#allocation28_spill] sm:$0xff] }
 0x695   : > { %v3221_v43 = vadd.f32 %v3205_v16, %v3125_v47  ;;  %v3222_v44 = vadd.f32 %v3206_v34, %v3126_v35  ;;  %v2820_v3 = vpop.permute.xlu1 %2819  ;;  %v3619_v24 = vmul.f32 %v3603_v63, %v3555_v27  ;;  %v3620_v5 = vmul.f32 %v3604_v40, %v3556_v56  ;;  %v8295_v63 = vld [vmem:[#allocation82_spill] sm:$0xff] }
 0x696   : > { %v2857_v42 = vsel %vm534_vm0, 0.0, %v2820_v3  ;;  %v3525_v19 = vmul.f32 %v3488_v17, %v8286_v62  ;;  %v3526_v27 = vmul.f32 %v3512_v53, %v8286_v62  ;;  %v3169_v0 = vsel %vm1081_vm7, %v8294_v22, %v8293_v38  ;;  %v8297_v40 = vld [vmem:[#allocation54_spill] sm:$0xff] }
 0x697   : > { %v3413_v46 = vadd.f32 %v3397_v39, %v3221_v43  ;;  %v3414_v6 = vadd.f32 %v3398_v23, %v3222_v44  ;;  %v2822_v50 = vpop.permute.xlu0 %2821  ;;  %v2871_v41 = vmul.f32 %v2857_v42, %v8289_v61  ;;  %v7230_v54 = vmul.f32 0.16666667, %v3619_v24  ;;  %v8298_v39 = vld [vmem:[#allocation62_spill] sm:$0xff]  ;;  %v8299_v44 = vld [vmem:[#allocation68_spill] sm:$0xff] }
 0x698   : > { %v2833_v30 = vsel %vm534_vm0, %v2820_v3, %v2822_v50  ;;  %v7232_v28 = vmul.f32 0.16666667, %v3620_v5  ;;  %v3193_v16 = vsel %vm1081_vm7, %v8293_v38, 0.0  ;;  %v3079_v43 = vmul.f32 %v3065_v13, %v8297_v40 }
 0x699   : > { %v3445_v20 = vadd.f32 %v3429_v31, %v3413_v46  ;;  %v3446_v2 = vadd.f32 %v3430_v15, %v3414_v6  ;;  %v2872_v56 = vmul.f32 %v2833_v30, %v8289_v61  ;;  %v2932_v55 = vpop.permute.xlu1 %2931  ;;  %v2903_v34 = vadd.f32 %v2887_v51, %v2871_v41  ;;  %v8296_v31 = vld [vmem:[#allocation46_spill] sm:$0xff]  ;;  %v8300_v46 = vld [vmem:[#allocation104_spill] sm:$0xff]  ;;  %v8303_v51 = vld [vmem:[#allocation69_spill] sm:$0xff] }
 0x69a   : > { %v3655_v59 = vadd.f32 %v7232_v28, %v7230_v54  ;;  %v3080_v1 = vmul.f32 %v3041_v32, %v8297_v40  ;;  %v3111_v23 = vmul.f32 %v8299_v44, %v8298_v39  ;;  %v3207_v6 = vmul.f32 %v3169_v0, %v8300_v46  ;;  %v8307_v0 = vld [vmem:[#allocation39_spill] sm:$0xff] }
 0x69b   : > { %v3541_v7 = vadd.f32 %v3525_v19, %v3445_v20  ;;  %v3542_v12 = vadd.f32 %v3526_v27, %v3446_v2  ;;  %v2934_v8 = vpop.permute.xlu0 %2933  ;;  %v2904_v47 = vadd.f32 %v2888_v33, %v2872_v56  ;;  %v3208_v62 = vmul.f32 %v3193_v16, %v8300_v46  ;;  %v8301_v19 = vld [vmem:[#allocation132_spill] sm:$0xff]  ;;  %v8306_v33 = vld [vmem:[#allocation33_spill] sm:$0xff] }
 0x69c   : > { %v2945_v35 = vsel %vm1081_vm7, %v2932_v55, %v2934_v8  ;;  %v2969_v58 = vsel %vm1081_vm7, %v2934_v8, 0.0  ;;  %3656 = vadd.xlane.f32.xlu0 %v3655_v59  ;;  %v3112_v29 = vmul.f32 %v8301_v19, %v8298_v39  ;;  %v3431_v50 = vmul.f32 %v8303_v51, %v8302_v25  ;;  %v8304_v56 = vld [vmem:[#allocation36_spill] sm:$0xff]  ;;  %v8305_v55 = vld [vmem:[#allocation77_spill] sm:$0xff]  ;;  %v8312_v51 = vld [vmem:[#allocation55_spill] sm:$0xff] }
 0x69d   : > { %v3557_v37 = vadd.f32 %v3541_v7, %v8295_v63  ;;  %v3558_v48 = vadd.f32 %v3542_v12, %v8295_v63  ;;  %v2983_v36 = vmul.f32 %v2945_v35, %v8296_v31  ;;  %v2984_v15 = vmul.f32 %v2969_v58, %v8296_v31  ;;  %v3348_v17 = vpop.permute.xlu1 %3347  ;;  %v8308_v7 = vld [vmem:[#allocation137_spill] sm:$0xff] }
 0x69e   : > { %v3385_v30 = vsel %vm534_vm0, 0.0, %v3348_v17  ;;  %v2889_v45 = vmul.f32 %v8305_v55, %v8304_v56  ;;  %v2890_v12 = vmul.f32 %v8308_v7, %v8304_v56  ;;  %v8314_v56 = vld [vmem:[#allocation138_spill] sm:$0xff]  ;;  %v8318_v7 = vld [vmem:[#allocation89_spill] sm:$0xff] }
 0x69f   : > { %v3573_v3 = vadd.f32 3.0, %v3557_v37  ;;  %v3574_v53 = vadd.f32 3.0, %v3558_v48  ;;  %v2999_v42 = vadd.f32 %v2983_v36, %v2903_v34  ;;  %v3000_v24 = vadd.f32 %v2984_v15, %v2904_v47  ;;  %v3350_v5 = vpop.permute.xlu0 %3349  ;;  %v8309_v36 = vld [vmem:[#allocation135_spill] sm:$0xff] }
 0x6a0   : > { %v3361_v27 = vsel %vm534_vm0, %v3348_v17, %v3350_v5  ;;  %v3399_v16 = vmul.f32 %v3385_v30, %v8307_v0  ;;  %v3066_v15 = vsel %vm534_vm0, 0.0, %v8309_v36  ;;  %v8310_v17 = vld [vmem:[#allocation75_spill] sm:$0xff]  ;;  %v3194_v55 = vsel %vm1081_vm7, %v8314_v56, 0.0 }
 0x6a1   : > { %v3095_v61 = vadd.f32 %v3079_v43, %v2999_v42  ;;  %v3096_v41 = vadd.f32 %v3080_v1, %v3000_v24  ;;  %v2824_v20 = vpop.permute.xlu1 %2823  ;;  %v3589_v2 = vmax.f32 %v3573_v3, 0.0  ;;  %v3590_v57 = vmax.f32 %v3574_v53, 0.0 }
 0x6a2   : > { %v2858_v13 = vsel %vm534_vm0, 0.0, %v2824_v20  ;;  %v3400_v58 = vmul.f32 %v3361_v27, %v8307_v0  ;;  %v3432_v40 = vmul.f32 %v8310_v17, %v8302_v25 }
 0x6a3   : > { %v3127_v32 = vadd.f32 %v3111_v23, %v3095_v61  ;;  %v3128_v26 = vadd.f32 %v3112_v29, %v3096_v41  ;;  %v2873_v59 = vmul.f32 %v2858_v13, %v8306_v33  ;;  %v2826_v38 = vpop.permute.xlu0 %2825  ;;  %v3605_v22 = vmin.f32 %v3589_v2, 6.0  ;;  %v8313_v41 = vld [vmem:[#allocation136_spill] sm:$0xff] }
 0x6a4   : > { %v2834_v8 = vsel %vm534_vm0, %v2824_v20, %v2826_v38  ;;  %v3606_v34 = vmin.f32 %v3590_v57, 6.0  ;;  %v3081_v61 = vmul.f32 %v3066_v15, %v8312_v51  ;;  %v3082_v30 = vmul.f32 %v8313_v41, %v8312_v51  ;;  %v8316_v57 = vld [vmem:[#allocation87_spill] sm:$0xff]  ;;  %v8321_v15 = vld [vmem:[#allocation130_spill] sm:$0xff] }
 0x6a5   : > { %v3223_v47 = vadd.f32 %v3207_v6, %v3127_v32  ;;  %v3224_v35 = vadd.f32 %v3208_v62, %v3128_v26  ;;  %v2874_v63 = vmul.f32 %v2834_v8, %v8306_v33  ;;  %v2936_v31 = vpop.permute.xlu1 %2935  ;;  %v3621_v43 = vmul.f32 %v3605_v22, %v3557_v37  ;;  %v8311_v6 = vld [vmem:[#allocation47_spill] sm:$0xff]  ;;  %v8319_v8 = vld [vmem:[#allocation109_spill] sm:$0xff] }
 0x6a6   : > { %v3622_v1 = vmul.f32 %v3606_v34, %v3558_v48  ;;  %v2905_v23 = vadd.f32 %v2889_v45, %v2873_v59  ;;  %v8317_v59 = vld [vmem:[#allocation119_spill] sm:$0xff]  ;;  %v3210_v36 = vmul.f32 %v3194_v55, %v8319_v8 }
 0x6a7   : > { %v3415_v39 = vadd.f32 %v3399_v16, %v3223_v47  ;;  %v3416_v44 = vadd.f32 %v3400_v58, %v3224_v35  ;;  %v2906_v3 = vadd.f32 %v2890_v12, %v2874_v63  ;;  %v2938_v53 = vpop.permute.xlu0 %2937  ;;  %v7284_v5 = vmul.f32 0.16666667, %v3621_v43  ;;  %v8320_v34 = vld [vmem:[#allocation139_spill] sm:$0xff] }
 0x6a8   : > { %v2946_v42 = vsel %vm1081_vm7, %v2936_v31, %v2938_v53  ;;  %v2970_v24 = vsel %vm1081_vm7, %v2938_v53, 0.0  ;;  %v7286_v46 = vmul.f32 0.16666667, %v3622_v1  ;;  %v3209_v47 = vmul.f32 %v8320_v34, %v8319_v8  ;;  %v8322_v1 = vld [vmem:[#allocation98_spill] sm:$0xff] }
 0x6a9   : > { %v2985_v62 = vmul.f32 %v2946_v42, %v8311_v6  ;;  %v2986_v19 = vmul.f32 %v2970_v24, %v8311_v6  ;;  %v3476_v29 = vpop.permute.xlu1 %3475  ;;  %v3447_v37 = vadd.f32 %v3431_v50, %v3415_v39  ;;  %v3448_v48 = vadd.f32 %v3432_v40, %v3416_v44  ;;  %v8315_v50 = vld [vmem:[#allocation61_spill] sm:$0xff]  ;;  %v8323_v42 = vld [vmem:[#allocation116_spill] sm:$0xff] }
 0x6aa   : > { %v3658_v25 = vadd.f32 %v7286_v46, %v7284_v5  ;;  %v3113_v32 = vmul.f32 %v8316_v57, %v8315_v50  ;;  %v3114_v12 = vmul.f32 %v8318_v7, %v8315_v50  ;;  %v3433_v24 = vmul.f32 %v6913_v14, %v8323_v42  ;;  %v8325_v57 = vld [vmem:[#allocation86_spill] sm:$0xff] }
 0x6ab   : > { %v3001_v20 = vadd.f32 %v2985_v62, %v2905_v23  ;;  %v3002_v2 = vadd.f32 %v2986_v19, %v2906_v3  ;;  %v3478_v27 = vpop.permute.xlu0 %3477 }
 0x6ac   : > { %v3489_v45 = vsel %vm1081_vm7, %v3476_v29, %v3478_v27  ;;  %v3513_v13 = vsel %vm1081_vm7, %v3478_v27, 0.0  ;;  %3659 = vadd.xlane.f32.xlu1 %v3658_v25 }
 0x6ad   : > { %v3097_v26 = vadd.f32 %v3081_v61, %v3001_v20  ;;  %v3098_v33 = vadd.f32 %v3082_v30, %v3002_v2  ;;  %v3527_v38 = vmul.f32 %v3489_v45, %v8317_v59  ;;  %v3528_v22 = vmul.f32 %v3513_v13, %v8317_v59  ;;  %v3352_v0 = vpop.permute.xlu1 %3351  ;;  %v8324_v30 = vld [vmem:[#allocation120_spill] sm:$0xff] }
 0x6ae   : > { %v3386_v16 = vsel %vm534_vm0, 0.0, %v3352_v0 }
 0x6af   : > { %v3543_v35 = vadd.f32 %v3527_v38, %v3447_v37  ;;  %v3544_v58 = vadd.f32 %v3528_v22, %v3448_v48  ;;  %v3129_v63 = vadd.f32 %v3113_v32, %v3097_v26  ;;  %v3354_v31 = vpop.permute.xlu0 %3353  ;;  %v3401_v17 = vmul.f32 %v3386_v16, %v8321_v15 }
 0x6b0   : > { %v3130_v40 = vadd.f32 %v3114_v12, %v3098_v33  ;;  %v3362_v43 = vsel %vm534_vm0, %v3352_v0, %v3354_v31  ;;  %v3434_v48 = vmul.f32 %v6924_v60, %v8323_v42 }
 0x6b1   : > { %v3559_v39 = vadd.f32 %v3543_v35, %v8322_v1  ;;  %v3560_v44 = vadd.f32 %v3544_v58, %v8322_v1  ;;  %v3225_v23 = vadd.f32 %v3209_v47, %v3129_v63  ;;  %v3402_v3 = vmul.f32 %v3362_v43, %v8321_v15  ;;  %v3480_v29 = vpop.permute.xlu1 %3479  ;;  %v8326_v15 = vld [vmem:[#allocation85_spill] sm:$0xff] }
 0x6b2   : > { %v3226_v53 = vadd.f32 %v3210_v36, %v3130_v40  ;;  %v8327_v40 = vld [vmem:[#allocation127_spill] sm:$0xff]  ;;  %v8328_v1 = vld [vmem:[#allocation117_spill] sm:$0xff] }
 0x6b3   : > { %v3575_v6 = vadd.f32 3.0, %v3559_v39  ;;  %v3576_v62 = vadd.f32 3.0, %v3560_v44  ;;  %v3417_v19 = vadd.f32 %v3401_v17, %v3225_v23  ;;  %v3482_v37 = vpop.permute.xlu0 %3481 }
 0x6b4   : > { %v3418_v25 = vadd.f32 %v3402_v3, %v3226_v53  ;;  %v3490_v51 = vsel %vm1081_vm7, %v3480_v29, %v3482_v37  ;;  %v3514_v61 = vsel %vm1081_vm7, %v3482_v37, 0.0  ;;  %v8331_v29 = vld [vmem:[#allocation115_spill] sm:$0xff] }
 0x6b5   : > { %v3449_v41 = vadd.f32 %v3433_v24, %v3417_v19  ;;  %v3529_v20 = vmul.f32 %v3490_v51, %v8324_v30  ;;  %v3530_v2 = vmul.f32 %v3514_v61, %v8324_v30  ;;  %v3591_v27 = vmax.f32 %v3575_v6, 0.0  ;;  %v8333_v51 = vld [vmem:[#allocation65_spill] sm:$0xff] }
 0x6b6   : > { %v3450_v14 = vadd.f32 %v3434_v48, %v3418_v25  ;;  %v3592_v56 = vmax.f32 %v3576_v62, 0.0  ;;  %v8330_v62 = vld [vmem:[#allocation113_spill] sm:$0xff]  ;;  %v8332_v48 = vld [vmem:[#allocation88_spill] sm:$0xff] }
 0x6b7   : > { %v3545_v55 = vadd.f32 %v3529_v20, %v3449_v41  ;;  %v3607_v45 = vmin.f32 %v3591_v27, 6.0  ;;  %v8334_v27 = vld [vmem:[#allocation128_spill] sm:$0xff] }
 0x6b8   : > { %v3546_v13 = vadd.f32 %v3530_v2, %v3450_v14  ;;  %v3608_v50 = vmin.f32 %v3592_v56, 6.0  ;;  %v8335_v56 = vld [vmem:[#allocation91_spill] sm:$0xff] }
 0x6b9   : > { %v3561_v32 = vadd.f32 %v3545_v55, %v8325_v57  ;;  %v3623_v60 = vmul.f32 %v3607_v45, %v3559_v39  ;;  %v8336_v45 = vld [vmem:[#allocation92_spill] sm:$0xff] }
 0x6ba   : > { %v3562_v26 = vadd.f32 %v3546_v13, %v8325_v57  ;;  %v3624_v33 = vmul.f32 %v3608_v50, %v3560_v44  ;;  %v8329_v44 = vld [vmem:[#allocation121_spill] sm:$0xff]  ;;  %v8337_v50 = vld [vmem:[#allocation44_spill] sm:$0xff] }
 0x6bb   : > { %v3577_v59 = vadd.f32 3.0, %v3561_v32  ;;  %v7324_v38 = vmul.f32 0.16666667, %v3623_v60 }
 0x6bc   : > { %v3578_v22 = vadd.f32 3.0, %v3562_v26  ;;  %v7326_v0 = vmul.f32 0.16666667, %v3624_v33 }
 0x6bd   : > { %v3593_v16 = vmax.f32 %v3577_v59, 0.0  ;;  %v8338_v59 = vld [vmem:[#allocation67_spill] sm:$0xff] }
 0x6be   : > { %v3661_v7 = vadd.f32 %v7326_v0, %v7324_v38  ;;  %v3594_v12 = vmax.f32 %v3578_v22, 0.0 }
 0x6bf   : > { %v3609_v8 = vmin.f32 %v3593_v16, 6.0  ;;  %v8339_v16 = vld [vmem:[#allocation74_spill] sm:$0xff] }
 0x6c0   : > { %3662 = vadd.xlane.f32.xlu0 %v3661_v7  ;;  %v3610_v34 = vmin.f32 %v3594_v12, 6.0  ;;  %v8340_v12 = vld [vmem:[#allocation79_spill] sm:$0xff] }
 0x6c1   : > { %v3625_v47 = vmul.f32 %v3609_v8, %v3561_v32 }
 0x6c2   : > { %v2331_v35 = vpop.permute.xlu1 %2330  ;;  %v3626_v58 = vmul.f32 %v3610_v34, %v3562_v26  ;;  %v8341_v34 = vld [vmem:[#allocation84_spill] sm:$0xff] }
 0x6c3   : > { %v7330_v63 = vmul.f32 0.16666667, %v3625_v47  ;;  %v2368_v17 = vmul.f32 %v2331_v35, %v8326_v15  ;;  %v2369_v43 = vmul.f32 %v2331_v35, %v8327_v40  ;;  %v8342_v15 = vmov 0.0   ;;  %v4433_v40 = vld [vmem:[%s7507_s5] sm:$0xff] }
 0x6c4   : > { %v2336_v31 = vpop.permute.xlu0 %2335  ;;  %v7332_v36 = vmul.f32 0.16666667, %v3626_v58 }
 0x6c5   : > { %v2370_v39 = vmul.f32 %v2336_v31, %v8328_v1  ;;  %v2371_v23 = vmul.f32 %v2336_v31, %v8329_v44  ;;  %v7355_v31 = vld [vmem:[%s7511_s9] sm:$0xff] }
 0x6c6   : > { %v2341_v3 = vpop.permute.xlu1 %2340  ;;  %v3664_v53 = vadd.f32 %v7332_v36, %v7330_v63 }
 0x6c7   : > { %v4290_v42 = vpack.c.bf16 %v2371_v23, %v2369_v43  ;;  %v4292_v24 = vpack.c.bf16 %v2370_v39, %v2368_v17  ;;  %v2372_v19 = vmul.f32 %v2341_v3, %v8330_v62  ;;  %v2373_v37 = vmul.f32 %v2341_v3, %v8331_v29  ;;  %v7363_v17 = vld [vmem:[%s7511_s9 + $0x8] sm:$0xff] }
 0x6c8   : > { %3665 = vadd.xlane.f32.xlu1 %v3664_v53  ;;  %v2346_v6 = vpop.permute.xlu0 %2345 }
 0x6c9   : > { %v2374_v25 = vmul.f32 %v2346_v6, %v8332_v48  ;;  %v2375_v61 = vmul.f32 %v2346_v6, %v8333_v51  ;;  %4291 = vmatprep.subr.bf16.mxu0 %v4290_v42 }
 0x6ca   : > { %4293 = vmatpush1.bf16.msra.mxu0 %v4292_v24  ;;  %v2351_v41 = vpop.permute.xlu1 %2350 }
 0x6cb   : > { %v4294_v30 = vpack.c.bf16 %v2375_v61, %v2373_v37  ;;  %v4296_v20 = vpack.c.bf16 %v2374_v25, %v2372_v19  ;;  %v2376_v14 = vmul.f32 %v2351_v41, %v8334_v27  ;;  %v2377_v55 = vmul.f32 %v2351_v41, %v8335_v56 }
 0x6cc   : > { %v2356_v2 = vpop.permute.xlu0 %2355 }
 0x6cd   : > { %v2378_v13 = vmul.f32 %v2356_v2, %v8336_v45  ;;  %v2379_v57 = vmul.f32 %v2356_v2, %v8337_v50  ;;  %4295 = vmatprep.subr.bf16.mxu0 %v4294_v30  ;;  %v4435_v2 = vld [vmem:[%s7509_s7] sm:$0xff] }
 0x6ce   : > { %4297 = vmatpush1.bf16.msra.mxu0 %v4296_v20  ;;  %v2366_v32 = vpop.permute.xlu1 %2365  ;;  %v4434_v20 = vld [vmem:[%s7507_s5 + $0x8] sm:$0xff] }
 0x6cf   : > { %v4298_v60 = vpack.c.bf16 %v2379_v57, %v2377_v55  ;;  %v4300_v26 = vpack.c.bf16 %v2378_v13, %v2376_v14  ;;  %v2382_v22 = vmul.f32 %v2366_v32, %v8338_v59  ;;  %v2383_v7 = vmul.f32 %v2366_v32, %v8339_v16  ;;  %v4436_v13 = vld [vmem:[%s7508_s6 + $0x8] sm:$0xff]  ;;  %v4437_v32 = vld [vmem:[%s7508_s6] sm:$0xff]  ;;  %v4439_v16 = vld [vmem:[%s7509_s7 + $0x10] sm:$0xff] }
 0x6d0   : > { %v2361_v33 = vpop.permute.xlu0 %2360 }
 0x6d1   : > { %v2380_v8 = vmul.f32 %v2361_v33, %v8340_v12  ;;  %v2381_v47 = vmul.f32 %v2361_v33, %v8341_v34  ;;  %4299 = vmatprep.subr.bf16.mxu0 %v4298_v60  ;;  %v4441_v12 = vld [vmem:[%s7509_s7 + $0x20] sm:$0xff]  ;;  %v4443_v34 = vld [vmem:[%s7509_s7 + $0x30] sm:$0xff] }
 0x6d2   : > { %4301 = vmatpush1.bf16.msra.mxu0 %v4300_v26 }
 0x6d3   : > { %v4302_v35 = vpack.c.bf16 %v2383_v7, %v2381_v47  ;;  %v4304_v58 = vpack.c.bf16 %v2382_v22, %v2380_v8  ;;  %v4438_v22 = vld [vmem:[%s7509_s7 + $0x8] sm:$0xff]  ;;  %v4440_v7 = vld [vmem:[%s7509_s7 + $0x18] sm:$0xff] }
 0x6d4   : > { %v4442_v8 = vld [vmem:[%s7509_s7 + $0x28] sm:$0xff]  ;;  %v4444_v47 = vld [vmem:[%s7509_s7 + $0x38] sm:$0xff] }
 0x6d5   : > { %4303 = vmatprep.subr.bf16.mxu0 %v4302_v35 }
 0x6d6   : > { %4305 = vmatpush1.bf16.msra.mxu0 %v4304_v58  ;;  %v4445_v58 = vld [vmem:[%s7510_s8 + $0x8] sm:$0xff] }
 0x6d9   : > { %4122 = vmatmul.mubr.msk.f32.vlgmr.msra.gmra.mrb[16].mxu0 %vm2083_vm8, %v7355_v31 }
 0x6da   : > { %2470 = vmatprep.mubr.f32.mxu0 %v8342_v15 }
 0x6dd   : > { %4123 = vmatmul.mubr.msk.f32.gmra.mrb[18].mxu0 %vm2083_vm8, %v7363_v17 }
 0x6de   : > { %4247 = vmatprep.mubr.msk.f32.mxu0 %vm2083_vm8, %v4433_v40 }
 0x6fd   : > { %v3648_v43 = vpop.xlane.xlu0 %3647 }
 0x6fe   : > { %v3668_v39 = vmul.f32 0.00390625, %v3648_v43 }
 0x700   : > { %v3645_v1 = vpop.xlane.xlu1 %3644 }
 0x701   : > { %v3667_v44 = vmul.f32 0.00390625, %v3645_v1  ;;  %v4446_v1 = vld [vmem:[%s7510_s8] sm:$0xff] }
 0x703   : > { %v4310_v23 = vpack.c.bf16 %v3668_v39, %v3667_v44 }
 0x705   : > { %4311 = vmatprep.subr.bf16.mxu0 %v4310_v23 }
 0x706   : > { %4313 = vmatpush3.bf16.msra.mxu0 %v4310_v23 }
 0x709   : > { %v3651_v3 = vpop.xlane.xlu1 %3650 }
 0x70a   : > { %v3669_v42 = vmul.f32 0.00390625, %v3651_v3 }
 0x719   : > { %v3654_v53 = vpop.xlane.xlu0 %3653 }
 0x71a   : > { %v3670_v24 = vmul.f32 0.00390625, %v3654_v53 }
 0x71c   : > { %v4314_v6 = vpack.c.bf16 %v3670_v24, %v3669_v42  ;;  %v4447_v42 = vld [vmem:[%s7510_s8 + $0x18] sm:$0xff] }
 0x71e   : > { %4315 = vmatprep.subr.bf16.mxu0 %v4314_v6 }
 0x71f   : > { %4317 = vmatpush3.bf16.msra.mxu0 %v4314_v6 }
 0x729   : > { %v3657_v62 = vpop.xlane.xlu0 %3656 }
 0x72a   : > { %v3671_v29 = vmul.f32 0.00390625, %v3657_v62 }
 0x739   : > { %v3660_v19 = vpop.xlane.xlu1 %3659 }
 0x73a   : > { %v3672_v37 = vmul.f32 0.00390625, %v3660_v19  ;;  %v4448_v19 = vld [vmem:[%s7510_s8 + $0x10] sm:$0xff] }
 0x73c   : > { %v4318_v48 = vpack.c.bf16 %v3672_v37, %v3671_v29 }
 0x73e   : > { %4319 = vmatprep.subr.bf16.mxu0 %v4318_v48 }
 0x73f   : > { %4321 = vmatpush3.bf16.msra.mxu0 %v4318_v48 }
 0x74d   : > { %v3663_v25 = vpop.xlane.xlu0 %3662 }
 0x74e   : > { %v3673_v61 = vmul.f32 0.00390625, %v3663_v25 }
 0x755   : > { %v3666_v51 = vpop.xlane.xlu1 %3665 }
 0x756   : > { %v3674_v41 = vmul.f32 0.00390625, %v3666_v51 }
 0x758   : > { %v4322_v30 = vpack.c.bf16 %v3674_v41, %v3673_v61 }
 0x75a   : > { %4323 = vmatprep.subr.bf16.mxu0 %v4322_v30 }
 0x75b   : > { %4325 = vmatpush3.bf16.msra.mxu0 %v4322_v30 }
 0x75e   : > { %4248 = vmatmul.mubr.msk.f32.vlgmr.msra.gmra.mrb[20].mxu0 %vm2083_vm8, %v4434_v20  ;;  %v4449_v20 = vld [vmem:[%s7510_s8 + $0x28] sm:$0xff] }
 0x75f   : > { %4254 = vmatprep.mubr.msk.f32.mxu0 %vm534_vm0, %v4435_v2 }
 0x7ac   : > { %v7379_v27 = vpop.f32.mrb[16].mxu0 }
 0x7ad   : > { %v7381_v14 = vpop.f32.mrb[17].mxu0 }
 0x7b0   : > { %v7383_v56 = vpop.f32.mrb[18].mxu0 }
 0x7b1   : > { %v7385_v55 = vpop.f32.mrb[19].mxu0 }
 0x831   : > { %v4249_v45 = vpop.f32.mrb[20].mxu0 }
 0x832   : > { %v3747_v50 = vadd.f32 %v4436_v13, %v4249_v45  ;;  %v3741_v57 = vpop.f32.mrb[21].mxu0 }
 0x833   : > { %v3742_v60 = vadd.f32 %v4437_v32, %v3741_v57  ;;  %v4450_v57 = vld [vmem:[%s7510_s8 + $0x20] sm:$0xff] }
 0x834   : > { %v3751_v26 = vmax.f32 %v3747_v50, 0.0 }
 0x835   : > { %v3750_v33 = vmax.f32 %v3742_v60, 0.0 }
 0x837   : > { %v4326_v59 = vpack.c.bf16 %v3751_v26, %v3750_v33 }
 0x839   : > { %4327 = vmatprep.subr.bf16.mxu0 %v4326_v59 }
 0x83a   : > { %4329 = vmatpush3.bf16.msra.mxu0 %v4326_v59 }
 0x83d   : > { %4255 = vmatmul.mubr.msk.f32.vlgmr.msra.gmra.mrb[22].mxu0 %vm534_vm0, %v4438_v22 }
 0x83e   : > { %4257 = vmatprep.mubr.msk.f32.mxu0 %vm534_vm0, %v4439_v16 }
 0x841   : > { %4258 = vmatmul.mubr.msk.f32.gmra.mrb[24].mxu0 %vm534_vm0, %v4440_v7 }
 0x842   : > { %4260 = vmatprep.mubr.msk.f32.mxu0 %vm534_vm0, %v4441_v12  ;;  %v4451_v12 = vld [vmem:[%s7510_s8 + $0x38] sm:$0xff] }
 0x845   : > { %4261 = vmatmul.mubr.msk.f32.gmra.mrb[26].mxu0 %vm534_vm0, %v4442_v8 }
 0x846   : > { %4263 = vmatprep.mubr.msk.f32.mxu0 %vm534_vm0, %v4443_v34 }
 0x849   : > { %4264 = vmatmul.mubr.msk.f32.gmra.mrb[28].mxu0 %vm534_vm0, %v4444_v47 }
 0x910   : > { %v4256_v35 = vpop.f32.mrb[22].mxu0 }
 0x911   : > { %v3824_v40 = vadd.f32 %v4445_v58, %v4256_v35  ;;  %v3818_v43 = vpop.f32.mrb[23].mxu0  ;;  %v4452_v58 = vld [vmem:[%s7510_s8 + $0x30] sm:$0xff] }
 0x912   : > { %v3819_v39 = vadd.f32 %v4446_v1, %v3818_v43 }
 0x913   : > { %v3858_v44 = vadd.f32 3.0, %v3824_v40 }
 0x914   : > { %v3857_v23 = vadd.f32 3.0, %v3819_v39  ;;  %v4259_v3 = vpop.f32.mrb[24].mxu0 }
 0x915   : > { %v3866_v53 = vmax.f32 %v3858_v44, 0.0  ;;  %v3834_v24 = vadd.f32 %v4447_v42, %v4259_v3  ;;  %v3828_v6 = vpop.f32.mrb[25].mxu0 }
 0x916   : > { %v3865_v62 = vmax.f32 %v3857_v23, 0.0  ;;  %v3829_v29 = vadd.f32 %v4448_v19, %v3828_v6 }
 0x917   : > { %v3874_v37 = vmin.f32 %v3866_v53, 6.0  ;;  %v3860_v48 = vadd.f32 3.0, %v3834_v24 }
 0x918   : > { %v3873_v25 = vmin.f32 %v3865_v62, 6.0  ;;  %v3859_v51 = vadd.f32 3.0, %v3829_v29  ;;  %v4262_v61 = vpop.f32.mrb[26].mxu0  ;;  %v449_v29 = vld [vmem:[%s7512_s10] sm:$0xff] }
 0x919   : > { %v3882_v41 = vmul.f32 0.16666667, %v3874_v37  ;;  %v3868_v30 = vmax.f32 %v3860_v48, 0.0  ;;  %v3844_v2 = vadd.f32 %v4449_v20, %v4262_v61  ;;  %v3838_v45 = vpop.f32.mrb[27].mxu0  ;;  %v450_v37 = vld [vmem:[%s7512_s10 + $0x8] sm:$0xff] }
 0x91a   : > { %v3881_v13 = vmul.f32 0.16666667, %v3873_v25  ;;  %v3867_v50 = vmax.f32 %v3859_v51, 0.0  ;;  %v3839_v32 = vadd.f32 %v4450_v57, %v3838_v45 }
 0x91b   : > { %v3876_v60 = vmin.f32 %v3868_v30, 6.0  ;;  %v3862_v26 = vadd.f32 3.0, %v3844_v2  ;;  %3896 = vperm.xlu1 %4416, %v3882_v41  }
 0x91c   : > { %v3875_v33 = vmin.f32 %v3867_v50, 6.0  ;;  %v3861_v59 = vadd.f32 3.0, %v3839_v32  ;;  %v4265_v22 = vpop.f32.mrb[28].mxu0  ;;  %3891 = vperm.xlu0 %4415, %v3881_v13  }
 0x91d   : > { %v3884_v16 = vmul.f32 0.16666667, %v3876_v60  ;;  %v3870_v7 = vmax.f32 %v3862_v26, 0.0  ;;  %v3854_v8 = vadd.f32 %v4451_v12, %v4265_v22  ;;  %v3848_v34 = vpop.f32.mrb[29].mxu0 }
 0x91e   : > { %v3883_v47 = vmul.f32 0.16666667, %v3875_v33  ;;  %v3869_v35 = vmax.f32 %v3861_v59, 0.0  ;;  %v3849_v40 = vadd.f32 %v4452_v58, %v3848_v34 }
 0x91f   : > { %v3878_v43 = vmin.f32 %v3870_v7, 6.0  ;;  %v3864_v1 = vadd.f32 3.0, %v3854_v8 }
 0x920   : > { %v3877_v39 = vmin.f32 %v3869_v35, 6.0  ;;  %v3863_v44 = vadd.f32 3.0, %v3849_v40  ;;  %3901 = vperm.xlu1 %4416, %v3883_v47   ;;  %3906 = vperm.xlu0 %4415, %v3884_v16  }
 0x921   : > { %v3886_v23 = vmul.f32 0.16666667, %v3878_v43  ;;  %v3872_v3 = vmax.f32 %v3864_v1, 0.0 }
 0x922   : > { %v3885_v53 = vmul.f32 0.16666667, %v3877_v39  ;;  %v3871_v42 = vmax.f32 %v3863_v44, 0.0  ;;  %v4457_v44 = vld [vmem:[%s4574_s12 + $0x20] sm:$0xff] }
 0x923   : > { %v3880_v24 = vmin.f32 %v3872_v3, 6.0  ;;  %v4458_v3 = vld [vmem:[%s4574_s12 + $0x28] sm:$0xff] }
 0x924   : > { %v3879_v6 = vmin.f32 %v3871_v42, 6.0  ;;  %3911 = vperm.xlu1 %4416, %v3885_v53   ;;  %3916 = vperm.xlu0 %4415, %v3886_v23  }
 0x925   : > { %v3888_v62 = vmul.f32 0.16666667, %v3880_v24 }
 0x926   : > { %v3887_v19 = vmul.f32 0.16666667, %v3879_v6  ;;  %v4459_v6 = vld [vmem:[%s4574_s12 + $0x30] sm:$0xff] }
 0x928   : > { %3921 = vperm.xlu1 %4416, %v3887_v19   ;;  %3926 = vperm.xlu0 %4415, %v3888_v62  }
 0x92c   : > { %2386 = vperm.xlu1 %4416, %v449_v29   ;;  %2391 = vperm.xlu0 %4415, %v450_v37  }
 0x99a   : > { %v3897_v48 = vpop.permute.xlu1 %3896 }
 0x99b   : > { %v3931_v25 = vmul.f32 %v3897_v48, %v7083_v4  ;;  %v3932_v51 = vmul.f32 %v3897_v48, %v7085_v11  ;;  %v3892_v61 = vpop.permute.xlu0 %3891 }
 0x99c   : > { %v3929_v41 = vmul.f32 %v3892_v61, %v7087_v10  ;;  %v3930_v30 = vmul.f32 %v3892_v61, %v7089_v9 }
 0x99e   : > { %v4330_v20 = vpack.c.bf16 %v3932_v51, %v3930_v30  ;;  %v4332_v2 = vpack.c.bf16 %v3931_v25, %v3929_v41 }
 0x99f   : > { %v3902_v45 = vpop.permute.xlu1 %3901  ;;  %v3907_v13 = vpop.permute.xlu0 %3906 }
 0x9a0   : > { %v3933_v50 = vmul.f32 %v3902_v45, %v7128_v52  ;;  %v3934_v57 = vmul.f32 %v3902_v45, %v7130_v49  ;;  %v3935_v32 = vmul.f32 %v3907_v13, %v7178_v18  ;;  %v3936_v60 = vmul.f32 %v3907_v13, %v7180_v21  ;;  %4331 = vmatprep.subr.bf16.mxu1 %v4330_v20 }
 0x9a1   : > { %4333 = vmatpush1.bf16.msra.mxu1 %v4332_v2 }
 0x9a2   : > { %v4334_v4 = vpack.c.bf16 %v3936_v60, %v3934_v57  ;;  %v4336_v11 = vpack.c.bf16 %v3935_v32, %v3933_v50 }
 0x9a3   : > { %v3912_v26 = vpop.permute.xlu1 %3911  ;;  %v3917_v10 = vpop.permute.xlu0 %3916 }
 0x9a4   : > { %v3937_v9 = vmul.f32 %v3912_v26, %v7230_v54  ;;  %v3938_v33 = vmul.f32 %v3912_v26, %v7232_v28  ;;  %v3939_v59 = vmul.f32 %v3917_v10, %v7284_v5  ;;  %v3940_v52 = vmul.f32 %v3917_v10, %v7286_v46  ;;  %4335 = vmatprep.subr.bf16.mxu1 %v4334_v4 }
 0x9a5   : > { %4337 = vmatpush1.bf16.msra.mxu1 %v4336_v11 }
 0x9a6   : > { %v4338_v49 = vpack.c.bf16 %v3940_v52, %v3938_v33  ;;  %v4340_v18 = vpack.c.bf16 %v3939_v59, %v3937_v9 }
 0x9a7   : > { %v3922_v22 = vpop.permute.xlu1 %3921  ;;  %v3927_v21 = vpop.permute.xlu0 %3926 }
 0x9a8   : > { %v3941_v16 = vmul.f32 %v3922_v22, %v7324_v38  ;;  %v3942_v7 = vmul.f32 %v3922_v22, %v7326_v0  ;;  %v3943_v54 = vmul.f32 %v3927_v21, %v7330_v63  ;;  %v3944_v28 = vmul.f32 %v3927_v21, %v7332_v36  ;;  %4339 = vmatprep.subr.bf16.mxu1 %v4338_v49  ;;  %v4453_v63 = vld [vmem:[%s4574_s12] sm:$0xff] }
 0x9a9   : > { %4341 = vmatpush1.bf16.msra.mxu1 %v4340_v18 }
 0x9aa   : > { %v4342_v5 = vpack.c.bf16 %v3944_v28, %v3942_v7  ;;  %v4344_v46 = vpack.c.bf16 %v3943_v54, %v3941_v16 }
 0x9ab   : > { %v2387_v12 = vpop.permute.xlu1 %2386  ;;  %v2392_v8 = vpop.permute.xlu0 %2391 }
 0x9ac   : > { %v2467_v34 = vadd.f32 %v7379_v27, %v2387_v12  ;;  %v2469_v38 = vadd.f32 %v7381_v14, %v2387_v12  ;;  %v2473_v0 = vadd.f32 %v7383_v56, %v2392_v8  ;;  %v2475_v47 = vadd.f32 %v7385_v55, %v2392_v8  ;;  %4343 = vmatprep.subr.bf16.mxu1 %v4342_v5  ;;  %v4454_v27 = vld [vmem:[%s4574_s12 + $0x8] sm:$0xff]  ;;  %v4455_v56 = vld [vmem:[%s4574_s12 + $0x10] sm:$0xff]  ;;  %v4456_v55 = vld [vmem:[%s4574_s12 + $0x18] sm:$0xff] }
 0x9ad   : > { %4345 = vmatpush1.bf16.msra.mxu1 %v4344_v46 }
 0x9ae   : > { %v2477_v36 = vadd.f32 %v4453_v63, %v2467_v34  ;;  %v2478_v14 = vadd.f32 %v4454_v27, %v2469_v38  ;;  %v2479_v35 = vadd.f32 %v4455_v56, %v2473_v0  ;;  %v2480_v58 = vadd.f32 %v4456_v55, %v2475_v47 }
 0x9b0   : > { %2481 = vst [vmem:[%s7476_s25] sm:$0xff] %v2477_v36  ;;  %2482 = vst [vmem:[%s7476_s25 + $0x8] sm:$0xff] %v2478_v14  ;;  %4146 = vmatmul.mubr.msk.f32.vlgmr.msra.gmra.mrb[26].mxu1 %vm2083_vm8, %v7355_v31 }
 0x9b1   : > { %2483 = vst [vmem:[%s7476_s25 + $0x10] sm:$0xff] %v2479_v35  ;;  %2484 = vst [vmem:[%s7476_s25 + $0x18] sm:$0xff] %v2480_v58  ;;  %4015 = vmatprep.mubr.f32.mxu1 %v8342_v15 }
 0x9b4   : > { %4147 = vmatmul.mubr.msk.f32.gmra.mrb[28].mxu1 %vm2083_vm8, %v7363_v17  ;;  %v4460_v17 = vld [vmem:[%s4574_s12 + $0x38] sm:$0xff] }
 0xa83   : > { %v4011_v40 = vpop.f32.mrb[26].mxu1 }
 0xa84   : > { %v4012_v43 = vadd.f32 %v4011_v40, %v2387_v12  ;;  %v4013_v1 = vpop.f32.mrb[27].mxu1 }
 0xa85   : > { %v4014_v39 = vadd.f32 %v4013_v1, %v2387_v12 }
 0xa86   : > { %v4022_v23 = vadd.f32 %v4457_v44, %v4012_v43 }
 0xa87   : > { %v4023_v53 = vadd.f32 %v4458_v3, %v4014_v39  ;;  %v4017_v42 = vpop.f32.mrb[28].mxu1 }
 0xa88   : > { %4148 = vst [vmem:[%s7476_s25 + $0x20] sm:$0xff] %v4022_v23  ;;  %v4018_v31 = vadd.f32 %v4017_v42, %v2392_v8  ;;  %v4019_v24 = vpop.f32.mrb[29].mxu1 }
 0xa89   : > { %4149 = vst [vmem:[%s7476_s25 + $0x28] sm:$0xff] %v4023_v53  ;;  %v4020_v15 = vadd.f32 %v4019_v24, %v2392_v8 }
 0xa8a   : > { %v4024_v62 = vadd.f32 %v4459_v6, %v4018_v31 }
 0xa8b   : > { %v4025_v19 = vadd.f32 %v4460_v17, %v4020_v15 }
 0xa8c   : > { %4150 = vst [vmem:[%s7476_s25 + $0x30] sm:$0xff] %v4024_v62 }
 0xa8d   : > { %4151 = vst [vmem:[%s7476_s25 + $0x38] sm:$0xff] %v4025_v19 }
 0xa8e PF: > { %s21_s17 = sadd.s32 1, %s4467_s17  }
 0xa8f   : > { %p18_p4 = scmp.ge.s32.totalorder %s21_s17, 4  }
 0xa91   :  { %20 = sbr.rel (!%p18_p4) target bundleno = 1 (0x1), region = 96 }

</bundles_post_ra>
